<compile_context>
chip_gen: v7x
topology: tpu7x:2x2x1
jax: 0.10.0
libtpu: 0.0.40
codegen_flags: <defaults>
</compile_context>

<pallas_src>
import functools
import math

import jax
import jax.numpy as jnp
from jax.experimental import pallas as pl
from jax.experimental.pallas import tpu as pltpu

EPS = 1e-5                        # LayerNorm / BatchNorm eps (torch defaults)
MATMUL_DTYPE = jnp.bfloat16       # MXU operand dtype (accumulation stays f32)
INTERMEDIATE_DTYPE = jnp.bfloat16  # part1 -> part2 pre-BN activation dtype


# ----------------------------------------------------------------------------
# In-kernel helpers (operate on a flattened (N, D) slab, f32)
# ----------------------------------------------------------------------------
def _layer_norm(x, g, b):
    mu = jnp.mean(x, axis=-1, keepdims=True)
    var = jnp.mean(jnp.square(x - mu), axis=-1, keepdims=True)
    return (x - mu) * jax.lax.rsqrt(var + EPS) * g + b


def _silu(x):
    return x * jax.nn.sigmoid(x)


def _mm(x, w, b=None):
    # x: (M, Din) f32; w: (Din, Dout) pre-transposed, bf16; b: (1, Dout) f32.
    out = jnp.dot(x.astype(w.dtype), w, preferred_element_type=jnp.float32)
    if b is not None:
        out = out + b
    return out


# ----------------------------------------------------------------------------
# Kernel part 1: FFN1 + MHA (flash-style over KV tiles) + conv module up to
# the depthwise conv (pre-BN).  Also emits per-block sum / sum-of-squares for
# the BatchNorm statistics.
# ----------------------------------------------------------------------------
def conformer_part1_kernel(num_heads, dw_kernel_size, kv_tile,
                           x_ref,
                           ffn1_g, ffn1_b, ffn1_w1, ffn1_b1, ffn1_w2, ffn1_b2,
                           attn_g, attn_b, wqkv, bqkv, wo, bo,
                           cv_g, cv_b, pw1_w, pw1_b, dw_w, dw_b,
                           x2_ref, ybn_ref, sum_ref, ssq_ref):
    Bt, T, D = x_ref.shape
    N = Bt * T
    H = num_heads
    dh = D // H
    G = Bt * H
    scale = 1.0 / math.sqrt(dh)

    x = x_ref[...].reshape(N, D)                    # flatten batch*time rows

    # ---------------- FFN1 (half residual) ----------------
    y = _layer_norm(x, ffn1_g[...], ffn1_b[...])
    y = _silu(_mm(y, ffn1_w1[...], ffn1_b1[...]))
    y = _mm(y, ffn1_w2[...], ffn1_b2[...])
    x = x + 0.5 * y

    # ---------------- Multi-head self-attention ----------------
    residual = x
    y = _layer_norm(x, attn_g[...], attn_b[...])
    qkv = _mm(y, wqkv[...], bqkv[...])              # fused QKV -> (N, 3D)

    def split_heads(z2d):
        # (N, D) -> (Bt*H, T, dh); batch axis g = h*Bt + b (order-free, only
        # has to be consistent with the merge below).
        zh = jnp.stack([z2d[:, h * dh:(h + 1) * dh] for h in range(H)], 0)
        return zh.reshape(G, T, dh)

    qh = (split_heads(qkv[:, :D]) * scale).astype(MATMUL_DTYPE)
    kh = split_heads(qkv[:, D:2 * D]).astype(MATMUL_DTYPE)
    vh = split_heads(qkv[:, 2 * D:]).astype(MATMUL_DTYPE)

    # Flash-style online softmax over KV tiles: never materialises (G, T, T).
    m_i = jnp.full((G, T, 1), -jnp.inf, jnp.float32)
    l_i = jnp.zeros((G, T, 1), jnp.float32)
    acc = jnp.zeros((G, T, dh), jnp.float32)
    n_kv = T // kv_tile
    for j in range(n_kv):
        ks = kh[:, j * kv_tile:(j + 1) * kv_tile, :]
        vs = vh[:, j * kv_tile:(j + 1) * kv_tile, :]
        s = jnp.einsum('gqd,gkd->gqk', qh, ks,
                       preferred_element_type=jnp.float32)    # (G, T, kv_tile)
        # TODO(synk): key_padding_mask (additive -inf on masked keys).
        m_new = jnp.maximum(m_i, jnp.max(s, axis=-1, keepdims=True))
        alpha = jnp.exp(m_i - m_new)
        p = jnp.exp(s - m_new)
        l_i = alpha * l_i + jnp.sum(p, axis=-1, keepdims=True)
        acc = alpha * acc + jnp.einsum('gqk,gkd->gqd',
                                       p.astype(MATMUL_DTYPE), vs,
                                       preferred_element_type=jnp.float32)
        m_i = m_new

    o = acc * pl.reciprocal(l_i, approx=True)                 # (G, T, dh)
    o3 = o.reshape(H, N, dh)                                   # free regroup
    o2 = jnp.concatenate([o3[h] for h in range(H)], axis=-1)   # (N, D) head merge
    x = residual + _mm(o2, wo[...], bo[...])                   # full-K Wo matmul
    x2_ref[...] = x.reshape(Bt, T, D)

    # ---------------- Conv module (pre-BatchNorm part) ----------------
    y = _layer_norm(x, cv_g[...], cv_b[...])
    h = _mm(y, pw1_w[...], pw1_b[...])              # fused pointwise conv -> (N, 2D)
    y = h[:, :D] * jax.nn.sigmoid(h[:, D:])         # GLU over channels

    # Depthwise 'same' conv over time: sublane roll (XLU) + masked VPU MAC.
    # Rows are batch-major (row = b*T + t), so rolling by `shift` rows shifts
    # time inside each batch; cross-batch wraps fall in the masked range.
    pad = (dw_kernel_size - 1) // 2
    trow = jax.lax.broadcasted_iota(jnp.int32, (N, 1), 0) % T   # (N,1) time index
    dw_w_f = dw_w[...]                               # (K, D) f32
    acc_c = jnp.zeros((N, D), jnp.float32)
    for ki in range(dw_kernel_size):
        shift = ki - pad                             # acc[t] += w[ki] * y[t + shift]
        w_row = dw_w_f[ki:ki + 1, :]
        if shift == 0:
            acc_c = acc_c + y * w_row
            continue
        rolled = pltpu.roll(y, shift=(-shift) % N, axis=0)
        lo = max(0, -shift)
        hi = min(T, T - shift)
        valid = jnp.logical_and(trow >= lo, trow < hi)
        acc_c = acc_c + jnp.where(valid, rolled * w_row, 0.0)
    ybn = acc_c + dw_b[...]                          # pre-BatchNorm activation (f32)
    ybn_ref[...] = ybn.reshape(Bt, T, D).astype(ybn_ref.dtype)   # bf16 to HBM
    sum_ref[...] = jnp.sum(ybn, axis=0, keepdims=True).reshape(1, 1, D)
    ssq_ref[...] = jnp.sum(jnp.square(ybn), axis=0, keepdims=True).reshape(1, 1, D)


# ----------------------------------------------------------------------------
# Kernel part 2: BatchNorm (folded scale/shift) + SiLU + pointwise conv 2 +
# residual + FFN2 + final LayerNorm.
# ----------------------------------------------------------------------------
def conformer_part2_kernel(x2_ref, ybn_ref,
                           bn_scale, bn_shift, pw2_w, pw2_b,
                           ffn2_g, ffn2_b, ffn2_w1, ffn2_b1, ffn2_w2, ffn2_b2,
                           fin_g, fin_b,
                           o_ref):
    Bt, T, D = x2_ref.shape
    N = Bt * T
    x = x2_ref[...].reshape(N, D)
    y = ybn_ref[...].astype(jnp.float32).reshape(N, D)
    y = y * bn_scale[...] + bn_shift[...]            # BatchNorm1d (batch stats folded)
    y = _silu(y)
    y = _mm(y, pw2_w[...], pw2_b[...])
    x = x + y                                        # conv-module residual

    # ---------------- FFN2 (half residual) ----------------
    y = _layer_norm(x, ffn2_g[...], ffn2_b[...])
    y = _silu(_mm(y, ffn2_w1[...], ffn2_b1[...]))
    y = _mm(y, ffn2_w2[...], ffn2_b2[...])
    x = x + 0.5 * y

    o_ref[...] = _layer_norm(x, fin_g[...], fin_b[...]).reshape(Bt, T, D)


# ----------------------------------------------------------------------------
# Wrapper-side sizing helpers
# ----------------------------------------------------------------------------
def _vmem_limit_bytes():
    """~75% of physical VMEM (96 MiB on v5e/v6e, 48 MiB on v7x)."""
    try:
        info = pltpu.get_tpu_info()
        cap = getattr(info, "vmem_capacity_bytes", None)
        if cap:
            return int(cap * 0.75)
    except Exception:
        pass
    return 48 * 1024 * 1024          # safe fallback for any generation


def _pick_kv_tile(T):
    if T <= 512:
        return T
    for cand in (512, 256, 128):
        if T % cand == 0:
            return cand
    return T


def _pick_block_batch(B, T, D, ffn_dim, num_heads, kv_tile, vmem_limit):
    """Largest divisor of B whose activation footprint fits a slice of VMEM,
    while keeping >= 2 grid steps so both v7x TensorCores get work."""
    dh = D // num_heads
    per_b = 4 * T * (12 * D + ffn_dim) \
        + 4 * num_heads * T * (2 * kv_tile + 3 * dh)     # rough f32 bytes / batch elt
    budget = max(int(vmem_limit * 0.4), per_b)
    bt = 1
    for cand in range(1, min(B, 8) + 1):
        if B % cand != 0:
            continue
        if cand * per_b > budget:
            continue
        if B >= 2 and B // cand < 2:
            continue
        bt = cand
    return bt


# ----------------------------------------------------------------------------
# Wrapper
# ----------------------------------------------------------------------------
def conformer_layer(x_tbd, key_padding_mask, params, *, num_heads, dw_kernel_size):
    """x_tbd: (T, B, D) float32. Returns (T, B, D) float32."""
    assert key_padding_mask is None  # TODO(synk): mask support
    assert dw_kernel_size % 2 == 1, "even kernel => asymmetric 'same' padding"
    T, B, D = x_tbd.shape
    assert D % num_heads == 0
    p = params
    ffn_dim = p['ffn1_w1'].shape[1]

    vmem_limit = _vmem_limit_bytes()
    kv_tile = _pick_kv_tile(T)
    Bt = _pick_block_batch(B, T, D, ffn_dim, num_heads, kv_tile, vmem_limit)
    nsteps = B // Bt

    # TODO(synk): accept batch-major input (or fold this into the DMA) to save
    # a full-tensor HBM pass on each side — most valuable on v5e.
    x = jnp.transpose(x_tbd, (1, 0, 2))              # (B, T, D) kernel layout

    def bspec():                                     # Bt batch elements per step
        return pl.BlockSpec((Bt, T, D), lambda b: (b, 0, 0))

    def sspec():                                     # per-step (1, D) statistics
        return pl.BlockSpec((1, 1, D), lambda b: (b, 0, 0))

    def fspec(arr):                                  # full-extent, resident weights
        nd = arr.ndim
        return pl.BlockSpec(arr.shape, lambda b, nd=nd: (0,) * nd)

    cparams = pltpu.CompilerParams(
        dimension_semantics=("parallel",),
        vmem_limit_bytes=vmem_limit)

    # ---- part 1: FFN1 + attention + conv module up to the depthwise conv ----
    part1_weights = (
        p['ffn1_g'], p['ffn1_b'], p['ffn1_w1'], p['ffn1_b1'], p['ffn1_w2'], p['ffn1_b2'],
        p['attn_g'], p['attn_b'], p['wqkv'], p['bqkv'], p['wo'], p['bo'],
        p['cv_g'], p['cv_b'], p['pw1_w'], p['pw1_b'], p['dw_w'], p['dw_b'])
    k1 = functools.partial(conformer_part1_kernel, num_heads, dw_kernel_size, kv_tile)
    x2, ybn, bsum, bssq = pl.pallas_call(
        k1,
        out_shape=(jax.ShapeDtypeStruct((B, T, D), jnp.float32),
                   jax.ShapeDtypeStruct((B, T, D), INTERMEDIATE_DTYPE),
                   jax.ShapeDtypeStruct((nsteps, 1, D), jnp.float32),
                   jax.ShapeDtypeStruct((nsteps, 1, D), jnp.float32)),
        grid_spec=pltpu.PrefetchScalarGridSpec(
            num_scalar_prefetch=0,
            grid=(nsteps,),
            in_specs=[bspec()] + [fspec(w) for w in part1_weights],
            out_specs=(bspec(), bspec(), sspec(), sspec())),
        compiler_params=cparams,
    )(x, *part1_weights)

    # ---- BatchNorm1d training-mode statistics over the full (B, T) extent ----
    n = float(B * T)
    mu = jnp.sum(bsum[:, 0, :], axis=0, keepdims=True) / n          # (1, D)
    ex2 = jnp.sum(bssq[:, 0, :], axis=0, keepdims=True) / n
    var = jnp.maximum(ex2 - jnp.square(mu), 0.0)                    # clamp cancellation
    inv = jax.lax.rsqrt(var + EPS)
    bn_scale = p['bn_g'] * inv
    bn_shift = p['bn_b'] - mu * bn_scale

    # ---- part 2: BN + SiLU + pw2 + residual + FFN2 + final LayerNorm ----
    part2_weights = (
        bn_scale, bn_shift, p['pw2_w'], p['pw2_b'],
        p['ffn2_g'], p['ffn2_b'], p['ffn2_w1'], p['ffn2_b1'], p['ffn2_w2'], p['ffn2_b2'],
        p['fin_g'], p['fin_b'])
    out = pl.pallas_call(
        conformer_part2_kernel,
        out_shape=jax.ShapeDtypeStruct((B, T, D), jnp.float32),
        grid_spec=pltpu.PrefetchScalarGridSpec(
            num_scalar_prefetch=0,
            grid=(nsteps,),
            in_specs=[bspec(), bspec()] + [fspec(w) for w in part2_weights],
            out_specs=bspec()),
        compiler_params=cparams,
    )(x2, ybn, *part2_weights)

    return jnp.transpose(out, (1, 0, 2))             # back to (T, B, D)


# ----------------------------------------------------------------------------
# Parameters: torch-layout init + one-time packing into kernel layout
# ----------------------------------------------------------------------------
def init_params_torch_layout(key, D, H, K):
    keys = jax.random.split(key, 18)
    nrm = lambda k, shape, s=0.05: s * jax.random.normal(k, shape, jnp.float32)
    ones = lambda n: jnp.ones((n,), jnp.float32)
    zeros = lambda n: jnp.zeros((n,), jnp.float32)
    return dict(
        ffn1_ln_g=ones(D), ffn1_ln_b=zeros(D),
        ffn1_w1=nrm(keys[0], (H, D)), ffn1_b1=nrm(keys[1], (H,)),
        ffn1_w2=nrm(keys[2], (D, H)), ffn1_b2=nrm(keys[3], (D,)),
        attn_ln_g=ones(D), attn_ln_b=zeros(D),
        in_proj_w=nrm(keys[4], (3 * D, D)), in_proj_b=nrm(keys[5], (3 * D,)),
        out_proj_w=nrm(keys[6], (D, D)), out_proj_b=nrm(keys[7], (D,)),
        conv_ln_g=ones(D), conv_ln_b=zeros(D),
        pw1_w=nrm(keys[8], (2 * D, D)), pw1_b=nrm(keys[9], (2 * D,)),
        dw_w=nrm(keys[10], (D, 1, K)), dw_b=nrm(keys[11], (D,)),
        bn_g=ones(D), bn_b=zeros(D),
        pw2_w=nrm(keys[12], (D, D)), pw2_b=nrm(keys[13], (D,)),
        ffn2_ln_g=ones(D), ffn2_ln_b=zeros(D),
        ffn2_w1=nrm(keys[14], (H, D)), ffn2_b1=nrm(keys[15], (H,)),
        ffn2_w2=nrm(keys[16], (D, H)), ffn2_b2=nrm(keys[17], (D,)),
        fin_ln_g=ones(D), fin_ln_b=zeros(D),
    )


def pack_params(tp, *, matmul_dtype=MATMUL_DTYPE):
    """Torch-layout params -> kernel-ready layout (pre-transposed, fused, bf16)."""
    r = lambda v: jnp.asarray(v, jnp.float32).reshape(1, -1)            # (1, N) rows
    mt = lambda w: jnp.asarray(w, jnp.float32).T.astype(matmul_dtype)   # (Din, Dout)
    return dict(
        ffn1_g=r(tp['ffn1_ln_g']), ffn1_b=r(tp['ffn1_ln_b']),
        ffn1_w1=mt(tp['ffn1_w1']), ffn1_b1=r(tp['ffn1_b1']),
        ffn1_w2=mt(tp['ffn1_w2']), ffn1_b2=r(tp['ffn1_b2']),
        attn_g=r(tp['attn_ln_g']), attn_b=r(tp['attn_ln_b']),
        wqkv=mt(tp['in_proj_w']), bqkv=r(tp['in_proj_b']),              # fused QKV
        wo=mt(tp['out_proj_w']), bo=r(tp['out_proj_b']),
        cv_g=r(tp['conv_ln_g']), cv_b=r(tp['conv_ln_b']),
        pw1_w=mt(tp['pw1_w']), pw1_b=r(tp['pw1_b']),                    # fused GLU halves
        dw_w=jnp.transpose(tp['dw_w'][:, 0, :], (1, 0)).astype(jnp.float32),  # (K, D)
        dw_b=r(tp['dw_b']),
        bn_g=r(tp['bn_g']), bn_b=r(tp['bn_b']),
        pw2_w=mt(tp['pw2_w']), pw2_b=r(tp['pw2_b']),
        ffn2_g=r(tp['ffn2_ln_g']), ffn2_b=r(tp['ffn2_ln_b']),
        ffn2_w1=mt(tp['ffn2_w1']), ffn2_b1=r(tp['ffn2_b1']),
        ffn2_w2=mt(tp['ffn2_w2']), ffn2_b2=r(tp['ffn2_b2']),
        fin_g=r(tp['fin_ln_g']), fin_b=r(tp['fin_ln_b']),
    )


if __name__ == "__main__":
    T, B, D = 16, 4, 128        # seq len, batch, input_dim (D lane-aligned to 128)
    FFN = 256                   # ffn_dim
    NUM_HEADS = 4
    K = 7                       # depthwise_conv_kernel_size (odd -> symmetric 'same')

    key = jax.random.PRNGKey(0)
    kx, kp = jax.random.split(key)
    x = jax.random.normal(kx, (T, B, D), jnp.float32)
    params = pack_params(init_params_torch_layout(kp, D, FFN, K))

    fn = jax.jit(functools.partial(conformer_layer,
                                   num_heads=NUM_HEADS, dw_kernel_size=K))
    out = jax.block_until_ready(fn(x, None, params))
    assert out.shape == (T, B, D) and out.dtype == jnp.float32
    assert bool(jnp.all(jnp.isfinite(out)))
    print("KERNEL_OK")
</pallas_src>

<mosaic_0001>
module attributes {stable_mosaic.version = 11 : i64} {
  func.func @conformer_part1_kernel(%arg0: i32, %arg1: memref<2x16x128xf32, #tpu.memory_space<vmem>>, %arg2: memref<1x128xf32, #tpu.memory_space<vmem>>, %arg3: memref<1x128xf32, #tpu.memory_space<vmem>>, %arg4: memref<128x256xbf16, #tpu.memory_space<vmem>>, %arg5: memref<1x256xf32, #tpu.memory_space<vmem>>, %arg6: memref<256x128xbf16, #tpu.memory_space<vmem>>, %arg7: memref<1x128xf32, #tpu.memory_space<vmem>>, %arg8: memref<1x128xf32, #tpu.memory_space<vmem>>, %arg9: memref<1x128xf32, #tpu.memory_space<vmem>>, %arg10: memref<128x384xbf16, #tpu.memory_space<vmem>>, %arg11: memref<1x384xf32, #tpu.memory_space<vmem>>, %arg12: memref<128x128xbf16, #tpu.memory_space<vmem>>, %arg13: memref<1x128xf32, #tpu.memory_space<vmem>>, %arg14: memref<1x128xf32, #tpu.memory_space<vmem>>, %arg15: memref<1x128xf32, #tpu.memory_space<vmem>>, %arg16: memref<128x256xbf16, #tpu.memory_space<vmem>>, %arg17: memref<1x256xf32, #tpu.memory_space<vmem>>, %arg18: memref<7x128xf32, #tpu.memory_space<vmem>>, %arg19: memref<1x128xf32, #tpu.memory_space<vmem>>, %arg20: memref<2x16x128xf32, #tpu.memory_space<vmem>>, %arg21: memref<2x16x128xbf16, #tpu.memory_space<vmem>>, %arg22: memref<1x1x128xf32, #tpu.memory_space<vmem>>, %arg23: memref<1x1x128xf32, #tpu.memory_space<vmem>>) attributes {dimension_semantics = [#tpu.dimension_semantics<parallel>], iteration_bounds = array<i64: 2>, scalar_prefetch = 0 : i64, scratch_operands = 0 : i64, tpu.core_type = #tpu.core_type<tc>, window_params = [{transform_indices = @transform_0, window_bounds = array<i64: 2, 16, 128>}, {pipeline_mode = #tpu.pipeline_mode<synchronous>, transform_indices = @transform_1, window_bounds = array<i64: 1, 128>}, {pipeline_mode = #tpu.pipeline_mode<synchronous>, transform_indices = @transform_2, window_bounds = array<i64: 1, 128>}, {pipeline_mode = #tpu.pipeline_mode<synchronous>, transform_indices = @transform_3, window_bounds = array<i64: 128, 256>}, {pipeline_mode = #tpu.pipeline_mode<synchronous>, transform_indices = @transform_4, window_bounds = array<i64: 1, 256>}, {pipeline_mode = #tpu.pipeline_mode<synchronous>, transform_indices = @transform_5, window_bounds = array<i64: 256, 128>}, {pipeline_mode = #tpu.pipeline_mode<synchronous>, transform_indices = @transform_6, window_bounds = array<i64: 1, 128>}, {pipeline_mode = #tpu.pipeline_mode<synchronous>, transform_indices = @transform_7, window_bounds = array<i64: 1, 128>}, {pipeline_mode = #tpu.pipeline_mode<synchronous>, transform_indices = @transform_8, window_bounds = array<i64: 1, 128>}, {pipeline_mode = #tpu.pipeline_mode<synchronous>, transform_indices = @transform_9, window_bounds = array<i64: 128, 384>}, {pipeline_mode = #tpu.pipeline_mode<synchronous>, transform_indices = @transform_10, window_bounds = array<i64: 1, 384>}, {pipeline_mode = #tpu.pipeline_mode<synchronous>, transform_indices = @transform_11, window_bounds = array<i64: 128, 128>}, {pipeline_mode = #tpu.pipeline_mode<synchronous>, transform_indices = @transform_12, window_bounds = array<i64: 1, 128>}, {pipeline_mode = #tpu.pipeline_mode<synchronous>, transform_indices = @transform_13, window_bounds = array<i64: 1, 128>}, {pipeline_mode = #tpu.pipeline_mode<synchronous>, transform_indices = @transform_14, window_bounds = array<i64: 1, 128>}, {pipeline_mode = #tpu.pipeline_mode<synchronous>, transform_indices = @transform_15, window_bounds = array<i64: 128, 256>}, {pipeline_mode = #tpu.pipeline_mode<synchronous>, transform_indices = @transform_16, window_bounds = array<i64: 1, 256>}, {pipeline_mode = #tpu.pipeline_mode<synchronous>, transform_indices = @transform_17, window_bounds = array<i64: 7, 128>}, {pipeline_mode = #tpu.pipeline_mode<synchronous>, transform_indices = @transform_18, window_bounds = array<i64: 1, 128>}, {transform_indices = @transform_19, window_bounds = array<i64: 2, 16, 128>}, {transform_indices = @transform_20, window_bounds = array<i64: 2, 16, 128>}, {transform_indices = @transform_21, window_bounds = array<i64: 1, 1, 128>}, {transform_indices = @transform_22, window_bounds = array<i64: 1, 1, 128>}]} {
    %c0 = arith.constant 0 : index
    %c0_0 = arith.constant 0 : index
    %c0_1 = arith.constant 0 : index
    %0 = vector.load %arg1[%c0, %c0_0, %c0_1] : memref<2x16x128xf32, #tpu.memory_space<vmem>>, vector<2x16x128xf32>
    %1 = vector.shape_cast %0 : vector<2x16x128xf32> to vector<32x128xf32>
    %c0_2 = arith.constant 0 : index
    %c0_3 = arith.constant 0 : index
    %2 = vector.load %arg2[%c0_2, %c0_3] : memref<1x128xf32, #tpu.memory_space<vmem>>, vector<1x128xf32>
    %c0_4 = arith.constant 0 : index
    %c0_5 = arith.constant 0 : index
    %3 = vector.load %arg3[%c0_4, %c0_5] : memref<1x128xf32, #tpu.memory_space<vmem>>, vector<1x128xf32>
    %cst = arith.constant dense<0.000000e+00> : vector<32xf32>
    %4 = vector.multi_reduction <add>, %1, %cst [1] : vector<32x128xf32> to vector<32xf32>
    %5 = vector.shape_cast %4 : vector<32xf32> to vector<32x1xf32>
    %cst_6 = arith.constant 1.280000e+02 : f32
    %6 = vector.broadcast %cst_6 : f32 to vector<32x1xf32>
    %7 = arith.divf %5, %6 : vector<32x1xf32>
    %8 = vector.broadcast %7 : vector<32x1xf32> to vector<32x128xf32>
    %9 = arith.subf %1, %8 : vector<32x128xf32>
    %10 = arith.mulf %9, %9 : vector<32x128xf32>
    %cst_7 = arith.constant dense<0.000000e+00> : vector<32xf32>
    %11 = vector.multi_reduction <add>, %10, %cst_7 [1] : vector<32x128xf32> to vector<32xf32>
    %12 = vector.shape_cast %11 : vector<32xf32> to vector<32x1xf32>
    %cst_8 = arith.constant 1.280000e+02 : f32
    %13 = vector.broadcast %cst_8 : f32 to vector<32x1xf32>
    %14 = arith.divf %12, %13 : vector<32x1xf32>
    %15 = vector.broadcast %7 : vector<32x1xf32> to vector<32x128xf32>
    %16 = arith.subf %1, %15 : vector<32x128xf32>
    %cst_9 = arith.constant 9.99999974E-6 : f32
    %17 = vector.broadcast %cst_9 : f32 to vector<32x1xf32>
    %18 = arith.addf %14, %17 : vector<32x1xf32>
    %19 = math.rsqrt %18 : vector<32x1xf32>
    %20 = vector.broadcast %19 : vector<32x1xf32> to vector<32x128xf32>
    %21 = arith.mulf %16, %20 : vector<32x128xf32>
    %22 = vector.broadcast %2 : vector<1x128xf32> to vector<32x128xf32>
    %23 = arith.mulf %21, %22 : vector<32x128xf32>
    %24 = vector.broadcast %3 : vector<1x128xf32> to vector<32x128xf32>
    %25 = arith.addf %23, %24 : vector<32x128xf32>
    %c0_10 = arith.constant 0 : index
    %c0_11 = arith.constant 0 : index
    %26 = vector.load %arg4[%c0_10, %c0_11] : memref<128x256xbf16, #tpu.memory_space<vmem>>, vector<128x256xbf16>
    %c0_12 = arith.constant 0 : index
    %c0_13 = arith.constant 0 : index
    %27 = vector.load %arg5[%c0_12, %c0_13] : memref<1x256xf32, #tpu.memory_space<vmem>>, vector<1x256xf32>
    %28 = arith.truncf %25 : vector<32x128xf32> to vector<32x128xbf16>
    %cst_14 = arith.constant dense<0.000000e+00> : vector<32x256xf32>
    %29 = tpu.matmul %28, %26, %cst_14 {dimension_numbers = #tpu.dot_dimension_numbers<[1], [0], [0], [1], [0, 0, 1, 1], [], []>} : vector<32x128xbf16>, vector<128x256xbf16>, vector<32x256xf32> -> vector<32x256xf32>
    %30 = vector.broadcast %27 : vector<1x256xf32> to vector<32x256xf32>
    %31 = arith.addf %29, %30 : vector<32x256xf32>
    %32 = arith.negf %31 : vector<32x256xf32>
    %33 = math.exp %32 : vector<32x256xf32>
    %cst_15 = arith.constant 1.000000e+00 : f32
    %34 = vector.broadcast %cst_15 : f32 to vector<32x256xf32>
    %35 = arith.addf %34, %33 : vector<32x256xf32>
    %36 = arith.divf %34, %35 : vector<32x256xf32>
    %37 = arith.mulf %31, %36 : vector<32x256xf32>
    %c0_16 = arith.constant 0 : index
    %c0_17 = arith.constant 0 : index
    %38 = vector.load %arg6[%c0_16, %c0_17] : memref<256x128xbf16, #tpu.memory_space<vmem>>, vector<256x128xbf16>
    %c0_18 = arith.constant 0 : index
    %c0_19 = arith.constant 0 : index
    %39 = vector.load %arg7[%c0_18, %c0_19] : memref<1x128xf32, #tpu.memory_space<vmem>>, vector<1x128xf32>
    %40 = arith.truncf %37 : vector<32x256xf32> to vector<32x256xbf16>
    %cst_20 = arith.constant dense<0.000000e+00> : vector<32x128xf32>
    %41 = tpu.matmul %40, %38, %cst_20 {dimension_numbers = #tpu.dot_dimension_numbers<[1], [0], [0], [1], [0, 0, 1, 1], [], []>} : vector<32x256xbf16>, vector<256x128xbf16>, vector<32x128xf32> -> vector<32x128xf32>
    %42 = vector.broadcast %39 : vector<1x128xf32> to vector<32x128xf32>
    %43 = arith.addf %41, %42 : vector<32x128xf32>
    %cst_21 = arith.constant 5.000000e-01 : f32
    %44 = vector.broadcast %cst_21 : f32 to vector<32x128xf32>
    %45 = arith.mulf %44, %43 : vector<32x128xf32>
    %46 = arith.addf %1, %45 : vector<32x128xf32>
    %c0_22 = arith.constant 0 : index
    %c0_23 = arith.constant 0 : index
    %47 = vector.load %arg8[%c0_22, %c0_23] : memref<1x128xf32, #tpu.memory_space<vmem>>, vector<1x128xf32>
    %c0_24 = arith.constant 0 : index
    %c0_25 = arith.constant 0 : index
    %48 = vector.load %arg9[%c0_24, %c0_25] : memref<1x128xf32, #tpu.memory_space<vmem>>, vector<1x128xf32>
    %cst_26 = arith.constant dense<0.000000e+00> : vector<32xf32>
    %49 = vector.multi_reduction <add>, %46, %cst_26 [1] : vector<32x128xf32> to vector<32xf32>
    %50 = vector.shape_cast %49 : vector<32xf32> to vector<32x1xf32>
    %cst_27 = arith.constant 1.280000e+02 : f32
    %51 = vector.broadcast %cst_27 : f32 to vector<32x1xf32>
    %52 = arith.divf %50, %51 : vector<32x1xf32>
    %53 = vector.broadcast %52 : vector<32x1xf32> to vector<32x128xf32>
    %54 = arith.subf %46, %53 : vector<32x128xf32>
    %55 = arith.mulf %54, %54 : vector<32x128xf32>
    %cst_28 = arith.constant dense<0.000000e+00> : vector<32xf32>
    %56 = vector.multi_reduction <add>, %55, %cst_28 [1] : vector<32x128xf32> to vector<32xf32>
    %57 = vector.shape_cast %56 : vector<32xf32> to vector<32x1xf32>
    %cst_29 = arith.constant 1.280000e+02 : f32
    %58 = vector.broadcast %cst_29 : f32 to vector<32x1xf32>
    %59 = arith.divf %57, %58 : vector<32x1xf32>
    %60 = vector.broadcast %52 : vector<32x1xf32> to vector<32x128xf32>
    %61 = arith.subf %46, %60 : vector<32x128xf32>
    %cst_30 = arith.constant 9.99999974E-6 : f32
    %62 = vector.broadcast %cst_30 : f32 to vector<32x1xf32>
    %63 = arith.addf %59, %62 : vector<32x1xf32>
    %64 = math.rsqrt %63 : vector<32x1xf32>
    %65 = vector.broadcast %64 : vector<32x1xf32> to vector<32x128xf32>
    %66 = arith.mulf %61, %65 : vector<32x128xf32>
    %67 = vector.broadcast %47 : vector<1x128xf32> to vector<32x128xf32>
    %68 = arith.mulf %66, %67 : vector<32x128xf32>
    %69 = vector.broadcast %48 : vector<1x128xf32> to vector<32x128xf32>
    %70 = arith.addf %68, %69 : vector<32x128xf32>
    %c0_31 = arith.constant 0 : index
    %c0_32 = arith.constant 0 : index
    %71 = vector.load %arg10[%c0_31, %c0_32] : memref<128x384xbf16, #tpu.memory_space<vmem>>, vector<128x384xbf16>
    %c0_33 = arith.constant 0 : index
    %c0_34 = arith.constant 0 : index
    %72 = vector.load %arg11[%c0_33, %c0_34] : memref<1x384xf32, #tpu.memory_space<vmem>>, vector<1x384xf32>
    %73 = arith.truncf %70 : vector<32x128xf32> to vector<32x128xbf16>
    %cst_35 = arith.constant dense<0.000000e+00> : vector<32x384xf32>
    %74 = tpu.matmul %73, %71, %cst_35 {dimension_numbers = #tpu.dot_dimension_numbers<[1], [0], [0], [1], [0, 0, 1, 1], [], []>} : vector<32x128xbf16>, vector<128x384xbf16>, vector<32x384xf32> -> vector<32x384xf32>
    %75 = vector.broadcast %72 : vector<1x384xf32> to vector<32x384xf32>
    %76 = arith.addf %74, %75 : vector<32x384xf32>
    %77 = vector.extract_strided_slice %76 {offsets = [0, 0], sizes = [32, 128], strides = [1, 1]} : vector<32x384xf32> to vector<32x128xf32>
    %78 = vector.extract_strided_slice %77 {offsets = [0, 0], sizes = [32, 32], strides = [1, 1]} : vector<32x128xf32> to vector<32x32xf32>
    %79 = vector.extract_strided_slice %77 {offsets = [0, 32], sizes = [32, 32], strides = [1, 1]} : vector<32x128xf32> to vector<32x32xf32>
    %80 = vector.extract_strided_slice %77 {offsets = [0, 64], sizes = [32, 32], strides = [1, 1]} : vector<32x128xf32> to vector<32x32xf32>
    %81 = vector.extract_strided_slice %77 {offsets = [0, 96], sizes = [32, 32], strides = [1, 1]} : vector<32x128xf32> to vector<32x32xf32>
    %82 = vector.shape_cast %78 : vector<32x32xf32> to vector<1x32x32xf32>
    %83 = vector.shape_cast %79 : vector<32x32xf32> to vector<1x32x32xf32>
    %84 = vector.shape_cast %80 : vector<32x32xf32> to vector<1x32x32xf32>
    %85 = vector.shape_cast %81 : vector<32x32xf32> to vector<1x32x32xf32>
    %86 = tpu.concatenate %82, %83, %84, %85 in 0 : vector<1x32x32xf32>, vector<1x32x32xf32>, vector<1x32x32xf32>, vector<1x32x32xf32> -> vector<4x32x32xf32>
    %87 = vector.shape_cast %86 : vector<4x32x32xf32> to vector<8x16x32xf32>
    %cst_36 = arith.constant 0.176776692 : f32
    %88 = vector.broadcast %cst_36 : f32 to vector<8x16x32xf32>
    %89 = arith.mulf %87, %88 : vector<8x16x32xf32>
    %90 = arith.truncf %89 : vector<8x16x32xf32> to vector<8x16x32xbf16>
    %91 = vector.extract_strided_slice %76 {offsets = [0, 128], sizes = [32, 128], strides = [1, 1]} : vector<32x384xf32> to vector<32x128xf32>
    %92 = vector.extract_strided_slice %91 {offsets = [0, 0], sizes = [32, 32], strides = [1, 1]} : vector<32x128xf32> to vector<32x32xf32>
    %93 = vector.extract_strided_slice %91 {offsets = [0, 32], sizes = [32, 32], strides = [1, 1]} : vector<32x128xf32> to vector<32x32xf32>
    %94 = vector.extract_strided_slice %91 {offsets = [0, 64], sizes = [32, 32], strides = [1, 1]} : vector<32x128xf32> to vector<32x32xf32>
    %95 = vector.extract_strided_slice %91 {offsets = [0, 96], sizes = [32, 32], strides = [1, 1]} : vector<32x128xf32> to vector<32x32xf32>
    %96 = vector.shape_cast %92 : vector<32x32xf32> to vector<1x32x32xf32>
    %97 = vector.shape_cast %93 : vector<32x32xf32> to vector<1x32x32xf32>
    %98 = vector.shape_cast %94 : vector<32x32xf32> to vector<1x32x32xf32>
    %99 = vector.shape_cast %95 : vector<32x32xf32> to vector<1x32x32xf32>
    %100 = tpu.concatenate %96, %97, %98, %99 in 0 : vector<1x32x32xf32>, vector<1x32x32xf32>, vector<1x32x32xf32>, vector<1x32x32xf32> -> vector<4x32x32xf32>
    %101 = vector.shape_cast %100 : vector<4x32x32xf32> to vector<8x16x32xf32>
    %102 = arith.truncf %101 : vector<8x16x32xf32> to vector<8x16x32xbf16>
    %103 = vector.extract_strided_slice %76 {offsets = [0, 256], sizes = [32, 128], strides = [1, 1]} : vector<32x384xf32> to vector<32x128xf32>
    %104 = vector.extract_strided_slice %103 {offsets = [0, 0], sizes = [32, 32], strides = [1, 1]} : vector<32x128xf32> to vector<32x32xf32>
    %105 = vector.extract_strided_slice %103 {offsets = [0, 32], sizes = [32, 32], strides = [1, 1]} : vector<32x128xf32> to vector<32x32xf32>
    %106 = vector.extract_strided_slice %103 {offsets = [0, 64], sizes = [32, 32], strides = [1, 1]} : vector<32x128xf32> to vector<32x32xf32>
    %107 = vector.extract_strided_slice %103 {offsets = [0, 96], sizes = [32, 32], strides = [1, 1]} : vector<32x128xf32> to vector<32x32xf32>
    %108 = vector.shape_cast %104 : vector<32x32xf32> to vector<1x32x32xf32>
    %109 = vector.shape_cast %105 : vector<32x32xf32> to vector<1x32x32xf32>
    %110 = vector.shape_cast %106 : vector<32x32xf32> to vector<1x32x32xf32>
    %111 = vector.shape_cast %107 : vector<32x32xf32> to vector<1x32x32xf32>
    %112 = tpu.concatenate %108, %109, %110, %111 in 0 : vector<1x32x32xf32>, vector<1x32x32xf32>, vector<1x32x32xf32>, vector<1x32x32xf32> -> vector<4x32x32xf32>
    %113 = vector.shape_cast %112 : vector<4x32x32xf32> to vector<8x16x32xf32>
    %114 = arith.truncf %113 : vector<8x16x32xf32> to vector<8x16x32xbf16>
    %cst_37 = arith.constant 0xFF800000 : f32
    %115 = vector.broadcast %cst_37 : f32 to vector<8x16x1xf32>
    %cst_38 = arith.constant 0.000000e+00 : f32
    %116 = vector.broadcast %cst_38 : f32 to vector<8x16x1xf32>
    %cst_39 = arith.constant 0.000000e+00 : f32
    %117 = vector.broadcast %cst_39 : f32 to vector<8x16x32xf32>
    "tpu.trace_start"() <{level = 10 : i32, message = "gqd,gkd->gqk"}> : () -> ()
    %cst_40 = arith.constant dense<0.000000e+00> : vector<8x16x16xf32>
    %118 = tpu.matmul %90, %102, %cst_40 {dimension_numbers = #tpu.dot_dimension_numbers<[2], [2], [1], [1], [0, 0, 0, 1, 1, 1], [0], [0]>} : vector<8x16x32xbf16>, vector<8x16x32xbf16>, vector<8x16x16xf32> -> vector<8x16x16xf32>
    "tpu.trace_stop"() : () -> ()
    %cst_41 = arith.constant dense<0xFF800000> : vector<8x16xf32>
    %119 = vector.multi_reduction <maximumf>, %118, %cst_41 [2] : vector<8x16x16xf32> to vector<8x16xf32>
    %120 = vector.shape_cast %119 : vector<8x16xf32> to vector<8x16x1xf32>
    %121 = arith.maximumf %115, %120 : vector<8x16x1xf32>
    %122 = arith.subf %115, %121 : vector<8x16x1xf32>
    %123 = math.exp %122 : vector<8x16x1xf32>
    %124 = vector.broadcast %121 : vector<8x16x1xf32> to vector<8x16x16xf32>
    %125 = arith.subf %118, %124 : vector<8x16x16xf32>
    %126 = math.exp %125 : vector<8x16x16xf32>
    %127 = arith.mulf %123, %116 : vector<8x16x1xf32>
    %cst_42 = arith.constant dense<0.000000e+00> : vector<8x16xf32>
    %128 = vector.multi_reduction <add>, %126, %cst_42 [2] : vector<8x16x16xf32> to vector<8x16xf32>
    %129 = vector.shape_cast %128 : vector<8x16xf32> to vector<8x16x1xf32>
    %130 = arith.addf %127, %129 : vector<8x16x1xf32>
    %131 = vector.broadcast %123 : vector<8x16x1xf32> to vector<8x16x32xf32>
    %132 = arith.mulf %131, %117 : vector<8x16x32xf32>
    %133 = arith.truncf %126 : vector<8x16x16xf32> to vector<8x16x16xbf16>
    "tpu.trace_start"() <{level = 10 : i32, message = "gqk,gkd->gqd"}> : () -> ()
    %cst_43 = arith.constant dense<0.000000e+00> : vector<8x16x32xf32>
    %134 = tpu.matmul %133, %114, %cst_43 {dimension_numbers = #tpu.dot_dimension_numbers<[2], [1], [1], [2], [0, 0, 0, 1, 1, 2], [0], [0]>} : vector<8x16x16xbf16>, vector<8x16x32xbf16>, vector<8x16x32xf32> -> vector<8x16x32xf32>
    "tpu.trace_stop"() : () -> ()
    %135 = arith.addf %132, %134 : vector<8x16x32xf32>
    %136 = tpu.reciprocal %130 {approx = true} : vector<8x16x1xf32> -> vector<8x16x1xf32>
    %137 = vector.broadcast %136 : vector<8x16x1xf32> to vector<8x16x32xf32>
    %138 = arith.mulf %135, %137 : vector<8x16x32xf32>
    %139 = vector.shape_cast %138 : vector<8x16x32xf32> to vector<4x32x32xf32>
    %140 = vector.extract_strided_slice %139 {offsets = [0, 0, 0], sizes = [1, 32, 32], strides = [1, 1, 1]} : vector<4x32x32xf32> to vector<1x32x32xf32>
    %141 = vector.shape_cast %140 : vector<1x32x32xf32> to vector<32x32xf32>
    %142 = vector.extract_strided_slice %139 {offsets = [1, 0, 0], sizes = [1, 32, 32], strides = [1, 1, 1]} : vector<4x32x32xf32> to vector<1x32x32xf32>
    %143 = vector.shape_cast %142 : vector<1x32x32xf32> to vector<32x32xf32>
    %144 = vector.extract_strided_slice %139 {offsets = [2, 0, 0], sizes = [1, 32, 32], strides = [1, 1, 1]} : vector<4x32x32xf32> to vector<1x32x32xf32>
    %145 = vector.shape_cast %144 : vector<1x32x32xf32> to vector<32x32xf32>
    %146 = vector.extract_strided_slice %139 {offsets = [3, 0, 0], sizes = [1, 32, 32], strides = [1, 1, 1]} : vector<4x32x32xf32> to vector<1x32x32xf32>
    %147 = vector.shape_cast %146 : vector<1x32x32xf32> to vector<32x32xf32>
    %148 = tpu.concatenate %141, %143, %145, %147 in 1 : vector<32x32xf32>, vector<32x32xf32>, vector<32x32xf32>, vector<32x32xf32> -> vector<32x128xf32>
    %c0_44 = arith.constant 0 : index
    %c0_45 = arith.constant 0 : index
    %149 = vector.load %arg12[%c0_44, %c0_45] : memref<128x128xbf16, #tpu.memory_space<vmem>>, vector<128x128xbf16>
    %c0_46 = arith.constant 0 : index
    %c0_47 = arith.constant 0 : index
    %150 = vector.load %arg13[%c0_46, %c0_47] : memref<1x128xf32, #tpu.memory_space<vmem>>, vector<1x128xf32>
    %151 = arith.truncf %148 : vector<32x128xf32> to vector<32x128xbf16>
    %cst_48 = arith.constant dense<0.000000e+00> : vector<32x128xf32>
    %152 = tpu.matmul %151, %149, %cst_48 {dimension_numbers = #tpu.dot_dimension_numbers<[1], [0], [0], [1], [0, 0, 1, 1], [], []>} : vector<32x128xbf16>, vector<128x128xbf16>, vector<32x128xf32> -> vector<32x128xf32>
    %153 = vector.broadcast %150 : vector<1x128xf32> to vector<32x128xf32>
    %154 = arith.addf %152, %153 : vector<32x128xf32>
    %155 = arith.addf %46, %154 : vector<32x128xf32>
    %156 = vector.shape_cast %155 : vector<32x128xf32> to vector<2x16x128xf32>
    %c0_49 = arith.constant 0 : index
    %c0_50 = arith.constant 0 : index
    %c0_51 = arith.constant 0 : index
    %157 = vector.load %arg20[%c0_49, %c0_50, %c0_51] : memref<2x16x128xf32, #tpu.memory_space<vmem>>, vector<2x16x128xf32>
    tpu.vector_store %arg20[%c0_49, %c0_50, %c0_51], %156 {strides = array<i32>} : memref<2x16x128xf32, #tpu.memory_space<vmem>>, vector<2x16x128xf32>,
    %c0_52 = arith.constant 0 : index
    %c0_53 = arith.constant 0 : index
    %158 = vector.load %arg14[%c0_52, %c0_53] : memref<1x128xf32, #tpu.memory_space<vmem>>, vector<1x128xf32>
    %c0_54 = arith.constant 0 : index
    %c0_55 = arith.constant 0 : index
    %159 = vector.load %arg15[%c0_54, %c0_55] : memref<1x128xf32, #tpu.memory_space<vmem>>, vector<1x128xf32>
    %cst_56 = arith.constant dense<0.000000e+00> : vector<32xf32>
    %160 = vector.multi_reduction <add>, %155, %cst_56 [1] : vector<32x128xf32> to vector<32xf32>
    %161 = vector.shape_cast %160 : vector<32xf32> to vector<32x1xf32>
    %cst_57 = arith.constant 1.280000e+02 : f32
    %162 = vector.broadcast %cst_57 : f32 to vector<32x1xf32>
    %163 = arith.divf %161, %162 : vector<32x1xf32>
    %164 = vector.broadcast %163 : vector<32x1xf32> to vector<32x128xf32>
    %165 = arith.subf %155, %164 : vector<32x128xf32>
    %166 = arith.mulf %165, %165 : vector<32x128xf32>
    %cst_58 = arith.constant dense<0.000000e+00> : vector<32xf32>
    %167 = vector.multi_reduction <add>, %166, %cst_58 [1] : vector<32x128xf32> to vector<32xf32>
    %168 = vector.shape_cast %167 : vector<32xf32> to vector<32x1xf32>
    %cst_59 = arith.constant 1.280000e+02 : f32
    %169 = vector.broadcast %cst_59 : f32 to vector<32x1xf32>
    %170 = arith.divf %168, %169 : vector<32x1xf32>
    %171 = vector.broadcast %163 : vector<32x1xf32> to vector<32x128xf32>
    %172 = arith.subf %155, %171 : vector<32x128xf32>
    %cst_60 = arith.constant 9.99999974E-6 : f32
    %173 = vector.broadcast %cst_60 : f32 to vector<32x1xf32>
    %174 = arith.addf %170, %173 : vector<32x1xf32>
    %175 = math.rsqrt %174 : vector<32x1xf32>
    %176 = vector.broadcast %175 : vector<32x1xf32> to vector<32x128xf32>
    %177 = arith.mulf %172, %176 : vector<32x128xf32>
    %178 = vector.broadcast %158 : vector<1x128xf32> to vector<32x128xf32>
    %179 = arith.mulf %177, %178 : vector<32x128xf32>
    %180 = vector.broadcast %159 : vector<1x128xf32> to vector<32x128xf32>
    %181 = arith.addf %179, %180 : vector<32x128xf32>
    %c0_61 = arith.constant 0 : index
    %c0_62 = arith.constant 0 : index
    %182 = vector.load %arg16[%c0_61, %c0_62] : memref<128x256xbf16, #tpu.memory_space<vmem>>, vector<128x256xbf16>
    %c0_63 = arith.constant 0 : index
    %c0_64 = arith.constant 0 : index
    %183 = vector.load %arg17[%c0_63, %c0_64] : memref<1x256xf32, #tpu.memory_space<vmem>>, vector<1x256xf32>
    %184 = arith.truncf %181 : vector<32x128xf32> to vector<32x128xbf16>
    %cst_65 = arith.constant dense<0.000000e+00> : vector<32x256xf32>
    %185 = tpu.matmul %184, %182, %cst_65 {dimension_numbers = #tpu.dot_dimension_numbers<[1], [0], [0], [1], [0, 0, 1, 1], [], []>} : vector<32x128xbf16>, vector<128x256xbf16>, vector<32x256xf32> -> vector<32x256xf32>
    %186 = vector.broadcast %183 : vector<1x256xf32> to vector<32x256xf32>
    %187 = arith.addf %185, %186 : vector<32x256xf32>
    %188 = vector.extract_strided_slice %187 {offsets = [0, 0], sizes = [32, 128], strides = [1, 1]} : vector<32x256xf32> to vector<32x128xf32>
    %189 = vector.extract_strided_slice %187 {offsets = [0, 128], sizes = [32, 128], strides = [1, 1]} : vector<32x256xf32> to vector<32x128xf32>
    %190 = arith.negf %189 : vector<32x128xf32>
    %191 = math.exp %190 : vector<32x128xf32>
    %cst_66 = arith.constant 1.000000e+00 : f32
    %192 = vector.broadcast %cst_66 : f32 to vector<32x128xf32>
    %193 = arith.addf %192, %191 : vector<32x128xf32>
    %194 = arith.divf %192, %193 : vector<32x128xf32>
    %195 = arith.mulf %188, %194 : vector<32x128xf32>
    %196 = tpu.iota {dimensions = array<i32: 0>} : vector<32x1xi32>
    %c16_i32 = arith.constant 16 : i32
    %c0_i32 = arith.constant 0 : i32
    %197 = arith.cmpi eq, %c16_i32, %c0_i32 : i32
    %c1_i32 = arith.constant 1 : i32
    %198 = arith.select %197, %c1_i32, %c16_i32 : i32
    %199 = vector.broadcast %198 : i32 to vector<32x1xi32>
    %200 = arith.remsi %196, %199 : vector<32x1xi32>
    %c0_i32_67 = arith.constant 0 : i32
    %201 = vector.broadcast %c0_i32_67 : i32 to vector<32x1xi32>
    %202 = arith.cmpi ne, %200, %201 : vector<32x1xi32>
    %c0_i32_68 = arith.constant 0 : i32
    %203 = vector.broadcast %c0_i32_68 : i32 to vector<32x1xi32>
    %204 = arith.cmpi slt, %200, %203 : vector<32x1xi32>
    %c0_i32_69 = arith.constant 0 : i32
    %205 = arith.cmpi slt, %198, %c0_i32_69 : i32
    %206 = vector.broadcast %205 : i1 to vector<32x1xi1>
    %207 = vector.broadcast %206 : vector<32x1xi1> to vector<32x1xi1>
    %208 = arith.xori %204, %207 : vector<32x1xi1>
    %209 = arith.andi %208, %202 : vector<32x1xi1>
    %210 = vector.broadcast %198 : i32 to vector<32x1xi32>
    %211 = arith.addi %200, %210 : vector<32x1xi32>
    %212 = arith.select %209, %211, %200 : vector<32x1xi1>, vector<32x1xi32>
    %c0_70 = arith.constant 0 : index
    %c0_71 = arith.constant 0 : index
    %213 = vector.load %arg18[%c0_70, %c0_71] : memref<7x128xf32, #tpu.memory_space<vmem>>, vector<7x128xf32>
    %cst_72 = arith.constant 0.000000e+00 : f32
    %214 = vector.broadcast %cst_72 : f32 to vector<32x128xf32>
    %215 = vector.extract_strided_slice %213 {offsets = [0, 0], sizes = [1, 128], strides = [1, 1]} : vector<7x128xf32> to vector<1x128xf32>
    %c3_i32 = arith.constant 3 : i32
    %216 = tpu.dynamic_rotate %195 by %c3_i32 dim 0 : vector<32x128xf32>, i32 -> vector<32x128xf32>
    %c3_i32_73 = arith.constant 3 : i32
    %217 = vector.broadcast %c3_i32_73 : i32 to vector<32x1xi32>
    %218 = arith.cmpi sge, %212, %217 : vector<32x1xi32>
    %c16_i32_74 = arith.constant 16 : i32
    %219 = vector.broadcast %c16_i32_74 : i32 to vector<32x1xi32>
    %220 = arith.cmpi slt, %212, %219 : vector<32x1xi32>
    %221 = arith.andi %218, %220 : vector<32x1xi1>
    %222 = vector.broadcast %215 : vector<1x128xf32> to vector<32x128xf32>
    %223 = arith.mulf %216, %222 : vector<32x128xf32>
    %cst_75 = arith.constant 0.000000e+00 : f32
    %224 = vector.shape_cast %221 : vector<32x1xi1> to vector<32x1xi1>
    %225 = vector.broadcast %224 : vector<32x1xi1> to vector<32x128xi1>
    %226 = vector.broadcast %cst_75 : f32 to vector<32x128xf32>
    %227 = arith.select %225, %223, %226 : vector<32x128xi1>, vector<32x128xf32>
    %228 = arith.addf %214, %227 : vector<32x128xf32>
    %229 = vector.extract_strided_slice %213 {offsets = [1, 0], sizes = [1, 128], strides = [1, 1]} : vector<7x128xf32> to vector<1x128xf32>
    %c2_i32 = arith.constant 2 : i32
    %230 = tpu.dynamic_rotate %195 by %c2_i32 dim 0 : vector<32x128xf32>, i32 -> vector<32x128xf32>
    %c2_i32_76 = arith.constant 2 : i32
    %231 = vector.broadcast %c2_i32_76 : i32 to vector<32x1xi32>
    %232 = arith.cmpi sge, %212, %231 : vector<32x1xi32>
    %c16_i32_77 = arith.constant 16 : i32
    %233 = vector.broadcast %c16_i32_77 : i32 to vector<32x1xi32>
    %234 = arith.cmpi slt, %212, %233 : vector<32x1xi32>
    %235 = arith.andi %232, %234 : vector<32x1xi1>
    %236 = vector.broadcast %229 : vector<1x128xf32> to vector<32x128xf32>
    %237 = arith.mulf %230, %236 : vector<32x128xf32>
    %cst_78 = arith.constant 0.000000e+00 : f32
    %238 = vector.shape_cast %235 : vector<32x1xi1> to vector<32x1xi1>
    %239 = vector.broadcast %238 : vector<32x1xi1> to vector<32x128xi1>
    %240 = vector.broadcast %cst_78 : f32 to vector<32x128xf32>
    %241 = arith.select %239, %237, %240 : vector<32x128xi1>, vector<32x128xf32>
    %242 = arith.addf %228, %241 : vector<32x128xf32>
    %243 = vector.extract_strided_slice %213 {offsets = [2, 0], sizes = [1, 128], strides = [1, 1]} : vector<7x128xf32> to vector<1x128xf32>
    %c1_i32_79 = arith.constant 1 : i32
    %244 = tpu.dynamic_rotate %195 by %c1_i32_79 dim 0 : vector<32x128xf32>, i32 -> vector<32x128xf32>
    %c1_i32_80 = arith.constant 1 : i32
    %245 = vector.broadcast %c1_i32_80 : i32 to vector<32x1xi32>
    %246 = arith.cmpi sge, %212, %245 : vector<32x1xi32>
    %c16_i32_81 = arith.constant 16 : i32
    %247 = vector.broadcast %c16_i32_81 : i32 to vector<32x1xi32>
    %248 = arith.cmpi slt, %212, %247 : vector<32x1xi32>
    %249 = arith.andi %246, %248 : vector<32x1xi1>
    %250 = vector.broadcast %243 : vector<1x128xf32> to vector<32x128xf32>
    %251 = arith.mulf %244, %250 : vector<32x128xf32>
    %cst_82 = arith.constant 0.000000e+00 : f32
    %252 = vector.shape_cast %249 : vector<32x1xi1> to vector<32x1xi1>
    %253 = vector.broadcast %252 : vector<32x1xi1> to vector<32x128xi1>
    %254 = vector.broadcast %cst_82 : f32 to vector<32x128xf32>
    %255 = arith.select %253, %251, %254 : vector<32x128xi1>, vector<32x128xf32>
    %256 = arith.addf %242, %255 : vector<32x128xf32>
    %257 = vector.extract_strided_slice %213 {offsets = [3, 0], sizes = [1, 128], strides = [1, 1]} : vector<7x128xf32> to vector<1x128xf32>
    %258 = vector.broadcast %257 : vector<1x128xf32> to vector<32x128xf32>
    %259 = arith.mulf %195, %258 : vector<32x128xf32>
    %260 = arith.addf %256, %259 : vector<32x128xf32>
    %261 = vector.extract_strided_slice %213 {offsets = [4, 0], sizes = [1, 128], strides = [1, 1]} : vector<7x128xf32> to vector<1x128xf32>
    %c31_i32 = arith.constant 31 : i32
    %262 = tpu.dynamic_rotate %195 by %c31_i32 dim 0 : vector<32x128xf32>, i32 -> vector<32x128xf32>
    %c0_i32_83 = arith.constant 0 : i32
    %263 = vector.broadcast %c0_i32_83 : i32 to vector<32x1xi32>
    %264 = arith.cmpi sge, %212, %263 : vector<32x1xi32>
    %c15_i32 = arith.constant 15 : i32
    %265 = vector.broadcast %c15_i32 : i32 to vector<32x1xi32>
    %266 = arith.cmpi slt, %212, %265 : vector<32x1xi32>
    %267 = arith.andi %264, %266 : vector<32x1xi1>
    %268 = vector.broadcast %261 : vector<1x128xf32> to vector<32x128xf32>
    %269 = arith.mulf %262, %268 : vector<32x128xf32>
    %cst_84 = arith.constant 0.000000e+00 : f32
    %270 = vector.shape_cast %267 : vector<32x1xi1> to vector<32x1xi1>
    %271 = vector.broadcast %270 : vector<32x1xi1> to vector<32x128xi1>
    %272 = vector.broadcast %cst_84 : f32 to vector<32x128xf32>
    %273 = arith.select %271, %269, %272 : vector<32x128xi1>, vector<32x128xf32>
    %274 = arith.addf %260, %273 : vector<32x128xf32>
    %275 = vector.extract_strided_slice %213 {offsets = [5, 0], sizes = [1, 128], strides = [1, 1]} : vector<7x128xf32> to vector<1x128xf32>
    %c30_i32 = arith.constant 30 : i32
    %276 = tpu.dynamic_rotate %195 by %c30_i32 dim 0 : vector<32x128xf32>, i32 -> vector<32x128xf32>
    %c0_i32_85 = arith.constant 0 : i32
    %277 = vector.broadcast %c0_i32_85 : i32 to vector<32x1xi32>
    %278 = arith.cmpi sge, %212, %277 : vector<32x1xi32>
    %c14_i32 = arith.constant 14 : i32
    %279 = vector.broadcast %c14_i32 : i32 to vector<32x1xi32>
    %280 = arith.cmpi slt, %212, %279 : vector<32x1xi32>
    %281 = arith.andi %278, %280 : vector<32x1xi1>
    %282 = vector.broadcast %275 : vector<1x128xf32> to vector<32x128xf32>
    %283 = arith.mulf %276, %282 : vector<32x128xf32>
    %cst_86 = arith.constant 0.000000e+00 : f32
    %284 = vector.shape_cast %281 : vector<32x1xi1> to vector<32x1xi1>
    %285 = vector.broadcast %284 : vector<32x1xi1> to vector<32x128xi1>
    %286 = vector.broadcast %cst_86 : f32 to vector<32x128xf32>
    %287 = arith.select %285, %283, %286 : vector<32x128xi1>, vector<32x128xf32>
    %288 = arith.addf %274, %287 : vector<32x128xf32>
    %289 = vector.extract_strided_slice %213 {offsets = [6, 0], sizes = [1, 128], strides = [1, 1]} : vector<7x128xf32> to vector<1x128xf32>
    %c29_i32 = arith.constant 29 : i32
    %290 = tpu.dynamic_rotate %195 by %c29_i32 dim 0 : vector<32x128xf32>, i32 -> vector<32x128xf32>
    %c0_i32_87 = arith.constant 0 : i32
    %291 = vector.broadcast %c0_i32_87 : i32 to vector<32x1xi32>
    %292 = arith.cmpi sge, %212, %291 : vector<32x1xi32>
    %c13_i32 = arith.constant 13 : i32
    %293 = vector.broadcast %c13_i32 : i32 to vector<32x1xi32>
    %294 = arith.cmpi slt, %212, %293 : vector<32x1xi32>
    %295 = arith.andi %292, %294 : vector<32x1xi1>
    %296 = vector.broadcast %289 : vector<1x128xf32> to vector<32x128xf32>
    %297 = arith.mulf %290, %296 : vector<32x128xf32>
    %cst_88 = arith.constant 0.000000e+00 : f32
    %298 = vector.shape_cast %295 : vector<32x1xi1> to vector<32x1xi1>
    %299 = vector.broadcast %298 : vector<32x1xi1> to vector<32x128xi1>
    %300 = vector.broadcast %cst_88 : f32 to vector<32x128xf32>
    %301 = arith.select %299, %297, %300 : vector<32x128xi1>, vector<32x128xf32>
    %302 = arith.addf %288, %301 : vector<32x128xf32>
    %c0_89 = arith.constant 0 : index
    %c0_90 = arith.constant 0 : index
    %303 = vector.load %arg19[%c0_89, %c0_90] : memref<1x128xf32, #tpu.memory_space<vmem>>, vector<1x128xf32>
    %304 = vector.broadcast %303 : vector<1x128xf32> to vector<32x128xf32>
    %305 = arith.addf %302, %304 : vector<32x128xf32>
    %306 = vector.shape_cast %305 : vector<32x128xf32> to vector<2x16x128xf32>
    %307 = arith.truncf %306 : vector<2x16x128xf32> to vector<2x16x128xbf16>
    %c0_91 = arith.constant 0 : index
    %c0_92 = arith.constant 0 : index
    %c0_93 = arith.constant 0 : index
    %308 = vector.load %arg21[%c0_91, %c0_92, %c0_93] : memref<2x16x128xbf16, #tpu.memory_space<vmem>>, vector<2x16x128xbf16>
    tpu.vector_store %arg21[%c0_91, %c0_92, %c0_93], %307 {strides = array<i32>} : memref<2x16x128xbf16, #tpu.memory_space<vmem>>, vector<2x16x128xbf16>,
    %cst_94 = arith.constant dense<0.000000e+00> : vector<128xf32>
    %309 = vector.multi_reduction <add>, %305, %cst_94 [0] : vector<32x128xf32> to vector<128xf32>
    %310 = vector.shape_cast %309 : vector<128xf32> to vector<1x128xf32>
    %311 = vector.shape_cast %310 : vector<1x128xf32> to vector<1x1x128xf32>
    %c0_95 = arith.constant 0 : index
    %c0_96 = arith.constant 0 : index
    %c0_97 = arith.constant 0 : index
    %312 = vector.load %arg22[%c0_95, %c0_96, %c0_97] : memref<1x1x128xf32, #tpu.memory_space<vmem>>, vector<1x1x128xf32>
    tpu.vector_store %arg22[%c0_95, %c0_96, %c0_97], %311 {strides = array<i32>} : memref<1x1x128xf32, #tpu.memory_space<vmem>>, vector<1x1x128xf32>,
    %313 = arith.mulf %305, %305 : vector<32x128xf32>
    %cst_98 = arith.constant dense<0.000000e+00> : vector<128xf32>
    %314 = vector.multi_reduction <add>, %313, %cst_98 [0] : vector<32x128xf32> to vector<128xf32>
    %315 = vector.shape_cast %314 : vector<128xf32> to vector<1x128xf32>
    %316 = vector.shape_cast %315 : vector<1x128xf32> to vector<1x1x128xf32>
    %c0_99 = arith.constant 0 : index
    %c0_100 = arith.constant 0 : index
    %c0_101 = arith.constant 0 : index
    %317 = vector.load %arg23[%c0_99, %c0_100, %c0_101] : memref<1x1x128xf32, #tpu.memory_space<vmem>>, vector<1x1x128xf32>
    tpu.vector_store %arg23[%c0_99, %c0_100, %c0_101], %316 {strides = array<i32>} : memref<1x1x128xf32, #tpu.memory_space<vmem>>, vector<1x1x128xf32>,
    return
  }
  func.func @transform_0(%arg0: i32) -> (i32, i32, i32) {
    %c0_i32 = arith.constant 0 : i32
    %c0_i32_0 = arith.constant 0 : i32
    %c0_i32_1 = arith.constant 0 : i32
    return %arg0, %c0_i32, %c0_i32_0 : i32, i32, i32
  }
  func.func @transform_1(%arg0: i32) -> (i32, i32) {
    %c0_i32 = arith.constant 0 : i32
    %c0_i32_0 = arith.constant 0 : i32
    %c0_i32_1 = arith.constant 0 : i32
    return %c0_i32, %c0_i32_0 : i32, i32
  }
  func.func @transform_2(%arg0: i32) -> (i32, i32) {
    %c0_i32 = arith.constant 0 : i32
    %c0_i32_0 = arith.constant 0 : i32
    %c0_i32_1 = arith.constant 0 : i32
    return %c0_i32, %c0_i32_0 : i32, i32
  }
  func.func @transform_3(%arg0: i32) -> (i32, i32) {
    %c0_i32 = arith.constant 0 : i32
    %c0_i32_0 = arith.constant 0 : i32
    %c0_i32_1 = arith.constant 0 : i32
    return %c0_i32, %c0_i32_0 : i32, i32
  }
  func.func @transform_4(%arg0: i32) -> (i32, i32) {
    %c0_i32 = arith.constant 0 : i32
    %c0_i32_0 = arith.constant 0 : i32
    %c0_i32_1 = arith.constant 0 : i32
    return %c0_i32, %c0_i32_0 : i32, i32
  }
  func.func @transform_5(%arg0: i32) -> (i32, i32) {
    %c0_i32 = arith.constant 0 : i32
    %c0_i32_0 = arith.constant 0 : i32
    %c0_i32_1 = arith.constant 0 : i32
    return %c0_i32, %c0_i32_0 : i32, i32
  }
  func.func @transform_6(%arg0: i32) -> (i32, i32) {
    %c0_i32 = arith.constant 0 : i32
    %c0_i32_0 = arith.constant 0 : i32
    %c0_i32_1 = arith.constant 0 : i32
    return %c0_i32, %c0_i32_0 : i32, i32
  }
  func.func @transform_7(%arg0: i32) -> (i32, i32) {
    %c0_i32 = arith.constant 0 : i32
    %c0_i32_0 = arith.constant 0 : i32
    %c0_i32_1 = arith.constant 0 : i32
    return %c0_i32, %c0_i32_0 : i32, i32
  }
  func.func @transform_8(%arg0: i32) -> (i32, i32) {
    %c0_i32 = arith.constant 0 : i32
    %c0_i32_0 = arith.constant 0 : i32
    %c0_i32_1 = arith.constant 0 : i32
    return %c0_i32, %c0_i32_0 : i32, i32
  }
  func.func @transform_9(%arg0: i32) -> (i32, i32) {
    %c0_i32 = arith.constant 0 : i32
    %c0_i32_0 = arith.constant 0 : i32
    %c0_i32_1 = arith.constant 0 : i32
    return %c0_i32, %c0_i32_0 : i32, i32
  }
  func.func @transform_10(%arg0: i32) -> (i32, i32) {
    %c0_i32 = arith.constant 0 : i32
    %c0_i32_0 = arith.constant 0 : i32
    %c0_i32_1 = arith.constant 0 : i32
    return %c0_i32, %c0_i32_0 : i32, i32
  }
  func.func @transform_11(%arg0: i32) -> (i32, i32) {
    %c0_i32 = arith.constant 0 : i32
    %c0_i32_0 = arith.constant 0 : i32
    %c0_i32_1 = arith.constant 0 : i32
    return %c0_i32, %c0_i32_0 : i32, i32
  }
  func.func @transform_12(%arg0: i32) -> (i32, i32) {
    %c0_i32 = arith.constant 0 : i32
    %c0_i32_0 = arith.constant 0 : i32
    %c0_i32_1 = arith.constant 0 : i32
    return %c0_i32, %c0_i32_0 : i32, i32
  }
  func.func @transform_13(%arg0: i32) -> (i32, i32) {
    %c0_i32 = arith.constant 0 : i32
    %c0_i32_0 = arith.constant 0 : i32
    %c0_i32_1 = arith.constant 0 : i32
    return %c0_i32, %c0_i32_0 : i32, i32
  }
  func.func @transform_14(%arg0: i32) -> (i32, i32) {
    %c0_i32 = arith.constant 0 : i32
    %c0_i32_0 = arith.constant 0 : i32
    %c0_i32_1 = arith.constant 0 : i32
    return %c0_i32, %c0_i32_0 : i32, i32
  }
  func.func @transform_15(%arg0: i32) -> (i32, i32) {
    %c0_i32 = arith.constant 0 : i32
    %c0_i32_0 = arith.constant 0 : i32
    %c0_i32_1 = arith.constant 0 : i32
    return %c0_i32, %c0_i32_0 : i32, i32
  }
  func.func @transform_16(%arg0: i32) -> (i32, i32) {
    %c0_i32 = arith.constant 0 : i32
    %c0_i32_0 = arith.constant 0 : i32
    %c0_i32_1 = arith.constant 0 : i32
    return %c0_i32, %c0_i32_0 : i32, i32
  }
  func.func @transform_17(%arg0: i32) -> (i32, i32) {
    %c0_i32 = arith.constant 0 : i32
    %c0_i32_0 = arith.constant 0 : i32
    %c0_i32_1 = arith.constant 0 : i32
    return %c0_i32, %c0_i32_0 : i32, i32
  }
  func.func @transform_18(%arg0: i32) -> (i32, i32) {
    %c0_i32 = arith.constant 0 : i32
    %c0_i32_0 = arith.constant 0 : i32
    %c0_i32_1 = arith.constant 0 : i32
    return %c0_i32, %c0_i32_0 : i32, i32
  }
  func.func @transform_19(%arg0: i32) -> (i32, i32, i32) {
    %c0_i32 = arith.constant 0 : i32
    %c0_i32_0 = arith.constant 0 : i32
    %c0_i32_1 = arith.constant 0 : i32
    return %arg0, %c0_i32, %c0_i32_0 : i32, i32, i32
  }
  func.func @transform_20(%arg0: i32) -> (i32, i32, i32) {
    %c0_i32 = arith.constant 0 : i32
    %c0_i32_0 = arith.constant 0 : i32
    %c0_i32_1 = arith.constant 0 : i32
    return %arg0, %c0_i32, %c0_i32_0 : i32, i32, i32
  }
  func.func @transform_21(%arg0: i32) -> (i32, i32, i32) {
    %c0_i32 = arith.constant 0 : i32
    %c0_i32_0 = arith.constant 0 : i32
    %c0_i32_1 = arith.constant 0 : i32
    return %arg0, %c0_i32, %c0_i32_0 : i32, i32, i32
  }
  func.func @transform_22(%arg0: i32) -> (i32, i32, i32) {
    %c0_i32 = arith.constant 0 : i32
    %c0_i32_0 = arith.constant 0 : i32
    %c0_i32_1 = arith.constant 0 : i32
    return %arg0, %c0_i32, %c0_i32_0 : i32, i32, i32
  }
}

module attributes {stable_mosaic.version = 11 : i64} {
  func.func @conformer_part2_kernel(%arg0: i32, %arg1: memref<2x16x128xf32, #tpu.memory_space<vmem>>, %arg2: memref<2x16x128xbf16, #tpu.memory_space<vmem>>, %arg3: memref<1x128xf32, #tpu.memory_space<vmem>>, %arg4: memref<1x128xf32, #tpu.memory_space<vmem>>, %arg5: memref<128x128xbf16, #tpu.memory_space<vmem>>, %arg6: memref<1x128xf32, #tpu.memory_space<vmem>>, %arg7: memref<1x128xf32, #tpu.memory_space<vmem>>, %arg8: memref<1x128xf32, #tpu.memory_space<vmem>>, %arg9: memref<128x256xbf16, #tpu.memory_space<vmem>>, %arg10: memref<1x256xf32, #tpu.memory_space<vmem>>, %arg11: memref<256x128xbf16, #tpu.memory_space<vmem>>, %arg12: memref<1x128xf32, #tpu.memory_space<vmem>>, %arg13: memref<1x128xf32, #tpu.memory_space<vmem>>, %arg14: memref<1x128xf32, #tpu.memory_space<vmem>>, %arg15: memref<2x16x128xf32, #tpu.memory_space<vmem>>) attributes {dimension_semantics = [#tpu.dimension_semantics<parallel>], iteration_bounds = array<i64: 2>, scalar_prefetch = 0 : i64, scratch_operands = 0 : i64, tpu.core_type = #tpu.core_type<tc>, window_params = [{transform_indices = @transform_0, window_bounds = array<i64: 2, 16, 128>}, {transform_indices = @transform_1, window_bounds = array<i64: 2, 16, 128>}, {pipeline_mode = #tpu.pipeline_mode<synchronous>, transform_indices = @transform_2, window_bounds = array<i64: 1, 128>}, {pipeline_mode = #tpu.pipeline_mode<synchronous>, transform_indices = @transform_3, window_bounds = array<i64: 1, 128>}, {pipeline_mode = #tpu.pipeline_mode<synchronous>, transform_indices = @transform_4, window_bounds = array<i64: 128, 128>}, {pipeline_mode = #tpu.pipeline_mode<synchronous>, transform_indices = @transform_5, window_bounds = array<i64: 1, 128>}, {pipeline_mode = #tpu.pipeline_mode<synchronous>, transform_indices = @transform_6, window_bounds = array<i64: 1, 128>}, {pipeline_mode = #tpu.pipeline_mode<synchronous>, transform_indices = @transform_7, window_bounds = array<i64: 1, 128>}, {pipeline_mode = #tpu.pipeline_mode<synchronous>, transform_indices = @transform_8, window_bounds = array<i64: 128, 256>}, {pipeline_mode = #tpu.pipeline_mode<synchronous>, transform_indices = @transform_9, window_bounds = array<i64: 1, 256>}, {pipeline_mode = #tpu.pipeline_mode<synchronous>, transform_indices = @transform_10, window_bounds = array<i64: 256, 128>}, {pipeline_mode = #tpu.pipeline_mode<synchronous>, transform_indices = @transform_11, window_bounds = array<i64: 1, 128>}, {pipeline_mode = #tpu.pipeline_mode<synchronous>, transform_indices = @transform_12, window_bounds = array<i64: 1, 128>}, {pipeline_mode = #tpu.pipeline_mode<synchronous>, transform_indices = @transform_13, window_bounds = array<i64: 1, 128>}, {transform_indices = @transform_14, window_bounds = array<i64: 2, 16, 128>}]} {
    %c0 = arith.constant 0 : index
    %c0_0 = arith.constant 0 : index
    %c0_1 = arith.constant 0 : index
    %0 = vector.load %arg1[%c0, %c0_0, %c0_1] : memref<2x16x128xf32, #tpu.memory_space<vmem>>, vector<2x16x128xf32>
    %1 = vector.shape_cast %0 : vector<2x16x128xf32> to vector<32x128xf32>
    %c0_2 = arith.constant 0 : index
    %c0_3 = arith.constant 0 : index
    %c0_4 = arith.constant 0 : index
    %2 = vector.load %arg2[%c0_2, %c0_3, %c0_4] : memref<2x16x128xbf16, #tpu.memory_space<vmem>>, vector<2x16x128xbf16>
    %3 = arith.extf %2 : vector<2x16x128xbf16> to vector<2x16x128xf32>
    %4 = vector.shape_cast %3 : vector<2x16x128xf32> to vector<32x128xf32>
    %c0_5 = arith.constant 0 : index
    %c0_6 = arith.constant 0 : index
    %5 = vector.load %arg3[%c0_5, %c0_6] : memref<1x128xf32, #tpu.memory_space<vmem>>, vector<1x128xf32>
    %6 = vector.broadcast %5 : vector<1x128xf32> to vector<32x128xf32>
    %7 = arith.mulf %4, %6 : vector<32x128xf32>
    %c0_7 = arith.constant 0 : index
    %c0_8 = arith.constant 0 : index
    %8 = vector.load %arg4[%c0_7, %c0_8] : memref<1x128xf32, #tpu.memory_space<vmem>>, vector<1x128xf32>
    %9 = vector.broadcast %8 : vector<1x128xf32> to vector<32x128xf32>
    %10 = arith.addf %7, %9 : vector<32x128xf32>
    %11 = arith.negf %10 : vector<32x128xf32>
    %12 = math.exp %11 : vector<32x128xf32>
    %cst = arith.constant 1.000000e+00 : f32
    %13 = vector.broadcast %cst : f32 to vector<32x128xf32>
    %14 = arith.addf %13, %12 : vector<32x128xf32>
    %15 = arith.divf %13, %14 : vector<32x128xf32>
    %16 = arith.mulf %10, %15 : vector<32x128xf32>
    %c0_9 = arith.constant 0 : index
    %c0_10 = arith.constant 0 : index
    %17 = vector.load %arg5[%c0_9, %c0_10] : memref<128x128xbf16, #tpu.memory_space<vmem>>, vector<128x128xbf16>
    %c0_11 = arith.constant 0 : index
    %c0_12 = arith.constant 0 : index
    %18 = vector.load %arg6[%c0_11, %c0_12] : memref<1x128xf32, #tpu.memory_space<vmem>>, vector<1x128xf32>
    %19 = arith.truncf %16 : vector<32x128xf32> to vector<32x128xbf16>
    %cst_13 = arith.constant dense<0.000000e+00> : vector<32x128xf32>
    %20 = tpu.matmul %19, %17, %cst_13 {dimension_numbers = #tpu.dot_dimension_numbers<[1], [0], [0], [1], [0, 0, 1, 1], [], []>} : vector<32x128xbf16>, vector<128x128xbf16>, vector<32x128xf32> -> vector<32x128xf32>
    %21 = vector.broadcast %18 : vector<1x128xf32> to vector<32x128xf32>
    %22 = arith.addf %20, %21 : vector<32x128xf32>
    %23 = arith.addf %1, %22 : vector<32x128xf32>
    %c0_14 = arith.constant 0 : index
    %c0_15 = arith.constant 0 : index
    %24 = vector.load %arg7[%c0_14, %c0_15] : memref<1x128xf32, #tpu.memory_space<vmem>>, vector<1x128xf32>
    %c0_16 = arith.constant 0 : index
    %c0_17 = arith.constant 0 : index
    %25 = vector.load %arg8[%c0_16, %c0_17] : memref<1x128xf32, #tpu.memory_space<vmem>>, vector<1x128xf32>
    %cst_18 = arith.constant dense<0.000000e+00> : vector<32xf32>
    %26 = vector.multi_reduction <add>, %23, %cst_18 [1] : vector<32x128xf32> to vector<32xf32>
    %27 = vector.shape_cast %26 : vector<32xf32> to vector<32x1xf32>
    %cst_19 = arith.constant 1.280000e+02 : f32
    %28 = vector.broadcast %cst_19 : f32 to vector<32x1xf32>
    %29 = arith.divf %27, %28 : vector<32x1xf32>
    %30 = vector.broadcast %29 : vector<32x1xf32> to vector<32x128xf32>
    %31 = arith.subf %23, %30 : vector<32x128xf32>
    %32 = arith.mulf %31, %31 : vector<32x128xf32>
    %cst_20 = arith.constant dense<0.000000e+00> : vector<32xf32>
    %33 = vector.multi_reduction <add>, %32, %cst_20 [1] : vector<32x128xf32> to vector<32xf32>
    %34 = vector.shape_cast %33 : vector<32xf32> to vector<32x1xf32>
    %cst_21 = arith.constant 1.280000e+02 : f32
    %35 = vector.broadcast %cst_21 : f32 to vector<32x1xf32>
    %36 = arith.divf %34, %35 : vector<32x1xf32>
    %37 = vector.broadcast %29 : vector<32x1xf32> to vector<32x128xf32>
    %38 = arith.subf %23, %37 : vector<32x128xf32>
    %cst_22 = arith.constant 9.99999974E-6 : f32
    %39 = vector.broadcast %cst_22 : f32 to vector<32x1xf32>
    %40 = arith.addf %36, %39 : vector<32x1xf32>
    %41 = math.rsqrt %40 : vector<32x1xf32>
    %42 = vector.broadcast %41 : vector<32x1xf32> to vector<32x128xf32>
    %43 = arith.mulf %38, %42 : vector<32x128xf32>
    %44 = vector.broadcast %24 : vector<1x128xf32> to vector<32x128xf32>
    %45 = arith.mulf %43, %44 : vector<32x128xf32>
    %46 = vector.broadcast %25 : vector<1x128xf32> to vector<32x128xf32>
    %47 = arith.addf %45, %46 : vector<32x128xf32>
    %c0_23 = arith.constant 0 : index
    %c0_24 = arith.constant 0 : index
    %48 = vector.load %arg9[%c0_23, %c0_24] : memref<128x256xbf16, #tpu.memory_space<vmem>>, vector<128x256xbf16>
    %c0_25 = arith.constant 0 : index
    %c0_26 = arith.constant 0 : index
    %49 = vector.load %arg10[%c0_25, %c0_26] : memref<1x256xf32, #tpu.memory_space<vmem>>, vector<1x256xf32>
    %50 = arith.truncf %47 : vector<32x128xf32> to vector<32x128xbf16>
    %cst_27 = arith.constant dense<0.000000e+00> : vector<32x256xf32>
    %51 = tpu.matmul %50, %48, %cst_27 {dimension_numbers = #tpu.dot_dimension_numbers<[1], [0], [0], [1], [0, 0, 1, 1], [], []>} : vector<32x128xbf16>, vector<128x256xbf16>, vector<32x256xf32> -> vector<32x256xf32>
    %52 = vector.broadcast %49 : vector<1x256xf32> to vector<32x256xf32>
    %53 = arith.addf %51, %52 : vector<32x256xf32>
    %54 = arith.negf %53 : vector<32x256xf32>
    %55 = math.exp %54 : vector<32x256xf32>
    %cst_28 = arith.constant 1.000000e+00 : f32
    %56 = vector.broadcast %cst_28 : f32 to vector<32x256xf32>
    %57 = arith.addf %56, %55 : vector<32x256xf32>
    %58 = arith.divf %56, %57 : vector<32x256xf32>
    %59 = arith.mulf %53, %58 : vector<32x256xf32>
    %c0_29 = arith.constant 0 : index
    %c0_30 = arith.constant 0 : index
    %60 = vector.load %arg11[%c0_29, %c0_30] : memref<256x128xbf16, #tpu.memory_space<vmem>>, vector<256x128xbf16>
    %c0_31 = arith.constant 0 : index
    %c0_32 = arith.constant 0 : index
    %61 = vector.load %arg12[%c0_31, %c0_32] : memref<1x128xf32, #tpu.memory_space<vmem>>, vector<1x128xf32>
    %62 = arith.truncf %59 : vector<32x256xf32> to vector<32x256xbf16>
    %cst_33 = arith.constant dense<0.000000e+00> : vector<32x128xf32>
    %63 = tpu.matmul %62, %60, %cst_33 {dimension_numbers = #tpu.dot_dimension_numbers<[1], [0], [0], [1], [0, 0, 1, 1], [], []>} : vector<32x256xbf16>, vector<256x128xbf16>, vector<32x128xf32> -> vector<32x128xf32>
    %64 = vector.broadcast %61 : vector<1x128xf32> to vector<32x128xf32>
    %65 = arith.addf %63, %64 : vector<32x128xf32>
    %cst_34 = arith.constant 5.000000e-01 : f32
    %66 = vector.broadcast %cst_34 : f32 to vector<32x128xf32>
    %67 = arith.mulf %66, %65 : vector<32x128xf32>
    %68 = arith.addf %23, %67 : vector<32x128xf32>
    %c0_35 = arith.constant 0 : index
    %c0_36 = arith.constant 0 : index
    %69 = vector.load %arg13[%c0_35, %c0_36] : memref<1x128xf32, #tpu.memory_space<vmem>>, vector<1x128xf32>
    %c0_37 = arith.constant 0 : index
    %c0_38 = arith.constant 0 : index
    %70 = vector.load %arg14[%c0_37, %c0_38] : memref<1x128xf32, #tpu.memory_space<vmem>>, vector<1x128xf32>
    %cst_39 = arith.constant dense<0.000000e+00> : vector<32xf32>
    %71 = vector.multi_reduction <add>, %68, %cst_39 [1] : vector<32x128xf32> to vector<32xf32>
    %72 = vector.shape_cast %71 : vector<32xf32> to vector<32x1xf32>
    %cst_40 = arith.constant 1.280000e+02 : f32
    %73 = vector.broadcast %cst_40 : f32 to vector<32x1xf32>
    %74 = arith.divf %72, %73 : vector<32x1xf32>
    %75 = vector.broadcast %74 : vector<32x1xf32> to vector<32x128xf32>
    %76 = arith.subf %68, %75 : vector<32x128xf32>
    %77 = arith.mulf %76, %76 : vector<32x128xf32>
    %cst_41 = arith.constant dense<0.000000e+00> : vector<32xf32>
    %78 = vector.multi_reduction <add>, %77, %cst_41 [1] : vector<32x128xf32> to vector<32xf32>
    %79 = vector.shape_cast %78 : vector<32xf32> to vector<32x1xf32>
    %cst_42 = arith.constant 1.280000e+02 : f32
    %80 = vector.broadcast %cst_42 : f32 to vector<32x1xf32>
    %81 = arith.divf %79, %80 : vector<32x1xf32>
    %82 = vector.broadcast %74 : vector<32x1xf32> to vector<32x128xf32>
    %83 = arith.subf %68, %82 : vector<32x128xf32>
    %cst_43 = arith.constant 9.99999974E-6 : f32
    %84 = vector.broadcast %cst_43 : f32 to vector<32x1xf32>
    %85 = arith.addf %81, %84 : vector<32x1xf32>
    %86 = math.rsqrt %85 : vector<32x1xf32>
    %87 = vector.broadcast %86 : vector<32x1xf32> to vector<32x128xf32>
    %88 = arith.mulf %83, %87 : vector<32x128xf32>
    %89 = vector.broadcast %69 : vector<1x128xf32> to vector<32x128xf32>
    %90 = arith.mulf %88, %89 : vector<32x128xf32>
    %91 = vector.broadcast %70 : vector<1x128xf32> to vector<32x128xf32>
    %92 = arith.addf %90, %91 : vector<32x128xf32>
    %93 = vector.shape_cast %92 : vector<32x128xf32> to vector<2x16x128xf32>
    %c0_44 = arith.constant 0 : index
    %c0_45 = arith.constant 0 : index
    %c0_46 = arith.constant 0 : index
    %94 = vector.load %arg15[%c0_44, %c0_45, %c0_46] : memref<2x16x128xf32, #tpu.memory_space<vmem>>, vector<2x16x128xf32>
    tpu.vector_store %arg15[%c0_44, %c0_45, %c0_46], %93 {strides = array<i32>} : memref<2x16x128xf32, #tpu.memory_space<vmem>>, vector<2x16x128xf32>,
    return
  }
  func.func @transform_0(%arg0: i32) -> (i32, i32, i32) {
    %c0_i32 = arith.constant 0 : i32
    %c0_i32_0 = arith.constant 0 : i32
    %c0_i32_1 = arith.constant 0 : i32
    return %arg0, %c0_i32, %c0_i32_0 : i32, i32, i32
  }
  func.func @transform_1(%arg0: i32) -> (i32, i32, i32) {
    %c0_i32 = arith.constant 0 : i32
    %c0_i32_0 = arith.constant 0 : i32
    %c0_i32_1 = arith.constant 0 : i32
    return %arg0, %c0_i32, %c0_i32_0 : i32, i32, i32
  }
  func.func @transform_2(%arg0: i32) -> (i32, i32) {
    %c0_i32 = arith.constant 0 : i32
    %c0_i32_0 = arith.constant 0 : i32
    %c0_i32_1 = arith.constant 0 : i32
    return %c0_i32, %c0_i32_0 : i32, i32
  }
  func.func @transform_3(%arg0: i32) -> (i32, i32) {
    %c0_i32 = arith.constant 0 : i32
    %c0_i32_0 = arith.constant 0 : i32
    %c0_i32_1 = arith.constant 0 : i32
    return %c0_i32, %c0_i32_0 : i32, i32
  }
  func.func @transform_4(%arg0: i32) -> (i32, i32) {
    %c0_i32 = arith.constant 0 : i32
    %c0_i32_0 = arith.constant 0 : i32
    %c0_i32_1 = arith.constant 0 : i32
    return %c0_i32, %c0_i32_0 : i32, i32
  }
  func.func @transform_5(%arg0: i32) -> (i32, i32) {
    %c0_i32 = arith.constant 0 : i32
    %c0_i32_0 = arith.constant 0 : i32
    %c0_i32_1 = arith.constant 0 : i32
    return %c0_i32, %c0_i32_0 : i32, i32
  }
  func.func @transform_6(%arg0: i32) -> (i32, i32) {
    %c0_i32 = arith.constant 0 : i32
    %c0_i32_0 = arith.constant 0 : i32
    %c0_i32_1 = arith.constant 0 : i32
    return %c0_i32, %c0_i32_0 : i32, i32
  }
  func.func @transform_7(%arg0: i32) -> (i32, i32) {
    %c0_i32 = arith.constant 0 : i32
    %c0_i32_0 = arith.constant 0 : i32
    %c0_i32_1 = arith.constant 0 : i32
    return %c0_i32, %c0_i32_0 : i32, i32
  }
  func.func @transform_8(%arg0: i32) -> (i32, i32) {
    %c0_i32 = arith.constant 0 : i32
    %c0_i32_0 = arith.constant 0 : i32
    %c0_i32_1 = arith.constant 0 : i32
    return %c0_i32, %c0_i32_0 : i32, i32
  }
  func.func @transform_9(%arg0: i32) -> (i32, i32) {
    %c0_i32 = arith.constant 0 : i32
    %c0_i32_0 = arith.constant 0 : i32
    %c0_i32_1 = arith.constant 0 : i32
    return %c0_i32, %c0_i32_0 : i32, i32
  }
  func.func @transform_10(%arg0: i32) -> (i32, i32) {
    %c0_i32 = arith.constant 0 : i32
    %c0_i32_0 = arith.constant 0 : i32
    %c0_i32_1 = arith.constant 0 : i32
    return %c0_i32, %c0_i32_0 : i32, i32
  }
  func.func @transform_11(%arg0: i32) -> (i32, i32) {
    %c0_i32 = arith.constant 0 : i32
    %c0_i32_0 = arith.constant 0 : i32
    %c0_i32_1 = arith.constant 0 : i32
    return %c0_i32, %c0_i32_0 : i32, i32
  }
  func.func @transform_12(%arg0: i32) -> (i32, i32) {
    %c0_i32 = arith.constant 0 : i32
    %c0_i32_0 = arith.constant 0 : i32
    %c0_i32_1 = arith.constant 0 : i32
    return %c0_i32, %c0_i32_0 : i32, i32
  }
  func.func @transform_13(%arg0: i32) -> (i32, i32) {
    %c0_i32 = arith.constant 0 : i32
    %c0_i32_0 = arith.constant 0 : i32
    %c0_i32_1 = arith.constant 0 : i32
    return %c0_i32, %c0_i32_0 : i32, i32
  }
  func.func @transform_14(%arg0: i32) -> (i32, i32, i32) {
    %c0_i32 = arith.constant 0 : i32
    %c0_i32_0 = arith.constant 0 : i32
    %c0_i32_1 = arith.constant 0 : i32
    return %arg0, %c0_i32, %c0_i32_0 : i32, i32, i32
  }
}

</mosaic_0001>

<bundles_post_ra>
// kernel: conformer_layer.3
= control target key start
LH: loop header
LB: loop body
LE: loop exit
PB: predicated region body
PF: predicated region fallthrough
CT: control target
= control target key end

     0   :  { %s1679_s29 = smov 0   ;;  %s1884_s0 = inlined_call_operand.vmem [shape: f32[4,16,128], index: 0, kind: input, shape index: {}]   ;;  %s1885_s1 = inlined_call_operand.vmem [shape: bf16[4,16,128], index: 1, kind: input, shape index: {}]   ;;  %s1886_s2 = inlined_call_operand.vmem [shape: f32[1,128], index: 2, kind: input, shape index: {}]   ;;  %s1887_s3 = inlined_call_operand.vmem [shape: f32[1,128], index: 3, kind: input, shape index: {}]   ;;  %s1888_s4 = inlined_call_operand.vmem [shape: bf16[128,128], index: 4, kind: input, shape index: {}]   ;;  %s1889_s5 = inlined_call_operand.vmem [shape: f32[1,128], index: 5, kind: input, shape index: {}]   ;;  %s1890_s6 = inlined_call_operand.vmem [shape: f32[1,128], index: 6, kind: input, shape index: {}]   ;;  %s1891_s7 = inlined_call_operand.vmem [shape: f32[1,128], index: 7, kind: input, shape index: {}]   ;;  %s1892_s8 = inlined_call_operand.vmem [shape: bf16[128,256], index: 8, kind: input, shape index: {}]   ;;  %s1893_s9 = inlined_call_operand.vmem [shape: f32[1,256], index: 9, kind: input, shape index: {}]   ;;  %s1894_s10 = inlined_call_operand.vmem [shape: bf16[256,128], index: 10, kind: input, shape index: {}]   ;;  %s1895_s11 = inlined_call_operand.vmem [shape: f32[1,128], index: 11, kind: input, shape index: {}]   ;;  %s1896_s12 = inlined_call_operand.vmem [shape: f32[1,128], index: 12, kind: input, shape index: {}]   ;;  %s1897_s13 = inlined_call_operand.vmem [shape: f32[1,128], index: 13, kind: input, shape index: {}]   ;;  %s1898_s14 = inlined_call_operand.vmem [shape: f32[4,16,128], index: 14, kind: output, shape index: {}]  }
   0x1 LB: > { %s1312_s30 = sadd.s32 4294967295, %s1601_s29   ;;  %p1316_p0 = scmp.ge.s32.totalorder %s1601_s29, 1  ;;  %s1601_s29 = sphi %s1679_s29, %s24_s29  }
   0x2   : > { %p426_p1 = scmp.lt.s32.totalorder %s1601_s29, 3 }
   0x4   : > { %p427_p2 = pnand %p1316_p0, %p426_p1 }
   0x5   : > { %v1483_v0 = vld [vmem:[%s1888_s4] sm:$0xff] (!%p427_p2)   ;;  %s1317_s17 = sshll.u32 (!%p427_p2), %s1312_s30, 1  ;;  %v1484_v1 = vld [vmem:[%s1888_s4 + $0x8] sm:$0xff] (!%p427_p2)   ;;  %v1485_v2 = vld [vmem:[%s1888_s4 + $0x10] sm:$0xff] (!%p427_p2)  }
   0x6   : > { %430 = sbr.rel (%p427_p2) target bundleno = 1381 (0x565), region = 76  ;;  %p481_p3 = scmp.lt.s32.totalorder (!%p427_p2), %s1317_s17, 3  ;;  %1438 = vmatprep.subr.bf16.mxu0 (!%p427_p2), %v1483_v0  ;;  %v1486_v3 = vld [vmem:[%s1888_s4 + $0x18] sm:$0xff] (!%p427_p2)   ;;  %v1326_v6 = vld [vmem:[%s1886_s2] ss:$0 sm:$0xff] (!%p427_p2)  ;;  %v1488_v21 = vld [vmem:[%s1888_s4 + $0x28] sm:$0xff] (!%p427_p2)  }
   0x7   : > { %1439 = vmatpush3.bf16.msra.mxu0 (!%p427_p2), %v1483_v0  ;;  %v1327_v9 = vld [vmem:[%s1887_s3] ss:$0 sm:$0xff] (!%p427_p2)  ;;  %v1489_v26 = vld [vmem:[%s1888_s4 + $0x30] sm:$0xff] (!%p427_p2)   ;;  %v1490_v27 = vld [vmem:[%s1888_s4 + $0x38] sm:$0xff] (!%p427_p2)  }
   0x8   : > { %1440 = vmatprep.subr.bf16.mxu0 (!%p427_p2), %v1484_v1  ;;  %v1487_v12 = vld [vmem:[%s1888_s4 + $0x20] sm:$0xff] (!%p427_p2)  }
   0x9   : > { %v1332_v46 = vld [vmem:[%s1889_s5] ss:$0 sm:$0xff] (!%p427_p2)  ;;  %v1491_v63 = vld [vmem:[%s1892_s8 + $0x4] ss:$8 sps:$4 sm:$0xff] (!%p427_p2)  }
   0xa   : > { %v1493_v0 = vld [vmem:[%s1892_s8] ss:$8 sps:$4 sm:$0xff] (!%p427_p2)   ;;  %867 = vmatprep.subr.bf16.mxu1 (!%p427_p2), %v1491_v63 }
   0xb   : > { %1441 = vmatpush3.bf16.msra.mxu0 (!%p427_p2), %v1484_v1  ;;  %v1494_v1 = vld [vmem:[%s1892_s8 + $0x14] ss:$8 sps:$4 sm:$0xff] (!%p427_p2)   ;;  %868 = vmatpush1.bf16.msra.mxu1 (!%p427_p2), %v1493_v0 }
   0xc   : > { %1442 = vmatprep.subr.bf16.mxu0 (!%p427_p2), %v1485_v2  ;;  %869 = vmatprep.subr.bf16.mxu1 (!%p427_p2), %v1494_v1 }
   0xd   : > { %s1900_s17 = smov (!%p481_p3, %s1317_s17), 3 }
   0xe   : > { %s1389_s22 = sshll.u32 %s1900_s17, 3  ;;  %s1388_s26 = sshll.u32 %s1900_s17, 4 }
   0xf   : > { %s492_s25 = scalar_lea.vmem %s1885_s1, %s1389_s22  ;;  %1443 = vmatpush3.bf16.msra.mxu0 %v1485_v2  ;;  %s485_s30 = scalar_lea.vmem %s1884_s0, %s1388_s26 }
  0x10   : > { %v1392_v4 = vld [vmem:[%s492_s25] sm:$0xff]   ;;  %v1399_v5 = vld [vmem:[%s492_s25 + $0x8] sm:$0xff]   ;;  %1444 = vmatprep.subr.bf16.mxu0 %v1486_v3  ;;  %v504_v47 = vld [vmem:[%s485_s30 + $0x10] sm:$0xff]  ;;  %s499_s18 = scalar_lea.vmem %s1898_s14, %s1388_s26 }
  0x11   : > { %v1393_v7 = vunpack.c.l.bf16 %v1392_v4  ;;  %v1394_v8 = vunpack.c.h.bf16 %v1392_v4  ;;  %v1397_v10 = vunpack.c.l.bf16 %v1399_v5  ;;  %v1398_v11 = vunpack.c.h.bf16 %v1399_v5  ;;  %v502_v50 = vld [vmem:[%s485_s30] sm:$0xff]  ;;  %v505_v53 = vld [vmem:[%s485_s30 + $0x18] sm:$0xff]  ;;  %v503_v57 = vld [vmem:[%s485_s30 + $0x8] sm:$0xff] }
  0x13   : > { %v521_v13 = vmul.f32 %v1393_v7, %v1326_v6  ;;  %v522_v14 = vmul.f32 %v1394_v8, %v1326_v6  ;;  %v523_v15 = vmul.f32 %v1397_v10, %v1326_v6  ;;  %v524_v16 = vmul.f32 %v1398_v11, %v1326_v6  ;;  %1445 = vmatpush3.bf16.msra.mxu0 %v1486_v3 }
  0x14   : > { %1446 = vmatprep.subr.bf16.mxu0 %v1487_v12 }
  0x15   : > { %v532_v17 = vadd.f32 %v1327_v9, %v521_v13  ;;  %v533_v18 = vadd.f32 %v1327_v9, %v522_v14  ;;  %v534_v19 = vadd.f32 %v1327_v9, %v523_v15  ;;  %v535_v20 = vadd.f32 %v1327_v9, %v524_v16 }
  0x17   : > { %v1328_v22 = vmul.f32 -1.442695, %v532_v17  ;;  %v1329_v23 = vmul.f32 -1.442695, %v533_v18  ;;  %v1330_v24 = vmul.f32 -1.442695, %v534_v19  ;;  %1447 = vmatpush3.bf16.msra.mxu0 %v1487_v12 }
  0x18   : > { %v1331_v25 = vmul.f32 -1.442695, %v535_v20  ;;  %1448 = vmatprep.subr.bf16.mxu0 %v1488_v21 }
  0x19   : > { %1531 = vpow2.f32 %v1328_v22  ;;  %v1502_v22 = vld [vmem:[%s1892_s8 + $0x30] ss:$8 sps:$4 sm:$0xff]  }
  0x1a   : > { %1533 = vpow2.f32 %v1329_v23  ;;  %v1503_v23 = vld [vmem:[%s1892_s8 + $0x44] ss:$8 sps:$4 sm:$0xff]  }
  0x1b   : > { %1535 = vpow2.f32 %v1330_v24  ;;  %1449 = vmatpush3.bf16.msra.mxu0 %v1488_v21  ;;  %v1500_v21 = vld [vmem:[%s1892_s8 + $0x34] ss:$8 sps:$4 sm:$0xff]   ;;  %v1505_v24 = vld [vmem:[%s1892_s8 + $0x40] ss:$8 sps:$4 sm:$0xff]  }
  0x1c   : > { %1537 = vpow2.f32 %v1331_v25  ;;  %1450 = vmatprep.subr.bf16.mxu0 %v1489_v26  ;;  %v1506_v25 = vld [vmem:[%s1892_s8 + $0x54] ss:$8 sps:$4 sm:$0xff]  }
  0x1f   : > { %1451 = vmatpush3.bf16.msra.mxu0 %v1489_v26  ;;  %v1508_v26 = vld [vmem:[%s1892_s8 + $0x50] ss:$8 sps:$4 sm:$0xff]  }
  0x20   : > { %1452 = vmatprep.subr.bf16.mxu0 %v1490_v27 }
  0x23   : > { %v1532_v28 = vpop.eup %1531  ;;  %1453 = vmatpush3.bf16.msra.mxu0 %v1490_v27  ;;  %v1509_v27 = vld [vmem:[%s1892_s8 + $0x64] ss:$8 sps:$4 sm:$0xff]  }
  0x24   : > { %v1534_v29 = vpop.eup %1533  ;;  %v548_v30 = vadd.f32 1.0, %v1532_v28  ;;  %v1603_v28 = vmov 0  }
  0x25   : > { %v1536_v31 = vpop.eup %1535  ;;  %v549_v32 = vadd.f32 1.0, %v1534_v29  ;;  %899 = vmatprep.mubr.bf16.mxu1 %v1603_v28  ;;  %v1511_v29 = vld [vmem:[%s1892_s8 + $0x60] ss:$8 sps:$4 sm:$0xff]  }
  0x26   : > { %v1538_v33 = vpop.eup %1537  ;;  %1539 = vrcp.f32 %v548_v30  ;;  %v550_v34 = vadd.f32 1.0, %v1536_v31  ;;  %v1512_v30 = vld [vmem:[%s1892_s8 + $0x74] ss:$8 sps:$4 sm:$0xff]   ;;  %v1514_v31 = vld [vmem:[%s1892_s8 + $0x70] ss:$8 sps:$4 sm:$0xff]  }
  0x27   : > { %1541 = vrcp.f32 %v549_v32  ;;  %v551_v35 = vadd.f32 1.0, %v1538_v33 }
  0x28   : > { %1543 = vrcp.f32 %v550_v34 }
  0x29   : > { %1545 = vrcp.f32 %v551_v35 }
  0x30   : > { %v1540_v36 = vpop.eup %1539 }
  0x31   : > { %v1542_v37 = vpop.eup %1541  ;;  %v560_v38 = vmul.f32 %v1540_v36, %v532_v17 }
  0x32   : > { %v1544_v39 = vpop.eup %1543  ;;  %v561_v40 = vmul.f32 %v1542_v37, %v533_v18  ;;  %v1496_v18 = vld [vmem:[%s1892_s8 + $0x10] ss:$8 sps:$4 sm:$0xff]  }
  0x33   : > { %v1546_v41 = vpop.eup %1545  ;;  %v562_v42 = vmul.f32 %v1544_v39, %v534_v19  ;;  %870 = vmatpush1.bf16.msra.mxu1 %v1496_v18  ;;  %v1497_v19 = vld [vmem:[%s1892_s8 + $0x24] ss:$8 sps:$4 sm:$0xff]   ;;  %v1529_v18 = vld [vmem:[%s1894_s10 + $0x78] sm:$0xff]  }
  0x34   : > { %v581_v43 = vpack.c.bf16 %v561_v40, %v560_v38  ;;  %v563_v44 = vmul.f32 %v1546_v41, %v535_v20  ;;  %871 = vmatprep.subr.bf16.mxu1 %v1497_v19  ;;  %v1499_v20 = vld [vmem:[%s1892_s8 + $0x20] ss:$8 sps:$4 sm:$0xff]   ;;  %v1530_v19 = vld [vmem:[%s1894_s10 + $0x38] sm:$0xff]  }
  0x36   : > { %1454 = vmatprep.mubr.bf16.mxu0 %v581_v43  ;;  %v582_v45 = vpack.c.bf16 %v563_v44, %v562_v42 }
  0x37   : > { %872 = vmatpush1.bf16.msra.mxu1 %v1499_v20  ;;  %v777_v20 = vlaneseq }
  0x38   : > { %1455 = vmatmul.mubr.bf16.vlgmr.msra.gmra.mrb[0].mxu0 %v582_v45  ;;  %873 = vmatprep.subr.bf16.mxu1 %v1500_v21 }
  0x39   : > { %v778_v21 = vshrl.u32 %v777_v20, 7 }
  0x3b   : > { %874 = vmatpush1.bf16.msra.mxu1 %v1502_v22  ;;  %v779_v22 = vsub.s32 0, %v778_v21 }
  0x3c   : > { %875 = vmatprep.subr.bf16.mxu1 %v1503_v23  ;;  %v773_v23 = vld [vmem:[%s1893_s9] sm:$0x3] }
  0x3f   : > { %876 = vmatpush1.bf16.msra.mxu1 %v1505_v24  ;;  %v783_v24 = vsub.s32 1, %v778_v21 }
  0x40   : > { %877 = vmatprep.subr.bf16.mxu1 %v1506_v25  ;;  %v780_v25 = vrot.slane %v773_v23, %v779_v22 }
  0x43   : > { %878 = vmatpush1.bf16.msra.mxu1 %v1508_v26  ;;  %v784_v26 = vrot.slane %v773_v23, %v783_v24 }
  0x44   : > { %879 = vmatprep.subr.bf16.mxu1 %v1509_v27 }
  0x47   : > { %880 = vmatpush1.bf16.msra.mxu1 %v1511_v29 }
  0x48   : > { %881 = vmatprep.subr.bf16.mxu1 %v1512_v30 }
  0x4b   : > { %882 = vmatpush1.bf16.msra.mxu1 %v1514_v31 }
 0x10b   : > { %v1456_v48 = vpop.f32.mrb[0].mxu0 }
 0x10c   : > { %v680_v49 = vadd.f32 %v1456_v48, %v1332_v46  ;;  %v671_v51 = vpop.f32.mrb[1].mxu0 }
 0x10d   : > { %v672_v52 = vadd.f32 %v1332_v46, %v671_v51  ;;  %v1457_v54 = vpop.f32.mrb[2].mxu0  ;;  %v1342_v51 = vld [vmem:[%s1891_s7] ss:$0 sm:$0xff] }
 0x10e   : > { %v1732_v55 = vadd.f32 %v680_v49, %v504_v47  ;;  %v683_v56 = vadd.f32 %v1457_v54, %v1332_v46  ;;  %v674_v58 = vpop.f32.mrb[3].mxu0 }
 0x10f   : > { %v1734_v59 = vadd.f32 %v672_v52, %v502_v50  ;;  %v675_v60 = vadd.f32 %v1332_v46, %v674_v58  ;;  %v1341_v46 = vld [vmem:[%s1890_s6] ss:$0 sm:$0xff] }
 0x110   : > { %v1736_v61 = vadd.f32 %v683_v56, %v505_v53  ;;  %696 = vadd.xlane.f32.xlu1 %v1732_v55 }
 0x111   : > { %v1739_v62 = vadd.f32 %v675_v60, %v503_v57  ;;  %692 = vadd.xlane.f32.xlu0 %v1734_v59 }
 0x114   : > { %698 = vadd.xlane.f32.xlu1 %v1736_v61 }
 0x115   : > { %694 = vadd.xlane.f32.xlu0 %v1739_v62 }
 0x19d   : > { %v697_v2 = vpop.xlane.xlu1 %696 }
 0x19e   : > { %v693_v3 = vpop.xlane.xlu0 %692  ;;  %v703_v4 = vmul.f32 0.0078125, %v697_v2 }
 0x19f   : > { %v701_v5 = vmul.f32 0.0078125, %v693_v3 }
 0x1a0   : > { %v1755_v9 = vsub.f32 %v1732_v55, %v703_v4  ;;  %v1515_v4 = vld [vmem:[%s1894_s10 + $0x40] sm:$0xff]  }
 0x1a1   : > { %v705_v6 = vsub.f32 %v1734_v59, %v701_v5  ;;  %v699_v7 = vpop.xlane.xlu1 %698  ;;  %v1516_v5 = vld [vmem:[%s1894_s10] sm:$0xff]   ;;  %1410 = vmatprep.subr.bf16.mxu0 %v1515_v4  ;;  %1458 = vmatprep.subr.bf16.mxu1 %v1515_v4 }
 0x1a2   : > { %v695_v8 = vpop.xlane.xlu0 %694  ;;  %v704_v10 = vmul.f32 0.0078125, %v699_v7  ;;  %v711_v15 = vmul.f32 %v1755_v9, %v1755_v9  ;;  %1411 = vmatpush3.bf16.msra.mxu0 %v1516_v5  ;;  %v1518_v7 = vld [vmem:[%s1894_s10 + $0x8] sm:$0xff]  }
 0x1a3   : > { %v702_v11 = vmul.f32 0.0078125, %v695_v8  ;;  %v709_v12 = vmul.f32 %v705_v6, %v705_v6  ;;  %v1519_v8 = vld [vmem:[%s1894_s10 + $0x50] sm:$0xff]  }
 0x1a4   : > { %v1759_v14 = vsub.f32 %v1736_v61, %v704_v10  ;;  %v1521_v10 = vld [vmem:[%s1894_s10 + $0x58] sm:$0xff]  }
 0x1a5   : > { %v706_v13 = vsub.f32 %v1739_v62, %v702_v11  ;;  %713 = vadd.xlane.f32.xlu0 %v709_v12  ;;  %v1522_v11 = vld [vmem:[%s1894_s10 + $0x18] sm:$0xff]   ;;  %v1523_v12 = vld [vmem:[%s1894_s10 + $0x60] sm:$0xff]  }
 0x1a6   : > { %v712_v17 = vmul.f32 %v1759_v14, %v1759_v14 }
 0x1a7   : > { %v710_v16 = vmul.f32 %v706_v13, %v706_v13 }
 0x1a9   : > { %717 = vadd.xlane.f32.xlu0 %v711_v15  ;;  %715 = vadd.xlane.f32.xlu1 %v710_v16  ;;  %v1526_v15 = vld [vmem:[%s1894_s10 + $0x28] sm:$0xff]   ;;  %v1527_v16 = vld [vmem:[%s1894_s10 + $0x70] sm:$0xff]  }
 0x1ad   : > { %719 = vadd.xlane.f32.xlu1 %v712_v17  ;;  %v1528_v17 = vld [vmem:[%s1894_s10 + $0x30] sm:$0xff]  }
 0x232   : > { %v714_v32 = vpop.xlane.xlu0 %713 }
 0x233   : > { %v721_v33 = vmul.f32 0.0078125, %v714_v32 }
 0x235   : > { %v725_v34 = vadd.f32 1e-05, %v721_v33 }
 0x236   : > { %v716_v35 = vpop.xlane.xlu1 %715  ;;  %v718_v36 = vpop.xlane.xlu0 %717 }
 0x237   : > { %1547 = vrsqrt.f32 %v725_v34  ;;  %v722_v37 = vmul.f32 0.0078125, %v716_v35  ;;  %v723_v38 = vmul.f32 0.0078125, %v718_v36 }
 0x239   : > { %v726_v39 = vadd.f32 1e-05, %v722_v37  ;;  %v727_v40 = vadd.f32 1e-05, %v723_v38 }
 0x23a   : > { %v720_v41 = vpop.xlane.xlu1 %719 }
 0x23b   : > { %1549 = vrsqrt.f32 %v726_v39  ;;  %v724_v42 = vmul.f32 0.0078125, %v720_v41 }
 0x23c   : > { %1551 = vrsqrt.f32 %v727_v40 }
 0x23d   : > { %v728_v43 = vadd.f32 1e-05, %v724_v42 }
 0x23f   : > { %1553 = vrsqrt.f32 %v728_v43 }
 0x241   : > { %v1548_v44 = vpop.eup %1547 }
 0x242   : > { %v733_v45 = vmul.f32 %v1548_v44, %v705_v6  ;;  %v1517_v6 = vld [vmem:[%s1894_s10 + $0x48] sm:$0xff]  }
 0x243   : > { %1412 = vmatprep.subr.bf16.mxu0 %v1517_v6 }
 0x244   : > { %v743_v49 = vmul.f32 %v1341_v46, %v733_v45  ;;  %1413 = vmatpush3.bf16.msra.mxu0 %v1518_v7 }
 0x245   : > { %v1550_v47 = vpop.eup %1549  ;;  %1414 = vmatprep.subr.bf16.mxu0 %v1519_v8 }
 0x246   : > { %v734_v48 = vmul.f32 %v1550_v47, %v706_v13  ;;  %v1552_v50 = vpop.eup %1551  ;;  %v753_v54 = vadd.f32 %v1342_v51, %v743_v49  ;;  %v1524_v13 = vld [vmem:[%s1894_s10 + $0x20] sm:$0xff]  }
 0x247   : > { %v735_v57 = vmul.f32 %v1552_v50, %v1755_v9  ;;  %v1520_v9 = vld [vmem:[%s1894_s10 + $0x10] sm:$0xff]  }
 0x248   : > { %v744_v52 = vmul.f32 %v1341_v46, %v734_v48  ;;  %1415 = vmatpush3.bf16.msra.mxu0 %v1520_v9 }
 0x249   : > { %v1554_v53 = vpop.eup %1553  ;;  %v745_v0 = vmul.f32 %v1341_v46, %v735_v57  ;;  %1416 = vmatprep.subr.bf16.mxu0 %v1521_v10 }
 0x24a   : > { %v754_v56 = vadd.f32 %v1342_v51, %v744_v52  ;;  %v736_v58 = vmul.f32 %v1554_v53, %v1759_v14  ;;  %v1525_v14 = vld [vmem:[%s1894_s10 + $0x68] sm:$0xff]  }
 0x24b   : > { %v755_v2 = vadd.f32 %v1342_v51, %v745_v0 }
 0x24c   : > { %v774_v60 = vpack.c.bf16 %v754_v56, %v753_v54  ;;  %v746_v63 = vmul.f32 %v1341_v46, %v736_v58  ;;  %1417 = vmatpush3.bf16.msra.mxu0 %v1522_v11 }
 0x24d   : > { %1418 = vmatprep.subr.bf16.mxu0 %v1523_v12 }
 0x24e   : > { %900 = vmatmul.mubr.bf16.vlgmr.msra.gmra.mrb[0].mxu1 %v774_v60  ;;  %v756_v1 = vadd.f32 %v1342_v51, %v746_v63 }
 0x24f   : > { %909 = vmatprep.mubr.bf16.mxu1 %v1603_v28  ;;  %1466 = vmatpush3.bf16.msra.mxu1 %v1516_v5 }
 0x250   : > { %v775_v3 = vpack.c.bf16 %v756_v1, %v755_v2  ;;  %1459 = vmatprep.subr.bf16.mxu1 %v1517_v6  ;;  %1419 = vmatpush3.bf16.msra.mxu0 %v1524_v13 }
 0x251   : > { %1420 = vmatprep.subr.bf16.mxu0 %v1525_v14 }
 0x253   : > { %1467 = vmatpush3.bf16.msra.mxu1 %v1518_v7 }
 0x254   : > { %1460 = vmatprep.subr.bf16.mxu1 %v1519_v8  ;;  %1421 = vmatpush3.bf16.msra.mxu0 %v1526_v15 }
 0x255   : > { %1422 = vmatprep.subr.bf16.mxu0 %v1527_v16 }
 0x256   : > { %910 = vmatmul.mubr.bf16.gmra.mrb[4].mxu1 %v775_v3 }
 0x257   : > { %1468 = vmatpush3.bf16.msra.mxu1 %v1520_v9 }
 0x258   : > { %1461 = vmatprep.subr.bf16.mxu1 %v1521_v10  ;;  %1423 = vmatpush3.bf16.msra.mxu0 %v1528_v17 }
 0x259   : > { %1424 = vmatprep.subr.bf16.mxu0 %v1529_v18 }
 0x25b   : > { %1469 = vmatpush3.bf16.msra.mxu1 %v1522_v11 }
 0x25c   : > { %1462 = vmatprep.subr.bf16.mxu1 %v1523_v12  ;;  %1425 = vmatpush3.bf16.msra.mxu0 %v1530_v19 }
 0x25f   : > { %1470 = vmatpush3.bf16.msra.mxu1 %v1524_v13 }
 0x260   : > { %1463 = vmatprep.subr.bf16.mxu1 %v1525_v14 }
 0x263   : > { %1471 = vmatpush3.bf16.msra.mxu1 %v1526_v15 }
 0x264   : > { %1464 = vmatprep.subr.bf16.mxu1 %v1527_v16 }
 0x267   : > { %1472 = vmatpush3.bf16.msra.mxu1 %v1528_v17 }
 0x268   : > { %1465 = vmatprep.subr.bf16.mxu1 %v1529_v18 }
 0x26b   : > { %1473 = vmatpush3.bf16.msra.mxu1 %v1530_v19 }
 0x321   : > { %v901_v27 = vpop.f32.mrb[0].mxu1 }
 0x322   : > { %v902_v28 = vadd.f32 %v901_v27, %v780_v25  ;;  %v903_v29 = vpop.f32.mrb[1].mxu1 }
 0x323   : > { %v904_v30 = vadd.f32 %v903_v29, %v784_v26  ;;  %v905_v31 = vpop.f32.mrb[2].mxu1 }
 0x324   : > { %v1359_v32 = vmul.f32 -1.442695, %v902_v28  ;;  %v906_v33 = vadd.f32 %v905_v31, %v780_v25  ;;  %v907_v34 = vpop.f32.mrb[3].mxu1 }
 0x325   : > { %v1360_v35 = vmul.f32 -1.442695, %v904_v30  ;;  %v908_v36 = vadd.f32 %v907_v34, %v784_v26 }
 0x326   : > { %1555 = vpow2.f32 %v1359_v32  ;;  %v1361_v37 = vmul.f32 -1.442695, %v906_v33 }
 0x327   : > { %1557 = vpow2.f32 %v1360_v35  ;;  %v1362_v38 = vmul.f32 -1.442695, %v908_v36 }
 0x328   : > { %1559 = vpow2.f32 %v1361_v37 }
 0x329   : > { %1561 = vpow2.f32 %v1362_v38  ;;  %v911_v39 = vpop.f32.mrb[4].mxu1 }
 0x32a   : > { %v912_v40 = vadd.f32 %v911_v39, %v780_v25  ;;  %v913_v41 = vpop.f32.mrb[5].mxu1 }
 0x32b   : > { %v914_v42 = vadd.f32 %v913_v41, %v784_v26  ;;  %v915_v43 = vpop.f32.mrb[6].mxu1 }
 0x32c   : > { %v1363_v44 = vmul.f32 -1.442695, %v912_v40  ;;  %v916_v45 = vadd.f32 %v915_v43, %v780_v25  ;;  %v917_v46 = vpop.f32.mrb[7].mxu1 }
 0x32d   : > { %v1364_v47 = vmul.f32 -1.442695, %v914_v42  ;;  %v918_v48 = vadd.f32 %v917_v46, %v784_v26 }
 0x32e   : > { %1563 = vpow2.f32 %v1363_v44  ;;  %v1365_v49 = vmul.f32 -1.442695, %v916_v45 }
 0x32f   : > { %1565 = vpow2.f32 %v1364_v47  ;;  %v1366_v50 = vmul.f32 -1.442695, %v918_v48 }
 0x330   : > { %v1556_v51 = vpop.eup %1555  ;;  %1567 = vpow2.f32 %v1365_v49 }
 0x331   : > { %v1558_v52 = vpop.eup %1557  ;;  %v944_v53 = vadd.f32 1.0, %v1556_v51  ;;  %1569 = vpow2.f32 %v1366_v50 }
 0x332   : > { %v1560_v54 = vpop.eup %1559  ;;  %v945_v56 = vadd.f32 1.0, %v1558_v52 }
 0x333   : > { %v1562_v57 = vpop.eup %1561  ;;  %1571 = vrcp.f32 %v944_v53  ;;  %v946_v58 = vadd.f32 1.0, %v1560_v54 }
 0x334   : > { %1573 = vrcp.f32 %v945_v56  ;;  %v947_v60 = vadd.f32 1.0, %v1562_v57 }
 0x335   : > { %1575 = vrcp.f32 %v946_v58 }
 0x336   : > { %1577 = vrcp.f32 %v947_v60 }
 0x338   : > { %v1564_v63 = vpop.eup %1563 }
 0x339   : > { %v1566_v0 = vpop.eup %1565  ;;  %v948_v1 = vadd.f32 1.0, %v1564_v63 }
 0x33a   : > { %v1568_v2 = vpop.eup %1567  ;;  %v949_v3 = vadd.f32 1.0, %v1566_v0 }
 0x33b   : > { %v1570_v4 = vpop.eup %1569  ;;  %1579 = vrcp.f32 %v948_v1  ;;  %v950_v5 = vadd.f32 1.0, %v1568_v2 }
 0x33c   : > { %1581 = vrcp.f32 %v949_v3  ;;  %v951_v6 = vadd.f32 1.0, %v1570_v4 }
 0x33d   : > { %v1572_v7 = vpop.eup %1571  ;;  %1583 = vrcp.f32 %v950_v5 }
 0x33e   : > { %v1574_v8 = vpop.eup %1573  ;;  %1585 = vrcp.f32 %v951_v6  ;;  %v968_v11 = vmul.f32 %v1572_v7, %v902_v28  ;;  %v1367_v28 = vld [vmem:[%s1895_s11] ss:$0 sm:$0xff] }
 0x33f   : > { %v1576_v9 = vpop.eup %1575  ;;  %v969_v13 = vmul.f32 %v1574_v8, %v904_v30 }
 0x340   : > { %v1578_v10 = vpop.eup %1577  ;;  %v970_v12 = vmul.f32 %v1576_v9, %v906_v33 }
 0x341   : > { %v971_v14 = vmul.f32 %v1578_v10, %v908_v36 }
 0x342   : > { %v1009_v15 = vpack.c.bf16 %v970_v12, %v968_v11 }
 0x343   : > { %v1010_v16 = vpack.c.bf16 %v971_v14, %v969_v13 }
 0x345   : > { %v1580_v17 = vpop.eup %1579  ;;  %1147 = vmatprep.mubr.bf16.mxu0 %v1010_v16 }
 0x346   : > { %v1582_v18 = vpop.eup %1581  ;;  %1148 = vmatmul.mubr.bf16.vlgmr.msra.gmra.mrb[4].mxu0 %v1009_v15  ;;  %v972_v21 = vmul.f32 %v1580_v17, %v912_v40  ;;  %v1384_v17 = vld [vmem:[%s1896_s12] ss:$0 sm:$0xff] }
 0x347   : > { %v1584_v19 = vpop.eup %1583  ;;  %v973_v23 = vmul.f32 %v1582_v18, %v914_v42 }
 0x348   : > { %v1586_v20 = vpop.eup %1585  ;;  %v974_v22 = vmul.f32 %v1584_v19, %v916_v45 }
 0x349   : > { %v975_v24 = vmul.f32 %v1586_v20, %v918_v48  ;;  %v1385_v20 = vld [vmem:[%s1897_s13] ss:$0 sm:$0xff] }
 0x34a   : > { %v1011_v25 = vpack.c.bf16 %v974_v22, %v972_v21 }
 0x34b   : > { %v1012_v26 = vpack.c.bf16 %v975_v24, %v973_v23 }
 0x34d   : > { %1155 = vmatprep.mubr.bf16.mxu1 %v1012_v26 }
 0x34e   : > { %1156 = vmatmul.mubr.bf16.vlgmr.msra.gmra.mrb[8].mxu1 %v1011_v25 }
 0x419   : > { %v1426_v27 = vpop.f32.mrb[4].mxu0 }
 0x41a   : > { %v1427_v29 = vpop.f32.mrb[5].mxu0 }
 0x41b   : > { %v1428_v30 = vadd.f32 %v1427_v29, %v1426_v27  ;;  %v1429_v31 = vpop.f32.mrb[6].mxu0 }
 0x41c   : > { %v1430_v32 = vpop.f32.mrb[7].mxu0 }
 0x41d   : > { %v1150_v33 = vadd.f32 %v1428_v30, %v1367_v28  ;;  %v1431_v34 = vadd.f32 %v1430_v32, %v1429_v31 }
 0x41f   : > { %v1164_v35 = vmul.f32 0.5, %v1150_v33  ;;  %v1153_v36 = vadd.f32 %v1431_v34, %v1367_v28 }
 0x421   : > { %v1165_v37 = vmul.f32 0.5, %v1153_v36  ;;  %v1432_v38 = vpop.f32.mrb[8].mxu1  ;;  %v1168_v39 = vadd.f32 %v1164_v35, %v1734_v59 }
 0x422   : > { %v1433_v40 = vpop.f32.mrb[9].mxu1 }
 0x423   : > { %v1434_v41 = vadd.f32 %v1433_v40, %v1432_v38  ;;  %1174 = vadd.xlane.f32.xlu0 %v1168_v39  ;;  %v1435_v42 = vpop.f32.mrb[10].mxu1  ;;  %v1169_v43 = vadd.f32 %v1165_v37, %v1739_v62 }
 0x424   : > { %v1436_v44 = vpop.f32.mrb[11].mxu1 }
 0x425   : > { %v1158_v45 = vadd.f32 %v1434_v41, %v1367_v28  ;;  %v1437_v46 = vadd.f32 %v1436_v44, %v1435_v42  ;;  %1176 = vadd.xlane.f32.xlu1 %v1169_v43 }
 0x427   : > { %v1166_v47 = vmul.f32 0.5, %v1158_v45  ;;  %v1161_v48 = vadd.f32 %v1437_v46, %v1367_v28 }
 0x429   : > { %v1167_v49 = vmul.f32 0.5, %v1161_v48  ;;  %v1170_v50 = vadd.f32 %v1166_v47, %v1732_v55 }
 0x42b   : > { %1178 = vadd.xlane.f32.xlu0 %v1170_v50  ;;  %v1171_v51 = vadd.f32 %v1167_v49, %v1736_v61 }
 0x42d   : > { %1180 = vadd.xlane.f32.xlu1 %v1171_v51 }
 0x4b0   : > { %v1175_v59 = vpop.xlane.xlu0 %1174 }
 0x4b1   : > { %v1182_v52 = vmul.f32 0.0078125, %v1175_v59 }
 0x4b2   : > { %v1177_v53 = vpop.xlane.xlu1 %1176 }
 0x4b3   : > { %v1186_v54 = vsub.f32 %v1168_v39, %v1182_v52  ;;  %v1183_v56 = vmul.f32 0.0078125, %v1177_v53 }
 0x4b5   : > { %v1187_v57 = vsub.f32 %v1169_v43, %v1183_v56  ;;  %v1190_v62 = vmul.f32 %v1186_v54, %v1186_v54 }
 0x4b7   : > { %1194 = vadd.xlane.f32.xlu0 %v1190_v62  ;;  %v1191_v58 = vmul.f32 %v1187_v57, %v1187_v57 }
 0x4b8   : > { %v1179_v60 = vpop.xlane.xlu0 %1178 }
 0x4b9   : > { %v1184_v63 = vmul.f32 0.0078125, %v1179_v60  ;;  %1196 = vadd.xlane.f32.xlu1 %v1191_v58 }
 0x4ba   : > { %v1181_v0 = vpop.xlane.xlu1 %1180 }
 0x4bb   : > { %v1188_v1 = vsub.f32 %v1170_v50, %v1184_v63  ;;  %v1185_v2 = vmul.f32 0.0078125, %v1181_v0 }
 0x4bd   : > { %v1189_v55 = vsub.f32 %v1171_v51, %v1185_v2  ;;  %v1192_v3 = vmul.f32 %v1188_v1, %v1188_v1 }
 0x4bf   : > { %1198 = vadd.xlane.f32.xlu0 %v1192_v3  ;;  %v1193_v61 = vmul.f32 %v1189_v55, %v1189_v55 }
 0x4c1   : > { %1200 = vadd.xlane.f32.xlu1 %v1193_v61 }
 0x544   : > { %v1195_v4 = vpop.xlane.xlu0 %1194 }
 0x545   : > { %v1202_v5 = vmul.f32 0.0078125, %v1195_v4 }
 0x546   : > { %v1197_v6 = vpop.xlane.xlu1 %1196 }
 0x547   : > { %v1206_v7 = vadd.f32 1e-05, %v1202_v5  ;;  %v1203_v8 = vmul.f32 0.0078125, %v1197_v6 }
 0x549   : > { %1587 = vrsqrt.f32 %v1206_v7  ;;  %v1207_v9 = vadd.f32 1e-05, %v1203_v8 }
 0x54b   : > { %1589 = vrsqrt.f32 %v1207_v9 }
 0x54c   : > { %v1199_v10 = vpop.xlane.xlu0 %1198 }
 0x54d   : > { %v1204_v11 = vmul.f32 0.0078125, %v1199_v10 }
 0x54e   : > { %v1201_v12 = vpop.xlane.xlu1 %1200 }
 0x54f   : > { %v1208_v13 = vadd.f32 1e-05, %v1204_v11  ;;  %v1205_v14 = vmul.f32 0.0078125, %v1201_v12 }
 0x551   : > { %1591 = vrsqrt.f32 %v1208_v13  ;;  %v1209_v15 = vadd.f32 1e-05, %v1205_v14 }
 0x553   : > { %v1588_v16 = vpop.eup %1587  ;;  %1593 = vrsqrt.f32 %v1209_v15 }
 0x554   : > { %v1214_v18 = vmul.f32 %v1588_v16, %v1186_v54 }
 0x555   : > { %v1590_v19 = vpop.eup %1589 }
 0x556   : > { %v1224_v21 = vmul.f32 %v1384_v17, %v1214_v18  ;;  %v1215_v22 = vmul.f32 %v1590_v19, %v1187_v57 }
 0x558   : > { %v1234_v23 = vadd.f32 %v1385_v20, %v1224_v21  ;;  %v1225_v24 = vmul.f32 %v1384_v17, %v1215_v22 }
 0x55a   : > { %1238 = vst [vmem:[%s499_s18] sm:$0xff] %v1234_v23  ;;  %v1235_v25 = vadd.f32 %v1385_v20, %v1225_v24 }
 0x55b   : > { %v1592_v26 = vpop.eup %1591 }
 0x55c   : > { %1239 = vst [vmem:[%s499_s18 + $0x8] sm:$0xff] %v1235_v25  ;;  %v1216_v27 = vmul.f32 %v1592_v26, %v1188_v1 }
 0x55d   : > { %v1594_v28 = vpop.eup %1593 }
 0x55e   : > { %v1226_v29 = vmul.f32 %v1384_v17, %v1216_v27  ;;  %v1217_v30 = vmul.f32 %v1594_v28, %v1189_v55 }
 0x560   : > { %v1236_v31 = vadd.f32 %v1385_v20, %v1226_v29  ;;  %v1227_v32 = vmul.f32 %v1384_v17, %v1217_v30 }
 0x562   : > { %1240 = vst [vmem:[%s499_s18 + $0x10] sm:$0xff] %v1236_v31  ;;  %v1237_v33 = vadd.f32 %v1385_v20, %v1227_v32 }
 0x564   : > { %1241 = vst [vmem:[%s499_s18 + $0x18] sm:$0xff] %v1237_v33 }
 0x565 PF: > { %s24_s29 = sadd.s32 1, %s1601_s29  }
 0x566   : > { %p21_p4 = scmp.ge.s32.totalorder %s24_s29, 4  }
 0x568   :  { %23 = sbr.rel (!%p21_p4) target bundleno = 1 (0x1), region = 109 }

// kernel: conformer_layer.2
= control target key start
LH: loop header
LB: loop body
LE: loop exit
PB: predicated region body
PF: predicated region fallthrough
CT: control target
= control target key end

     0   :  { %s5849_s0 = inlined_call_operand.vmem [shape: f32[4,16,128], index: 0, kind: input, shape index: {}]   ;;  %s5850_s1 = inlined_call_operand.vmem [shape: f32[1,128], index: 1, kind: input, shape index: {}]   ;;  %s5851_s2 = inlined_call_operand.vmem [shape: f32[1,128], index: 2, kind: input, shape index: {}]   ;;  %s5852_s3 = inlined_call_operand.hbm [shape: bf16[128,256], index: 3, kind: input, shape index: {}]   ;;  %s5853_s4 = inlined_call_operand.vmem [shape: f32[1,256], index: 4, kind: input, shape index: {}]   ;;  %s5854_s5 = inlined_call_operand.hbm [shape: bf16[256,128], index: 5, kind: input, shape index: {}]   ;;  %s5855_s6 = inlined_call_operand.vmem [shape: f32[1,128], index: 6, kind: input, shape index: {}]   ;;  %s5856_s7 = inlined_call_operand.vmem [shape: f32[1,128], index: 7, kind: input, shape index: {}]   ;;  %s5857_s8 = inlined_call_operand.vmem [shape: f32[1,128], index: 8, kind: input, shape index: {}]   ;;  %s5858_s9 = inlined_call_operand.vmem [shape: bf16[128,384], index: 9, kind: input, shape index: {}]   ;;  %s5859_s10 = inlined_call_operand.vmem [shape: f32[1,384], index: 10, kind: input, shape index: {}]   ;;  %s5860_s11 = inlined_call_operand.hbm [shape: bf16[128,128], index: 11, kind: input, shape index: {}]   ;;  %s5861_s12 = inlined_call_operand.vmem [shape: f32[1,128], index: 12, kind: input, shape index: {}]   ;;  %s5862_s13 = inlined_call_operand.vmem [shape: f32[1,128], index: 13, kind: input, shape index: {}]   ;;  %s5863_s14 = inlined_call_operand.vmem [shape: f32[1,128], index: 14, kind: input, shape index: {}]   ;;  %s5864_s15 = inlined_call_operand.hbm [shape: bf16[128,256], index: 15, kind: input, shape index: {}]   ;;  %s5865_s16 = inlined_call_operand.vmem [shape: f32[1,256], index: 16, kind: input, shape index: {}]   ;;  %s5866_s17 = inlined_call_operand.vmem [shape: f32[7,128], index: 17, kind: input, shape index: {}]   ;;  %s5867_s18 = inlined_call_operand.vmem [shape: f32[1,128], index: 18, kind: input, shape index: {}]   ;;  %s5868_s19 = inlined_call_operand.vmem [shape: f32[4,16,128], index: 19, kind: output, shape index: {0}]   ;;  %s5869_s20 = inlined_call_operand.vmem [shape: bf16[4,16,128], index: 20, kind: output, shape index: {1}]   ;;  %s5870_s21 = inlined_call_operand.vmem [shape: f32[2,1,128], index: 21, kind: output, shape index: {2}]   ;;  %s5871_s22 = inlined_call_operand.vmem [shape: f32[2,1,128], index: 22, kind: output, shape index: {3}]  }
   0x1   :  { %5880 = sst [smem:[#allocation13_spill]] %s5849_s0 }
   0x2   :  { %5881 = sst [smem:[#allocation14_spill]] %s5850_s1 }
   0x3   :  { %5882 = sst [smem:[#allocation15_spill]] %s5851_s2 }
   0x4   :  { %5883 = sst [smem:[#allocation16_spill]] %s5852_s3 }
   0x5   :  { %5884 = sst [smem:[#allocation17_spill]] %s5853_s4 }
   0x6   :  { %5885 = sst [smem:[#allocation18_spill]] %s5854_s5 }
   0x7   :  { %5886 = sst [smem:[#allocation19_spill]] %s5855_s6 }
   0x8   :  { %5887 = sst [smem:[#allocation20_spill]] %s5866_s17 }
   0x9   :  { %5888 = sst [smem:[#allocation21_spill]] %s5867_s18 }
   0xa   :  { %5889 = sst [smem:[#allocation22_spill]] %s5869_s20 }
   0xb   :  { %5890 = sst [smem:[#allocation23_spill]] %s5870_s21 }
   0xc   :  { %5891 = sst [smem:[#allocation24_spill]] %s5871_s22 }
   0xd   :  { %28 = vsyncpa [#allocation3], 0 }
   0xe   :  { %29 = vsyncpa [#allocation5], 0 }
   0xf   :  { %30 = vsyncpa [#allocation8], 0  ;;  %s4857_s3 = smov 0  }
  0x10 LB: > { %5892 = sst [smem:[#allocation12_spill]] %s4726_s3  ;;  %s4728_s28 = smov [#allocation4]   ;;  %s4726_s3 = sphi %s4857_s3, %s36_s3  }
  0x11   : > { %s583_s29 = sshll.u32 %s4728_s28, 4  ;;  %s4863_s30 = sadd.s32 4294967295, %s4726_s3   ;;  %s4868_s29 = int_to_ptr.vmem [resolvable:$true] %s583_s29 }
  0x12   : > { %p3798_p0 = scmp.ge.s32.totalorder %s4726_s3, 1  ;;  %p549_p1 = scmp.lt.s32.totalorder %s4726_s3, 3 }
  0x13   : > { %p5878_p2 = scmp.eq.s32.totalorder %s4863_s30, 0  ;;  %s4729_s0 = smov [#allocation2]  }
  0x14   : > { %p4870_p3 = pnand %p3798_p0, %p549_p1  ;;  %s567_s23 = sshll.u32 %s4729_s0, 4  ;;  %s4876_s23 = int_to_ptr.vmem [resolvable:$true] %s567_s23 }
  0x15   : > { %s4730_s5 = smov [#allocation6]   ;;  %s5895_s26 = sld [smem:[#allocation18_spill]] }
  0x16   : > { %s5893_s4 = scalar_select %p4870_p3, 1, 0 }
  0x17   : > { %p4191_p4 = pneg %p4870_p3  ;;  %s4884_s24 = sshll.u32 %s4730_s5, 4  ;;  %s612_s24 = int_to_ptr.vmem [resolvable:$true] %s4884_s24 }
  0x19   : > { %p4880_p5 = pnand %p5878_p2, %p4191_p4 }
  0x1b   : > { %s4596_s2 = scalar_lea.hbm %s5895_s26, 2048  ;;  %p4894_p7 = pneg %p4880_p5 }
  0x1c   : > { %p4597_p6 = scmp.ne.s32.totalorder %s5895_s26, %s4596_s2  ;;  %p4603_p10 = scmp.lt.u32.totalorder %s4596_s2, %s5895_s26 }
  0x1e   : > { %p4599_p8 = pnand %p4894_p7, %p4597_p6 }
  0x20   : > { %p4600_p9 = pneg %p4599_p8 }
  0x22   : > { %p4605_p11 = pnand %p4603_p10, %p4600_p9 }
  0x24   : > { %4608 = shalt.err (!%p4605_p11)
}
  0x25   : > { %s4609_s6 = scalar_lea.vmem %s4868_s29, 2048  ;;  %p4617_p1 = scmp.lt.s32.totalorder %s4868_s29, %s4868_s29 }
  0x26   : > { %p4610_p12 = scmp.ne.s32.totalorder %s4868_s29, %s4609_s6  ;;  %p4618_p4 = scmp.lt.s32.totalorder %s4609_s6, %s4609_s6 }
  0x28   : > { %p4612_p13 = pnand %p4610_p12, %p4894_p7  ;;  %p4619_p6 = por %p4618_p4, %p4617_p1 }
  0x2a   : > { %p4613_p0 = pneg %p4612_p13 }
  0x2c   : > { %p4620_p8 = pnand %p4619_p6, %p4613_p0 }
  0x2e   : > { %4623 = shalt.err (!%p4620_p8)
}
  0x2f   : > { %s5875_s25 = smov 64   ;;  %s5876_s3 = smov 4  }
  0x30   : > { %4197 = dma.hbm_to_vmem [thread:$0]  (!%p4880_p5), %s5895_s26, 2048, %s4868_s29, [#allocation5], %s5875_s25, %s5875_s25, %s5876_s3  }
  0x31   : > { %s5897_s22 = sld [smem:[#allocation16_spill]] }
  0x37   : > { %s4624_s6 = scalar_lea.hbm %s5897_s22, 2048 }
  0x38   : > { %p4625_p9 = scmp.ne.s32.totalorder %s5897_s22, %s4624_s6  ;;  %p4631_p12 = scmp.lt.u32.totalorder %s4624_s6, %s5897_s22 }
  0x3a   : > { %p4627_p10 = pnand %p4625_p9, %p4894_p7 }
  0x3c   : > { %p4628_p11 = pneg %p4627_p10 }
  0x3e   : > { %p4633_p13 = pnand %p4631_p12, %p4628_p11 }
  0x40   : > { %4636 = shalt.err (!%p4633_p13)
}
  0x41   : > { %s4637_s29 = scalar_lea.vmem %s4876_s23, 2048  ;;  %p4645_p6 = scmp.lt.s32.totalorder %s4876_s23, %s4876_s23 }
  0x42   : > { %p4638_p0 = scmp.ne.s32.totalorder %s4876_s23, %s4637_s29  ;;  %p4646_p8 = scmp.lt.s32.totalorder %s4637_s29, %s4637_s29 }
  0x44   : > { %p4640_p1 = pnand %p4638_p0, %p4894_p7  ;;  %p4647_p9 = por %p4646_p8, %p4645_p6 }
  0x46   : > { %p4641_p4 = pneg %p4640_p1 }
  0x48   : > { %p4648_p10 = pnand %p4647_p9, %p4641_p4 }
  0x4a   : > { %4651 = shalt.err (!%p4648_p10)
}
  0x4b   : > { %s4733_s20 = smov 128   ;;  %s4734_s17 = smov 8  }
  0x4c   : > { %4194 = dma.hbm_to_vmem [thread:$0]  (!%p4880_p5), %s5897_s22, 2048, %s4876_s23, [#allocation3], %s4733_s20, %s4733_s20, %s4734_s17  }
  0x4d   : > { %s4735_s2 = smov [#allocation7]   ;;  %s4652_s6 = scalar_lea.hbm %s5860_s11, 1024 }
  0x4e   : > { %s633_s27 = sshll.u32 %s4735_s2, 4  ;;  %p4653_p11 = scmp.ne.s32.totalorder %s5860_s11, %s4652_s6  ;;  %s634_s27 = int_to_ptr.vmem [resolvable:$true] %s633_s27 }
  0x4f   : > { %p4659_p0 = scmp.lt.u32.totalorder %s4652_s6, %s5860_s11 }
  0x50   : > { %p4655_p12 = pnand %p4653_p11, %p4894_p7 }
  0x52   : > { %p4656_p13 = pneg %p4655_p12 }
  0x54   : > { %p4661_p1 = pnand %p4659_p0, %p4656_p13 }
  0x56   : > { %4664 = shalt.err (!%p4661_p1)
}
  0x57   : > { %s4665_s23 = scalar_lea.vmem %s612_s24, 1024  ;;  %p4673_p9 = scmp.lt.s32.totalorder %s612_s24, %s612_s24 }
  0x58   : > { %p4666_p4 = scmp.ne.s32.totalorder %s612_s24, %s4665_s23  ;;  %p4674_p10 = scmp.lt.s32.totalorder %s4665_s23, %s4665_s23 }
  0x5a   : > { %p4668_p6 = pnand %p4666_p4, %p4894_p7  ;;  %p4675_p2 = por %p4674_p10, %p4673_p9 }
  0x5c   : > { %p4669_p8 = pneg %p4668_p6 }
  0x5e   : > { %p4676_p3 = pnand %p4675_p2, %p4669_p8 }
  0x60   : > { %4679 = shalt.err (!%p4676_p3)
}
  0x61   : > { %s5898_s25 = smov 4   ;;  %s5899_s18 = smov 64  }
  0x62   : > { %4200 = dma.hbm_to_vmem [thread:$0]  (!%p4880_p5), %s5860_s11, 1024, %s612_s24, [#allocation5], %s5899_s18, %s5899_s18, %s5898_s25  }
  0x63   : > { %s4680_s28 = scalar_lea.hbm %s5864_s15, 2048 }
  0x64   : > { %p4681_p2 = scmp.ne.s32.totalorder %s5864_s15, %s4680_s28  ;;  %p4687_p12 = scmp.lt.u32.totalorder %s4680_s28, %s5864_s15 }
  0x66   : > { %p4683_p3 = pnand %p4681_p2, %p4894_p7 }
  0x68   : > { %p4684_p11 = pneg %p4683_p3 }
  0x6a   : > { %p4689_p13 = pnand %p4687_p12, %p4684_p11 }
  0x6c   : > { %4692 = shalt.err (!%p4689_p13)
}
  0x6d   : > { %s4693_s26 = scalar_lea.vmem %s634_s27, 2048  ;;  %p4701_p6 = scmp.lt.s32.totalorder %s634_s27, %s634_s27 }
  0x6e   : > { %p4694_p0 = scmp.ne.s32.totalorder %s634_s27, %s4693_s26  ;;  %p4702_p8 = scmp.lt.s32.totalorder %s4693_s26, %s4693_s26 }
  0x70   : > { %p4696_p1 = pnand %p4694_p0, %p4894_p7  ;;  %p4703_p9 = por %p4702_p8, %p4701_p6 }
  0x72   : > { %p4697_p4 = pneg %p4696_p1 }
  0x74   : > { %p4704_p10 = pnand %p4703_p9, %p4697_p4 }
  0x76   : > { %4707 = shalt.err (!%p4704_p10)
}
  0x77   : > { %4203 = dma.hbm_to_vmem [thread:$0]  (!%p4880_p5), %s5864_s15, 2048, %s634_s27, [#allocation8], %s4733_s20, %s4733_s20, %s4734_s17  }
  0x78   : > { %p5900_p2 = scmp.ne.s32.totalorder %s5893_s4, 0 }
  0x79   : > { %p5901_p7 = scmp.eq.s32.totalorder (!%p5900_p2), %s4863_s30, 0 }
  0x7a   : > { %668 = sbr.rel (%p5900_p2) target bundleno = 3162 (0xc5a), region = 96 }
  0x81   : > { %4713 = dma.done.wait (%p5901_p7), [#allocation3], 2048   ;;  %p5902_p3 = pmov %p5901_p7 }
  0x83   : > { %4715 = vsyncadd (%p5902_p3), [#allocation3], 4294965248  ;;  %p5903_p11 = pmov %p5902_p3 }
  0x84   : > { %p5904_p12 = pmov %p5902_p3 }
  0x85   : > { %4717 = dma.done.wait (%p5903_p11), [#allocation5], 3072  }
  0x86   : > { %4719 = vsyncadd (%p5904_p12), [#allocation5], 4294964224  ;;  %p5905_p13 = pmov %p5902_p3 }
  0x87   : > { %p5906_p5 = pmov %p5902_p3 }
  0x88   : > { %4721 = dma.done.wait (%p5905_p13), [#allocation8], 2048  }
  0x89   : > { %4723 = vsyncadd (%p5906_p5), [#allocation8], 4294965248  ;;  %s3809_s4 = sshll.u32 %s4863_s30, 1  ;;  %s5907_s17 = sld [smem:[#allocation13_spill]]  ;;  %v4324_v4 = vld [vmem:[#allocation2 + $0x4] ss:$8 sps:$4 sm:$0xff]  }
  0x8a   : > { %p757_p0 = scmp.lt.s32.totalorder %s3809_s4, 3  ;;  %v4326_v5 = vld [vmem:[#allocation2] ss:$8 sps:$4 sm:$0xff]   ;;  %v4327_v6 = vld [vmem:[#allocation2 + $0x14] ss:$8 sps:$4 sm:$0xff]   ;;  %965 = vmatprep.subr.bf16.mxu0 %v4324_v4  ;;  %v4736_v33 = vmov 0  }
  0x8b   : > { %966 = vmatpush1.bf16.msra.mxu0 %v4326_v5  ;;  %v4329_v23 = vld [vmem:[#allocation2 + $0x10] ss:$8 sps:$4 sm:$0xff]   ;;  %v4330_v24 = vld [vmem:[#allocation2 + $0x24] ss:$8 sps:$4 sm:$0xff]   ;;  %v4332_v25 = vld [vmem:[#allocation2 + $0x20] ss:$8 sps:$4 sm:$0xff]   ;;  %997 = vmatprep.mubr.bf16.mxu0 %v4736_v33 }
  0x8c   : > { %s5919_s4 = smov (!%p757_p0, %s3809_s4), 3  ;;  %967 = vmatprep.subr.bf16.mxu0 %v4327_v6  ;;  %v4333_v26 = vld [vmem:[#allocation2 + $0x34] ss:$8 sps:$4 sm:$0xff]   ;;  %v4335_v27 = vld [vmem:[#allocation2 + $0x30] ss:$8 sps:$4 sm:$0xff]   ;;  %s5908_s21 = sld [smem:[#allocation14_spill]] }
  0x8d   : > { %s3941_s1 = sshll.u32 %s5919_s4, 4  ;;  %v4336_v28 = vld [vmem:[#allocation2 + $0x44] ss:$8 sps:$4 sm:$0xff]   ;;  %v4338_v29 = vld [vmem:[#allocation2 + $0x40] ss:$8 sps:$4 sm:$0xff]   ;;  %s5909_s5 = sld [smem:[#allocation15_spill]] }
  0x8e   : > { %v4339_v30 = vld [vmem:[#allocation2 + $0x54] ss:$8 sps:$4 sm:$0xff]   ;;  %v4341_v31 = vld [vmem:[#allocation2 + $0x50] ss:$8 sps:$4 sm:$0xff]   ;;  %v4342_v32 = vld [vmem:[#allocation2 + $0x64] ss:$8 sps:$4 sm:$0xff]   ;;  %s768_s26 = scalar_lea.vmem %s5868_s19, %s3941_s1 }
  0x8f   : > { %s761_s27 = scalar_lea.vmem %s5907_s17, %s3941_s1  ;;  %968 = vmatpush1.bf16.msra.mxu0 %v4329_v23  ;;  %v4344_v34 = vld [vmem:[#allocation2 + $0x60] ss:$8 sps:$4 sm:$0xff]   ;;  %v4345_v35 = vld [vmem:[#allocation2 + $0x74] ss:$8 sps:$4 sm:$0xff]   ;;  %v4347_v36 = vld [vmem:[#allocation2 + $0x70] ss:$8 sps:$4 sm:$0xff]  }
  0x90   : > { %v5010_v0 = vld [vmem:[%s761_s27] sm:$0xff]  ;;  %v5012_v1 = vld [vmem:[%s761_s27 + $0x10] sm:$0xff]  ;;  %v5014_v2 = vld [vmem:[%s761_s27 + $0x8] sm:$0xff]  ;;  %969 = vmatprep.subr.bf16.mxu0 %v4330_v24  ;;  %s5910_s23 = sld [smem:[#allocation17_spill]]  ;;  %s5911_s25 = sld [smem:[#allocation19_spill]]  ;;  %vm4738_vm0 = vmmov 0  }
  0x91   : > { %790 = vadd.xlane.f32.xlu0 %v5010_v0  ;;  %794 = vadd.xlane.f32.xlu1 %v5012_v1  ;;  %v5018_v3 = vld [vmem:[%s761_s27 + $0x18] sm:$0xff]  ;;  %s4740_s2 = smov 96   ;;  %vm1777_vm1 = vcmask 261120   ;;  %s4741_s28 = smov 32   ;;  %vm2154_vm2 = vcmask 130048   ;;  %vm2839_vm3 = vcmask 523264  }
  0x92   : > { %v3818_v51 = vld [vmem:[%s5908_s21] ss:$0 sm:$0xff]  ;;  %v4362_v23 = vld [vmem:[#allocation4 + $0x78] sm:$0xff]   ;;  %s4739_s21 = smov 64   ;;  %vm2844_vm4 = vcmask 785408   ;;  %s5912_s3 = sld [smem:[#allocation20_spill]] }
  0x93   : > { %970 = vmatpush1.bf16.msra.mxu0 %v4332_v25  ;;  %v3819_v56 = vld [vmem:[%s5909_s5] ss:$0 sm:$0xff]  ;;  %v4363_v24 = vld [vmem:[#allocation4 + $0x38] sm:$0xff]   ;;  %v875_v25 = vlaneseq  ;;  %s3943_s5 = sshll.u32 %s5919_s4, 3  ;;  %p777_p1 = scmp.lt.s32.totalorder %s4863_s30, 1 }
  0x94   : > { %971 = vmatprep.subr.bf16.mxu0 %v4333_v26  ;;  %s5915_s24 = sld [smem:[#allocation23_spill]]  ;;  %s5916_s17 = sld [smem:[#allocation24_spill]] }
  0x95   : > { %792 = vadd.xlane.f32.xlu0 %v5014_v2  ;;  %796 = vadd.xlane.f32.xlu1 %v5018_v3  ;;  %v5045_v26 = vshrl.u32 %v875_v25, 7  ;;  %s5921_s30 = smov (!%p777_p1, %s4863_s30), 1 }
  0x97   : > { %972 = vmatpush1.bf16.msra.mxu0 %v4335_v27  ;;  %v5048_v27 = vsub.s32 0, %v5045_v26  ;;  %vm3294_vm5 = vcmp.lt.s32.totalorder %v5045_v26, 3  ;;  %vm3339_vm6 = vcmp.lt.s32.totalorder %v5045_v26, 2  ;;  %vm3380_vm7 = vcmp.lt.s32.totalorder %v5045_v26, 1 }
  0x98   : > { %973 = vmatprep.subr.bf16.mxu0 %v4336_v28  ;;  %v871_v28 = vld [vmem:[%s5910_s23] sm:$0x3]  ;;  %vm3433_vm8 = vcmp.lt.s32.totalorder %v5045_v26, 7  ;;  %vm3478_vm9 = vcmp.lt.s32.totalorder %v5045_v26, 6  ;;  %vm3519_vm10 = vcmp.lt.s32.totalorder %v5045_v26, 5  ;;  %s5914_s23 = sld [smem:[#allocation22_spill]] }
  0x9a   : > { %s782_s27 = scalar_lea.vmem %s5916_s17, %s5921_s30 }
  0x9b   : > { %974 = vmatpush1.bf16.msra.mxu0 %v4338_v29  ;;  %v5054_v29 = vsub.s32 1, %v5045_v26 }
  0x9c   : > { %975 = vmatprep.subr.bf16.mxu0 %v4339_v30  ;;  %v878_v30 = vrot.slane %v871_v28, %v5048_v27 }
  0x9f   : > { %976 = vmatpush1.bf16.msra.mxu0 %v4341_v31  ;;  %v882_v31 = vrot.slane %v871_v28, %v5054_v29 }
  0xa0   : > { %977 = vmatprep.subr.bf16.mxu0 %v4342_v32 }
  0xa3   : > { %978 = vmatpush1.bf16.msra.mxu0 %v4344_v34 }
  0xa4   : > { %979 = vmatprep.subr.bf16.mxu0 %v4345_v35 }
  0xa7   : > { %980 = vmatpush1.bf16.msra.mxu0 %v4347_v36 }
 0x11e   : > { %v791_v7 = vpop.xlane.xlu0 %790  ;;  %v795_v8 = vpop.xlane.xlu1 %794 }
 0x11f   : > { %v799_v9 = vmul.f32 0.0078125, %v791_v7  ;;  %v801_v10 = vmul.f32 0.0078125, %v795_v8 }
 0x121   : > { %v803_v11 = vsub.f32 %v5010_v0, %v799_v9  ;;  %v5024_v12 = vsub.f32 %v5012_v1, %v801_v10  ;;  %v4348_v9 = vld [vmem:[#allocation4 + $0x40] sm:$0xff]  }
 0x122   : > { %v793_v13 = vpop.xlane.xlu0 %792  ;;  %v797_v14 = vpop.xlane.xlu1 %796  ;;  %v4349_v10 = vld [vmem:[#allocation4] sm:$0xff]   ;;  %3959 = vmatprep.subr.bf16.mxu1 %v4348_v9 }
 0x123   : > { %v800_v15 = vmul.f32 0.0078125, %v793_v13  ;;  %v807_v16 = vmul.f32 %v803_v11, %v803_v11  ;;  %v802_v17 = vmul.f32 0.0078125, %v797_v14  ;;  %v809_v20 = vmul.f32 %v5024_v12, %v5024_v12  ;;  %3960 = vmatpush3.bf16.msra.mxu1 %v4349_v10  ;;  %v4352_v13 = vld [vmem:[#allocation4 + $0x50] sm:$0xff]  }
 0x124   : > { %v4353_v14 = vld [vmem:[#allocation4 + $0x10] sm:$0xff]  }
 0x125   : > { %v804_v18 = vsub.f32 %v5014_v2, %v800_v15  ;;  %811 = vadd.xlane.f32.xlu0 %v807_v16  ;;  %v5028_v19 = vsub.f32 %v5018_v3, %v802_v17  ;;  %v4354_v15 = vld [vmem:[#allocation4 + $0x58] sm:$0xff]   ;;  %v4356_v17 = vld [vmem:[#allocation4 + $0x60] sm:$0xff]  }
 0x126   : > { %v4355_v16 = vld [vmem:[#allocation4 + $0x18] sm:$0xff]  }
 0x127   : > { %v808_v21 = vmul.f32 %v804_v18, %v804_v18  ;;  %v810_v22 = vmul.f32 %v5028_v19, %v5028_v19 }
 0x129   : > { %815 = vadd.xlane.f32.xlu0 %v809_v20  ;;  %813 = vadd.xlane.f32.xlu1 %v808_v21  ;;  %v4359_v20 = vld [vmem:[#allocation4 + $0x28] sm:$0xff]   ;;  %v4360_v21 = vld [vmem:[#allocation4 + $0x70] sm:$0xff]  }
 0x12d   : > { %817 = vadd.xlane.f32.xlu1 %v810_v22  ;;  %v4361_v22 = vld [vmem:[#allocation4 + $0x30] sm:$0xff]  }
 0x1b2   : > { %v812_v37 = vpop.xlane.xlu0 %811 }
 0x1b3   : > { %v819_v38 = vmul.f32 0.0078125, %v812_v37 }
 0x1b5   : > { %v823_v39 = vadd.f32 1e-05, %v819_v38 }
 0x1b6   : > { %v814_v40 = vpop.xlane.xlu1 %813  ;;  %v816_v41 = vpop.xlane.xlu0 %815 }
 0x1b7   : > { %4428 = vrsqrt.f32 %v823_v39  ;;  %v820_v42 = vmul.f32 0.0078125, %v814_v40  ;;  %v821_v43 = vmul.f32 0.0078125, %v816_v41 }
 0x1b9   : > { %v824_v44 = vadd.f32 1e-05, %v820_v42  ;;  %v825_v45 = vadd.f32 1e-05, %v821_v43 }
 0x1ba   : > { %v818_v46 = vpop.xlane.xlu1 %817 }
 0x1bb   : > { %4430 = vrsqrt.f32 %v824_v44  ;;  %v822_v47 = vmul.f32 0.0078125, %v818_v46 }
 0x1bc   : > { %4432 = vrsqrt.f32 %v825_v45 }
 0x1bd   : > { %v826_v48 = vadd.f32 1e-05, %v822_v47 }
 0x1bf   : > { %4434 = vrsqrt.f32 %v826_v48 }
 0x1c1   : > { %v4429_v49 = vpop.eup %4428 }
 0x1c2   : > { %v831_v50 = vmul.f32 %v4429_v49, %v803_v11  ;;  %v4350_v11 = vld [vmem:[#allocation4 + $0x48] sm:$0xff]  }
 0x1c3   : > { %3961 = vmatprep.subr.bf16.mxu1 %v4350_v11 }
 0x1c4   : > { %v841_v54 = vmul.f32 %v3818_v51, %v831_v50 }
 0x1c5   : > { %v4431_v52 = vpop.eup %4430 }
 0x1c6   : > { %v832_v53 = vmul.f32 %v4431_v52, %v804_v18  ;;  %v4433_v55 = vpop.eup %4432  ;;  %v851_v59 = vadd.f32 %v3819_v56, %v841_v54  ;;  %v4357_v18 = vld [vmem:[#allocation4 + $0x20] sm:$0xff]  }
 0x1c7   : > { %v833_v61 = vmul.f32 %v4433_v55, %v5024_v12  ;;  %v4351_v12 = vld [vmem:[#allocation4 + $0x8] sm:$0xff]  }
 0x1c8   : > { %v842_v57 = vmul.f32 %v3818_v51, %v832_v53  ;;  %3962 = vmatpush3.bf16.msra.mxu1 %v4351_v12 }
 0x1c9   : > { %v4435_v58 = vpop.eup %4434  ;;  %v843_v5 = vmul.f32 %v3818_v51, %v833_v61  ;;  %3963 = vmatprep.subr.bf16.mxu1 %v4352_v13 }
 0x1ca   : > { %v852_v60 = vadd.f32 %v3819_v56, %v842_v57  ;;  %v834_v62 = vmul.f32 %v4435_v58, %v5028_v19  ;;  %v4358_v19 = vld [vmem:[#allocation4 + $0x68] sm:$0xff]  }
 0x1cb   : > { %v853_v7 = vadd.f32 %v3819_v56, %v843_v5 }
 0x1cc   : > { %v872_v63 = vpack.c.bf16 %v852_v60, %v851_v59  ;;  %v844_v4 = vmul.f32 %v3818_v51, %v834_v62  ;;  %3964 = vmatpush3.bf16.msra.mxu1 %v4353_v14 }
 0x1cd   : > { %3965 = vmatprep.subr.bf16.mxu1 %v4354_v15 }
 0x1ce   : > { %998 = vmatmul.mubr.bf16.vlgmr.msra.gmra.mrb[0].mxu0 %v872_v63  ;;  %v854_v6 = vadd.f32 %v3819_v56, %v844_v4 }
 0x1cf   : > { %1007 = vmatprep.mubr.bf16.mxu0 %v4736_v33 }
 0x1d0   : > { %v873_v8 = vpack.c.bf16 %v854_v6, %v853_v7  ;;  %3966 = vmatpush3.bf16.msra.mxu1 %v4355_v16 }
 0x1d1   : > { %3967 = vmatprep.subr.bf16.mxu1 %v4356_v17 }
 0x1d4   : > { %3968 = vmatpush3.bf16.msra.mxu1 %v4357_v18 }
 0x1d5   : > { %3969 = vmatprep.subr.bf16.mxu1 %v4358_v19 }
 0x1d6   : > { %1008 = vmatmul.mubr.bf16.gmra.mrb[4].mxu0 %v873_v8 }
 0x1d7   : > { %1547 = vmatprep.mubr.bf16.mxu0 %v4736_v33 }
 0x1d8   : > { %3970 = vmatpush3.bf16.msra.mxu1 %v4359_v20 }
 0x1d9   : > { %3971 = vmatprep.subr.bf16.mxu1 %v4360_v21 }
 0x1dc   : > { %3972 = vmatpush3.bf16.msra.mxu1 %v4361_v22 }
 0x1dd   : > { %3973 = vmatprep.subr.bf16.mxu1 %v4362_v23 }
 0x1e0   : > { %3974 = vmatpush3.bf16.msra.mxu1 %v4363_v24 }
 0x2a1   : > { %v999_v32 = vpop.f32.mrb[0].mxu0 }
 0x2a2   : > { %v1000_v34 = vadd.f32 %v999_v32, %v878_v30  ;;  %v1001_v35 = vpop.f32.mrb[1].mxu0 }
 0x2a3   : > { %v1002_v36 = vadd.f32 %v1001_v35, %v882_v31  ;;  %v1003_v37 = vpop.f32.mrb[2].mxu0 }
 0x2a4   : > { %v3836_v38 = vmul.f32 -1.442695, %v1000_v34  ;;  %v1004_v39 = vadd.f32 %v1003_v37, %v878_v30  ;;  %v1005_v40 = vpop.f32.mrb[3].mxu0 }
 0x2a5   : > { %v3837_v41 = vmul.f32 -1.442695, %v1002_v36  ;;  %v1006_v42 = vadd.f32 %v1005_v40, %v882_v31 }
 0x2a6   : > { %4436 = vpow2.f32 %v3836_v38  ;;  %v3838_v43 = vmul.f32 -1.442695, %v1004_v39 }
 0x2a7   : > { %4438 = vpow2.f32 %v3837_v41  ;;  %v3839_v44 = vmul.f32 -1.442695, %v1006_v42 }
 0x2a8   : > { %4440 = vpow2.f32 %v3838_v43 }
 0x2a9   : > { %4442 = vpow2.f32 %v3839_v44  ;;  %v1009_v45 = vpop.f32.mrb[4].mxu0 }
 0x2aa   : > { %v1010_v46 = vadd.f32 %v1009_v45, %v878_v30  ;;  %v1011_v47 = vpop.f32.mrb[5].mxu0 }
 0x2ab   : > { %v1012_v48 = vadd.f32 %v1011_v47, %v882_v31  ;;  %v1013_v49 = vpop.f32.mrb[6].mxu0 }
 0x2ac   : > { %v3840_v50 = vmul.f32 -1.442695, %v1010_v46  ;;  %v1014_v51 = vadd.f32 %v1013_v49, %v878_v30  ;;  %v1015_v52 = vpop.f32.mrb[7].mxu0 }
 0x2ad   : > { %v3841_v53 = vmul.f32 -1.442695, %v1012_v48  ;;  %v1016_v54 = vadd.f32 %v1015_v52, %v882_v31 }
 0x2ae   : > { %4444 = vpow2.f32 %v3840_v50  ;;  %v3842_v55 = vmul.f32 -1.442695, %v1014_v51 }
 0x2af   : > { %4446 = vpow2.f32 %v3841_v53  ;;  %v3843_v56 = vmul.f32 -1.442695, %v1016_v54 }
 0x2b0   : > { %v4437_v57 = vpop.eup %4436  ;;  %4448 = vpow2.f32 %v3842_v55 }
 0x2b1   : > { %v4439_v58 = vpop.eup %4438  ;;  %v1042_v59 = vadd.f32 1.0, %v4437_v57  ;;  %4450 = vpow2.f32 %v3843_v56 }
 0x2b2   : > { %v4441_v60 = vpop.eup %4440  ;;  %v1043_v61 = vadd.f32 1.0, %v4439_v58 }
 0x2b3   : > { %v4443_v62 = vpop.eup %4442  ;;  %4452 = vrcp.f32 %v1042_v59  ;;  %v1044_v63 = vadd.f32 1.0, %v4441_v60 }
 0x2b4   : > { %4454 = vrcp.f32 %v1043_v61  ;;  %v1045_v4 = vadd.f32 1.0, %v4443_v62  ;;  %v4366_v61 = vld [vmem:[%s5858_s9 + $0x4] ss:$12 sps:$4 sm:$0xff]  }
 0x2b5   : > { %4456 = vrcp.f32 %v1044_v63  ;;  %1515 = vmatprep.subr.bf16.mxu0 %v4366_v61 }
 0x2b6   : > { %4458 = vrcp.f32 %v1045_v4 }
 0x2b8   : > { %v4445_v5 = vpop.eup %4444 }
 0x2b9   : > { %v4447_v6 = vpop.eup %4446  ;;  %v1046_v7 = vadd.f32 1.0, %v4445_v5 }
 0x2ba   : > { %v4449_v8 = vpop.eup %4448  ;;  %v1047_v9 = vadd.f32 1.0, %v4447_v6 }
 0x2bb   : > { %v4451_v10 = vpop.eup %4450  ;;  %4460 = vrcp.f32 %v1046_v7  ;;  %v1048_v11 = vadd.f32 1.0, %v4449_v8 }
 0x2bc   : > { %4462 = vrcp.f32 %v1047_v9  ;;  %v1049_v12 = vadd.f32 1.0, %v4451_v10 }
 0x2bd   : > { %v4453_v13 = vpop.eup %4452  ;;  %4464 = vrcp.f32 %v1048_v11 }
 0x2be   : > { %v4455_v14 = vpop.eup %4454  ;;  %4466 = vrcp.f32 %v1049_v12  ;;  %v1066_v17 = vmul.f32 %v4453_v13, %v1000_v34 }
 0x2bf   : > { %v4457_v15 = vpop.eup %4456  ;;  %v1067_v19 = vmul.f32 %v4455_v14, %v1002_v36  ;;  %v3844_v36 = vld [vmem:[%s5911_s25] ss:$0 sm:$0xff]  ;;  %s779_s25 = scalar_lea.vmem %s5915_s24, %s5921_s30 }
 0x2c0   : > { %v4459_v16 = vpop.eup %4458  ;;  %v1068_v18 = vmul.f32 %v4457_v15, %v1004_v39 }
 0x2c1   : > { %v1069_v20 = vmul.f32 %v4459_v16, %v1006_v42 }
 0x2c2   : > { %v1107_v21 = vpack.c.bf16 %v1068_v18, %v1066_v17  ;;  %v4372_v18 = vld [vmem:[%s5858_s9 + $0x34] ss:$12 sps:$4 sm:$0xff]  }
 0x2c3   : > { %v1108_v22 = vpack.c.bf16 %v1069_v20, %v1067_v19  ;;  %v4373_v19 = vld [vmem:[%s5858_s9 + $0x8] ss:$12 sps:$4 sm:$0xff]   ;;  %v4370_v20 = vld [vmem:[%s5858_s9 + $0x30] ss:$12 sps:$4 sm:$0xff]  }
 0x2c4   : > { %4039 = vmatprep.subr.bf16.mxu1 %v4373_v19 }
 0x2c5   : > { %v4461_v23 = vpop.eup %4460  ;;  %1245 = vmatprep.mubr.bf16.mxu1 %v1108_v22  ;;  %v4377_v22 = vld [vmem:[%s5858_s9 + $0x20] ss:$12 sps:$4 sm:$0xff]  }
 0x2c6   : > { %v4463_v24 = vpop.eup %4462  ;;  %1246 = vmatmul.mubr.bf16.vlgmr.msra.gmra.mrb[0].mxu1 %v1107_v21  ;;  %v1070_v30 = vmul.f32 %v4461_v23, %v1010_v46  ;;  %v4376_v21 = vld [vmem:[%s5858_s9 + $0x4c] ss:$12 sps:$4 sm:$0xff]   ;;  %v4374_v23 = vld [vmem:[%s5858_s9 + $0x48] ss:$12 sps:$4 sm:$0xff]  }
 0x2c7   : > { %v4465_v25 = vpop.eup %4464  ;;  %v1071_v32 = vmul.f32 %v4463_v24, %v1012_v48  ;;  %4040 = vmatpush3.bf16.msra.mxu1 %v4373_v19  ;;  %v4380_v24 = vld [vmem:[%s5858_s9 + $0x64] ss:$12 sps:$4 sm:$0xff]  }
 0x2c8   : > { %v4467_v28 = vpop.eup %4466  ;;  %v1072_v31 = vmul.f32 %v4465_v25, %v1014_v51  ;;  %4041 = vmatprep.subr.bf16.mxu1 %v4377_v22  ;;  %v4381_v25 = vld [vmem:[%s5858_s9 + $0x38] ss:$12 sps:$4 sm:$0xff]  }
 0x2c9   : > { %v1073_v35 = vmul.f32 %v4467_v28, %v1016_v54  ;;  %v4378_v28 = vld [vmem:[%s5858_s9 + $0x60] ss:$12 sps:$4 sm:$0xff]  }
 0x2ca   : > { %v1109_v37 = vpack.c.bf16 %v1072_v31, %v1070_v30  ;;  %v4384_v30 = vld [vmem:[%s5858_s9 + $0x7c] ss:$12 sps:$4 sm:$0xff]  }
 0x2cb   : > { %v1110_v38 = vpack.c.bf16 %v1073_v35, %v1071_v32  ;;  %4042 = vmatpush3.bf16.msra.mxu1 %v4377_v22  ;;  %v4385_v31 = vld [vmem:[%s5858_s9 + $0x50] ss:$12 sps:$4 sm:$0xff]   ;;  %v4382_v32 = vld [vmem:[%s5858_s9 + $0x78] ss:$12 sps:$4 sm:$0xff]   ;;  %v4388_v35 = vld [vmem:[%s5858_s9 + $0x94] ss:$12 sps:$4 sm:$0xff]  }
 0x2cc   : > { %4043 = vmatprep.subr.bf16.mxu1 %v4381_v25 }
 0x2cd   : > { %1253 = vmatprep.mubr.bf16.mxu1 %v1110_v38  ;;  %v4386_v38 = vld [vmem:[%s5858_s9 + $0x90] ss:$12 sps:$4 sm:$0xff]  }
 0x2ce   : > { %1254 = vmatmul.mubr.bf16.gmra.mrb[4].mxu1 %v1109_v37  ;;  %v4389_v37 = vld [vmem:[%s5858_s9 + $0x68] ss:$12 sps:$4 sm:$0xff]  }
 0x2cf   : > { %4044 = vmatpush3.bf16.msra.mxu1 %v4381_v25 }
 0x2d0   : > { %4045 = vmatprep.subr.bf16.mxu1 %v4385_v31 }
 0x2d3   : > { %4046 = vmatpush3.bf16.msra.mxu1 %v4385_v31 }
 0x2d4   : > { %4047 = vmatprep.subr.bf16.mxu1 %v4389_v37 }
 0x2d7   : > { %4048 = vmatpush3.bf16.msra.mxu1 %v4389_v37 }
 0x399   : > { %v3975_v34 = vpop.f32.mrb[0].mxu1 }
 0x39a   : > { %v3976_v39 = vpop.f32.mrb[1].mxu1 }
 0x39b   : > { %v3977_v40 = vadd.f32 %v3976_v39, %v3975_v34  ;;  %v3978_v41 = vpop.f32.mrb[2].mxu1  ;;  %v4390_v34 = vld [vmem:[%s5858_s9 + $0xa8] ss:$12 sps:$4 sm:$0xff]   ;;  %v4393_v39 = vld [vmem:[%s5858_s9 + $0x80] ss:$12 sps:$4 sm:$0xff]  }
 0x39c   : > { %v3979_v42 = vpop.f32.mrb[3].mxu1  ;;  %4049 = vmatprep.subr.bf16.mxu1 %v4393_v39 }
 0x39d   : > { %v1248_v43 = vadd.f32 %v3977_v40, %v3844_v36  ;;  %v3980_v44 = vadd.f32 %v3979_v42, %v3978_v41  ;;  %4050 = vmatpush3.bf16.msra.mxu1 %v4393_v39  ;;  %v4394_v40 = vld [vmem:[%s5858_s9 + $0x98] ss:$12 sps:$4 sm:$0xff]   ;;  %v4395_v41 = vld [vmem:[%s5858_s9 + $0xb0] ss:$12 sps:$4 sm:$0xff]  }
 0x39e   : > { %4051 = vmatprep.subr.bf16.mxu1 %v4394_v40 }
 0x39f   : > { %v1262_v45 = vmul.f32 0.5, %v1248_v43  ;;  %v1251_v46 = vadd.f32 %v3980_v44, %v3844_v36 }
 0x3a1   : > { %v1263_v47 = vmul.f32 0.5, %v1251_v46  ;;  %v3981_v48 = vpop.f32.mrb[4].mxu1  ;;  %v5062_v49 = vadd.f32 %v1262_v45, %v5010_v0  ;;  %4052 = vmatpush3.bf16.msra.mxu1 %v4394_v40 }
 0x3a2   : > { %v3982_v50 = vpop.f32.mrb[5].mxu1  ;;  %4053 = vmatprep.subr.bf16.mxu1 %v4395_v41 }
 0x3a3   : > { %v3983_v51 = vadd.f32 %v3982_v50, %v3981_v48  ;;  %1272 = vadd.xlane.f32.xlu0 %v5062_v49  ;;  %v3984_v52 = vpop.f32.mrb[6].mxu1  ;;  %v5066_v53 = vadd.f32 %v1263_v47, %v5014_v2  ;;  %v4364_v2 = vld [vmem:[%s5858_s9] ss:$12 sps:$4 sm:$0xff]  }
 0x3a4   : > { %v3985_v54 = vpop.f32.mrb[7].mxu1  ;;  %1516 = vmatpush1.bf16.msra.mxu0 %v4364_v2 }
 0x3a5   : > { %v1256_v55 = vadd.f32 %v3983_v51, %v3844_v36  ;;  %v3986_v56 = vadd.f32 %v3985_v54, %v3984_v52  ;;  %1274 = vadd.xlane.f32.xlu1 %v5066_v53  ;;  %4054 = vmatpush3.bf16.msra.mxu1 %v4395_v41 }
 0x3a7   : > { %v1264_v57 = vmul.f32 0.5, %v1256_v55  ;;  %v1259_v58 = vadd.f32 %v3986_v56, %v3844_v36  ;;  %v4392_v36 = vld [vmem:[%s5858_s9 + $0xac] ss:$12 sps:$4 sm:$0xff]  }
 0x3a9   : > { %v1265_v59 = vmul.f32 0.5, %v1259_v58  ;;  %v5070_v60 = vadd.f32 %v1264_v57, %v5012_v1  ;;  %v4369_v1 = vld [vmem:[%s5858_s9 + $0x1c] ss:$12 sps:$4 sm:$0xff]   ;;  %v3861_v57 = vld [vmem:[%s5856_s7] ss:$0 sm:$0xff] }
 0x3aa   : > { %1517 = vmatprep.subr.bf16.mxu0 %v4369_v1  ;;  %v3862_v1 = vld [vmem:[%s5857_s8] ss:$0 sm:$0xff] }
 0x3ab   : > { %1276 = vadd.xlane.f32.xlu0 %v5070_v60  ;;  %v5074_v0 = vadd.f32 %v1265_v59, %v5018_v3  ;;  %v4367_v3 = vld [vmem:[%s5858_s9 + $0x18] ss:$12 sps:$4 sm:$0xff]  }
 0x3ac   : > { %1518 = vmatpush1.bf16.msra.mxu0 %v4367_v3 }
 0x3ad   : > { %1278 = vadd.xlane.f32.xlu1 %v5074_v0  ;;  %1519 = vmatprep.subr.bf16.mxu0 %v4372_v18 }
 0x3b0   : > { %1520 = vmatpush1.bf16.msra.mxu0 %v4370_v20 }
 0x3b1   : > { %1521 = vmatprep.subr.bf16.mxu0 %v4376_v21 }
 0x3b4   : > { %1522 = vmatpush1.bf16.msra.mxu0 %v4374_v23 }
 0x3b5   : > { %1523 = vmatprep.subr.bf16.mxu0 %v4380_v24  ;;  %v1382_v24 = vsub.s32 2, %v5045_v26 }
 0x3b8   : > { %1524 = vmatpush1.bf16.msra.mxu0 %v4378_v28 }
 0x3b9   : > { %1525 = vmatprep.subr.bf16.mxu0 %v4384_v30 }
 0x3bc   : > { %1526 = vmatpush1.bf16.msra.mxu0 %v4382_v32 }
 0x3bd   : > { %1527 = vmatprep.subr.bf16.mxu0 %v4388_v35 }
 0x3c0   : > { %1528 = vmatpush1.bf16.msra.mxu0 %v4386_v38 }
 0x3c1   : > { %1529 = vmatprep.subr.bf16.mxu0 %v4392_v36 }
 0x3c4   : > { %1530 = vmatpush1.bf16.msra.mxu0 %v4390_v34 }
 0x430   : > { %v1273_v62 = vpop.xlane.xlu0 %1272 }
 0x431   : > { %v1280_v63 = vmul.f32 0.0078125, %v1273_v62 }
 0x432   : > { %v1275_v4 = vpop.xlane.xlu1 %1274 }
 0x433   : > { %v5090_v5 = vsub.f32 %v5062_v49, %v1280_v63  ;;  %v1281_v6 = vmul.f32 0.0078125, %v1275_v4 }
 0x435   : > { %v5093_v7 = vsub.f32 %v5066_v53, %v1281_v6  ;;  %v1288_v8 = vmul.f32 %v5090_v5, %v5090_v5 }
 0x437   : > { %1292 = vadd.xlane.f32.xlu0 %v1288_v8  ;;  %v1289_v9 = vmul.f32 %v5093_v7, %v5093_v7 }
 0x438   : > { %v1277_v10 = vpop.xlane.xlu0 %1276 }
 0x439   : > { %v1282_v11 = vmul.f32 0.0078125, %v1277_v10  ;;  %1294 = vadd.xlane.f32.xlu1 %v1289_v9 }
 0x43a   : > { %v1279_v12 = vpop.xlane.xlu1 %1278 }
 0x43b   : > { %v5100_v13 = vsub.f32 %v5070_v60, %v1282_v11  ;;  %v1283_v14 = vmul.f32 0.0078125, %v1279_v12 }
 0x43d   : > { %v5103_v15 = vsub.f32 %v5074_v0, %v1283_v14  ;;  %v1290_v16 = vmul.f32 %v5100_v13, %v5100_v13 }
 0x43f   : > { %1296 = vadd.xlane.f32.xlu0 %v1290_v16  ;;  %v1291_v17 = vmul.f32 %v5103_v15, %v5103_v15  ;;  %v4737_v16 = vmov 0.0  }
 0x440   : > { %4059 = vmatprep.subr.bf16.mxu1 %v4737_v16  ;;  %4077 = vmatprep.subr.bf16.mxu0 %v4737_v16 }
 0x441   : > { %1298 = vadd.xlane.f32.xlu1 %v1291_v17 }
 0x4c4   : > { %v1293_v42 = vpop.xlane.xlu0 %1292 }
 0x4c5   : > { %v1300_v43 = vmul.f32 0.0078125, %v1293_v42 }
 0x4c6   : > { %v1295_v44 = vpop.xlane.xlu1 %1294 }
 0x4c7   : > { %v1304_v45 = vadd.f32 1e-05, %v1300_v43  ;;  %v1301_v46 = vmul.f32 0.0078125, %v1295_v44 }
 0x4c9   : > { %4468 = vrsqrt.f32 %v1304_v45  ;;  %v1305_v47 = vadd.f32 1e-05, %v1301_v46 }
 0x4cb   : > { %4470 = vrsqrt.f32 %v1305_v47 }
 0x4cc   : > { %v1297_v48 = vpop.xlane.xlu0 %1296 }
 0x4cd   : > { %v1302_v50 = vmul.f32 0.0078125, %v1297_v48 }
 0x4ce   : > { %v1299_v51 = vpop.xlane.xlu1 %1298 }
 0x4cf   : > { %v1306_v52 = vadd.f32 1e-05, %v1302_v50  ;;  %v1303_v54 = vmul.f32 0.0078125, %v1299_v51 }
 0x4d1   : > { %4472 = vrsqrt.f32 %v1306_v52  ;;  %v1307_v55 = vadd.f32 1e-05, %v1303_v54 }
 0x4d3   : > { %v4469_v56 = vpop.eup %4468  ;;  %4474 = vrsqrt.f32 %v1307_v55 }
 0x4d4   : > { %v1312_v58 = vmul.f32 %v4469_v56, %v5090_v5 }
 0x4d5   : > { %v4471_v59 = vpop.eup %4470 }
 0x4d6   : > { %v1322_v2 = vmul.f32 %v3861_v57, %v1312_v58  ;;  %v1313_v61 = vmul.f32 %v4471_v59, %v5093_v7 }
 0x4d8   : > { %v1323_v3 = vmul.f32 %v3861_v57, %v1313_v61  ;;  %v1332_v62 = vadd.f32 %v3862_v1, %v1322_v2 }
 0x4da   : > { %v1333_v63 = vadd.f32 %v3862_v1, %v1323_v3 }
 0x4db   : > { %v4473_v4 = vpop.eup %4472 }
 0x4dc   : > { %v1369_v6 = vpack.c.bf16 %v1333_v63, %v1332_v62  ;;  %v1314_v8 = vmul.f32 %v4473_v4, %v5100_v13  ;;  %v1368_v13 = vld [vmem:[%s5859_s10] sm:$0x7] }
 0x4dd   : > { %v4475_v9 = vpop.eup %4474  ;;  %v1379_v18 = vrot.slane %v1368_v13, %v5054_v29  ;;  %v1383_v38 = vrot.slane %v1368_v13, %v1382_v24 }
 0x4de   : > { %1548 = vmatmul.mubr.bf16.vlgmr.msra.gmra.mrb[8].mxu0 %v1369_v6  ;;  %4055 = vmatprep.mubr.bf16.mxu1 %v1369_v6  ;;  %v1315_v5 = vmul.f32 %v4475_v9, %v5103_v15  ;;  %v1324_v10 = vmul.f32 %v3861_v57, %v1314_v8  ;;  %v1375_v15 = vrot.slane %v1368_v13, %v5048_v27 }
 0x4df   : > { %1557 = vmatprep.mubr.bf16.mxu0 %v4736_v33 }
 0x4e0   : > { %v1325_v7 = vmul.f32 %v3861_v57, %v1315_v5  ;;  %v1334_v11 = vadd.f32 %v3862_v1, %v1324_v10 }
 0x4e2   : > { %v1335_v12 = vadd.f32 %v3862_v1, %v1325_v7 }
 0x4e4   : > { %v1370_v14 = vpack.c.bf16 %v1335_v12, %v1334_v11 }
 0x4e6   : > { %1558 = vmatmul.mubr.bf16.gmra.mrb[12].mxu0 %v1370_v14  ;;  %4056 = vmatmul.mubr.bf16.vlgmr.msra.gmra.mrb[8].mxu1 %v1370_v14 }
 0x4e7   : > { %4061 = vmatprep.mubr.msk.bf16.mxu1 %vm4738_vm0, %v4737_v16  ;;  %4079 = vmatprep.mubr.msk.bf16.mxu0 %vm4738_vm0, %v4737_v16 }
 0x5b1   : > { %v1549_v17 = vpop.f32.mrb[8].mxu0 }
 0x5b2   : > { %v5191_v19 = vadd.f32 %v1549_v17, %v1375_v15  ;;  %v1551_v20 = vpop.f32.mrb[9].mxu0 }
 0x5b3   : > { %v1553_v21 = vpop.f32.mrb[10].mxu0  ;;  %v1552_v25 = vadd.f32 %v1551_v20, %v1379_v18 }
 0x5b4   : > { %v5193_v22 = vadd.f32 %v1553_v21, %v1375_v15  ;;  %v1555_v23 = vpop.f32.mrb[11].mxu0  ;;  %1633 = vrot.lane.b32.xlu0 %v5191_v19, %s4739_s21  ;;  %1621 = vrot.lane.b32.xlu1 %v5191_v19, %s4740_s2  ;;  %v1657_v30 = vmul.f32 0.17677669, %v5191_v19 }
 0x5b5   : > { %v1556_v28 = vadd.f32 %v1555_v23, %v1379_v18 }
 0x5b6   : > { %v1658_v31 = vmul.f32 0.17677669, %v5193_v22 }
 0x5b7   : > { %v4234_v32 = vpack.i.bf16 %v1556_v28, %v1552_v25  ;;  %v1721_v35 = vpack.c.bf16 %v1556_v28, %v1552_v25 }
 0x5b8   : > { %v1673_v37 = vpack.c.bf16 %v1658_v31, %v1657_v30  ;;  %1623 = vrot.lane.b32.xlu1 %v5193_v22, %s4740_s2 }
 0x5b9   : > { %4235 = vrot.lane.b32.xlu0 %v4234_v32, %s4740_s2  ;;  %v1559_v34 = vpop.f32.mrb[12].mxu0  ;;  %v4057_v36 = vpop.f32.mrb[8].mxu1  ;;  %v1782_v39 = vsel %vm1777_vm1, %v1721_v35, 0 }
 0x5ba   : > { %v1560_v40 = vadd.f32 %v1559_v34, %v1375_v15  ;;  %v1561_v41 = vpop.f32.mrb[13].mxu0  ;;  %v1602_v42 = vpop.f32.mrb[9].mxu1  ;;  %4060 = vmatpush3.bf16.xpose.msra.mxu1 %v1782_v39  ;;  %v5209_v45 = vadd.f32 %v4057_v36, %v1383_v38 }
 0x5bb   : > { %v1563_v43 = vpop.f32.mrb[14].mxu0  ;;  %v4058_v44 = vpop.f32.mrb[10].mxu1  ;;  %4065 = vmatprep.subr.bf16.mxu1 %v4737_v16  ;;  %v1562_v46 = vadd.f32 %v1561_v41, %v1379_v18  ;;  %v5213_v54 = vadd.f32 %v1602_v42, %v1383_v38 }
 0x5bc   : > { %v1564_v47 = vadd.f32 %v1563_v43, %v1375_v15  ;;  %v5211_v48 = vadd.f32 %v4058_v44, %v1383_v38  ;;  %v1565_v50 = vpop.f32.mrb[15].mxu0  ;;  %v1605_v51 = vpop.f32.mrb[11].mxu1  ;;  %v1659_v52 = vmul.f32 0.17677669, %v1560_v40 }
 0x5bd   : > { %v1566_v55 = vadd.f32 %v1565_v50, %v1379_v18  ;;  %v5215_v56 = vadd.f32 %v1605_v51, %v1383_v38  ;;  %4240 = vrot.lane.b32.xlu0 %v4234_v32, %s4739_s21 }
 0x5be   : > { %v1660_v57 = vmul.f32 0.17677669, %v1564_v47  ;;  %1627 = vrot.lane.b32.xlu1 %v1564_v47, %s4740_s2  ;;  %v5221_v58 = vpack.i.bf16 %v5211_v48, %v5209_v45  ;;  %v1770_v59 = vpack.c.bf16 %v5211_v48, %v5209_v45 }
 0x5bf   : > { %v4244_v2 = vpack.i.bf16 %v1566_v55, %v1562_v46  ;;  %v1722_v61 = vpack.c.bf16 %v1566_v55, %v1562_v46  ;;  %v5227_v3 = vpack.i.bf16 %v5215_v56, %v5213_v54  ;;  %v1769_v62 = vpack.c.bf16 %v5215_v56, %v5213_v54 }
 0x5c0   : > { %v1674_v1 = vpack.c.bf16 %v1660_v57, %v1659_v52 }
 0x5c1   : > { %4062 = vmatmul.mubr.msk.bf16.vlgmr.msra.gmra.mrb[12].mxu1 %vm1777_vm1, %v1673_v37  ;;  %1625 = vrot.lane.b32.xlu0 %v1560_v40, %s4740_s2  ;;  %v1829_v63 = vsel %vm1777_vm1, %v1722_v61, 0 }
 0x5c2   : > { %4245 = vrot.lane.b32.xlu1 %v4244_v2, %s4740_s2  ;;  %4066 = vmatpush3.bf16.xpose.msra.mxu1 %v1829_v63 }
 0x5c3   : > { %4067 = vmatprep.mubr.msk.bf16.mxu1 %vm4738_vm0, %v4737_v16  ;;  %4071 = vmatprep.subr.bf16.mxu1 %v4737_v16 }
 0x5c5   : > { %1637 = vrot.lane.b32.xlu0 %v1560_v40, %s4739_s21 }
 0x5c6   : > { %1635 = vrot.lane.b32.xlu1 %v5193_v22, %s4739_s21 }
 0x5c9   : > { %4255 = vrot.lane.b32.xlu0 %v4234_v32, %s4741_s28  ;;  %4068 = vmatmul.mubr.msk.bf16.vlgmr.msra.gmra.mrb[16].mxu1 %vm1777_vm1, %v1674_v1 }
 0x5ca   : > { %4250 = vrot.lane.b32.xlu1 %v4244_v2, %s4739_s21  ;;  %4073 = vmatprep.mubr.msk.bf16.mxu1 %vm4738_vm0, %v4737_v16 }
 0x5cd   : > { %1645 = vrot.lane.b32.xlu0 %v5191_v19, %s4741_s28 }
 0x5ce   : > { %1639 = vrot.lane.b32.xlu1 %v1564_v47, %s4739_s21 }
 0x5d1   : > { %1649 = vrot.lane.b32.xlu0 %v1560_v40, %s4741_s28 }
 0x5d2   : > { %4260 = vrot.lane.b32.xlu1 %v4244_v2, %s4741_s28 }
 0x5d5   : > { %4275 = vrot.lane.b32.xlu0 %v5227_v3, %s4740_s2 }
 0x5d6   : > { %1647 = vrot.lane.b32.xlu1 %v5193_v22, %s4741_s28 }
 0x5da   : > { %1651 = vrot.lane.b32.xlu1 %v1564_v47, %s4741_s28 }
 0x5de   : > { %4265 = vrot.lane.b32.xlu1 %v5221_v58, %s4740_s2 }
 0x5e2   : > { %4270 = vrot.lane.b32.xlu1 %v5221_v58, %s4739_s21 }
 0x5e6   : > { %4280 = vrot.lane.b32.xlu1 %v5227_v3, %s4739_s21 }
 0x626   : > { %v1622_v4 = vpop.permute.xlu1 %1621  ;;  %v1634_v6 = vpop.permute.xlu0 %1633 }
 0x627   : > { %v1661_v19 = vmul.f32 0.17677669, %v1622_v4  ;;  %v1665_v36 = vmul.f32 0.17677669, %v1634_v6 }
 0x62a   : > { %v1624_v9 = vpop.permute.xlu1 %1623 }
 0x62b   : > { %v4236_v8 = vpop.permute.xlu0 %4235  ;;  %v1662_v17 = vmul.f32 0.17677669, %v1624_v9 }
 0x62c   : > { %v4238_v5 = vunpack.i.h.bf16 %v4236_v8  ;;  %v4237_v10 = vunpack.i.l.bf16 %v4236_v8 }
 0x62d   : > { %v1675_v25 = vpack.c.bf16 %v1662_v17, %v1661_v19 }
 0x62e   : > { %v1723_v7 = vpack.c.bf16 %v4238_v5, %v4237_v10 }
 0x62f   : > { %v4241_v11 = vpop.permute.xlu0 %4240 }
 0x630   : > { %v4243_v12 = vunpack.i.h.bf16 %v4241_v11  ;;  %v4242_v14 = vunpack.i.l.bf16 %v4241_v11  ;;  %v1628_v13 = vpop.permute.xlu1 %1627  ;;  %v1876_v15 = vsel %vm1777_vm1, %v1723_v7, 0 }
 0x631   : > { %4072 = vmatpush3.bf16.xpose.msra.mxu1 %v1876_v15  ;;  %v1664_v42 = vmul.f32 0.17677669, %v1628_v13 }
 0x632   : > { %4083 = vmatprep.subr.bf16.mxu1 %v4737_v16  ;;  %v1725_v20 = vpack.c.bf16 %v4243_v12, %v4242_v14 }
 0x633   : > { %v1626_v18 = vpop.permute.xlu0 %1625 }
 0x634   : > { %v4246_v21 = vpop.permute.xlu1 %4245  ;;  %v1970_v32 = vsel %vm1777_vm1, %v1725_v20, 0  ;;  %v1663_v38 = vmul.f32 0.17677669, %v1626_v18 }
 0x635   : > { %v4248_v22 = vunpack.i.h.bf16 %v4246_v21  ;;  %v4247_v23 = vunpack.i.l.bf16 %v4246_v21 }
 0x636   : > { %v1676_v50 = vpack.c.bf16 %v1664_v42, %v1663_v38 }
 0x637   : > { %v1724_v28 = vpack.c.bf16 %v4248_v22, %v4247_v23  ;;  %v1638_v30 = vpop.permute.xlu0 %1637 }
 0x638   : > { %v1636_v31 = vpop.permute.xlu1 %1635  ;;  %4074 = vmatmul.mubr.msk.bf16.vlgmr.msra.gmra.mrb[20].mxu1 %vm1777_vm1, %v1675_v25  ;;  %v1667_v63 = vmul.f32 0.17677669, %v1638_v30 }
 0x639   : > { %4084 = vmatpush3.bf16.xpose.msra.mxu1 %v1970_v32  ;;  %v1923_v35 = vsel %vm1777_vm1, %v1724_v28, 0  ;;  %4085 = vmatprep.mubr.msk.bf16.mxu1 %vm4738_vm0, %v4737_v16  ;;  %v1666_v37 = vmul.f32 0.17677669, %v1636_v31 }
 0x63a   : > { %4078 = vmatpush3.bf16.xpose.msra.mxu0 %v1923_v35  ;;  %4095 = vmatprep.subr.bf16.mxu1 %v4737_v16 }
 0x63b   : > { %v4256_v34 = vpop.permute.xlu0 %4255  ;;  %4089 = vmatprep.subr.bf16.mxu0 %v4737_v16  ;;  %v1677_v46 = vpack.c.bf16 %v1666_v37, %v1665_v36 }
 0x63c   : > { %v4258_v39 = vunpack.i.h.bf16 %v4256_v34  ;;  %v4257_v40 = vunpack.i.l.bf16 %v4256_v34  ;;  %v4251_v41 = vpop.permute.xlu1 %4250 }
 0x63d   : > { %v4253_v43 = vunpack.i.h.bf16 %v4251_v41  ;;  %v4252_v44 = vunpack.i.l.bf16 %v4251_v41 }
 0x63e   : > { %v1727_v47 = vpack.c.bf16 %v4258_v39, %v4257_v40 }
 0x63f   : > { %v1726_v51 = vpack.c.bf16 %v4253_v43, %v4252_v44  ;;  %v1646_v61 = vpop.permute.xlu0 %1645 }
 0x640   : > { %v1640_v52 = vpop.permute.xlu1 %1639  ;;  %4086 = vmatmul.mubr.msk.bf16.vlgmr.msra.gmra.mrb[24].mxu1 %vm1777_vm1, %v1677_v46  ;;  %v2064_v55 = vsel %vm1777_vm1, %v1727_v47, 0  ;;  %v1669_v10 = vmul.f32 0.17677669, %v1646_v61 }
 0x641   : > { %4080 = vmatmul.mubr.msk.bf16.vlgmr.msra.gmra.mrb[16].mxu0 %vm1777_vm1, %v1676_v50  ;;  %4096 = vmatpush3.bf16.xpose.msra.mxu1 %v2064_v55  ;;  %v2017_v57 = vsel %vm1777_vm1, %v1726_v51, 0  ;;  %v1668_v2 = vmul.f32 0.17677669, %v1640_v52 }
 0x642   : > { %4090 = vmatpush3.bf16.xpose.msra.mxu0 %v2017_v57  ;;  %4091 = vmatprep.mubr.msk.bf16.mxu0 %vm4738_vm0, %v4737_v16 }
 0x643   : > { %4101 = vmatprep.subr.bf16.mxu0 %v4737_v16  ;;  %4097 = vmatprep.mubr.msk.bf16.mxu1 %vm4738_vm0, %v4737_v16  ;;  %v1678_v8 = vpack.c.bf16 %v1668_v2, %v1667_v63  ;;  %v1650_v12 = vpop.permute.xlu0 %1649 }
 0x644   : > { %v4261_v1 = vpop.permute.xlu1 %4260  ;;  %4107 = vmatprep.subr.bf16.mxu1 %v4737_v16  ;;  %v1671_v15 = vmul.f32 0.17677669, %v1650_v12 }
 0x645   : > { %v4263_v4 = vunpack.i.h.bf16 %v4261_v1  ;;  %v4262_v6 = vunpack.i.l.bf16 %v4261_v1 }
 0x647   : > { %v1728_v9 = vpack.c.bf16 %v4263_v4, %v4262_v6  ;;  %v4276_v1 = vpop.permute.xlu0 %4275 }
 0x648   : > { %v1648_v5 = vpop.permute.xlu1 %1647 }
 0x649   : > { %v1670_v7 = vmul.f32 0.17677669, %v1648_v5  ;;  %4092 = vmatmul.mubr.msk.bf16.vlgmr.msra.gmra.mrb[20].mxu0 %vm1777_vm1, %v1678_v8  ;;  %v2111_v11 = vsel %vm1777_vm1, %v1728_v9, 0 }
 0x64a   : > { %4102 = vmatpush3.bf16.xpose.msra.mxu0 %v2111_v11  ;;  %4103 = vmatprep.mubr.msk.bf16.mxu0 %vm4738_vm0, %v4737_v16 }
 0x64b   : > { %v1679_v14 = vpack.c.bf16 %v1670_v7, %v1669_v10  ;;  %4113 = vmatprep.subr.bf16.mxu0 %v4737_v16 }
 0x64c   : > { %v1652_v13 = vpop.permute.xlu1 %1651 }
 0x64d   : > { %v1672_v17 = vmul.f32 0.17677669, %v1652_v13  ;;  %4098 = vmatmul.mubr.msk.bf16.vlgmr.msra.gmra.mrb[28].mxu1 %vm1777_vm1, %v1679_v14 }
 0x64e   : > { %4108 = vmatpush3.bf16.msra.mxu1 %v1769_v62  ;;  %4109 = vmatprep.mubr.msk.bf16.mxu1 %vm4738_vm0, %v4737_v16 }
 0x64f   : > { %v1680_v18 = vpack.c.bf16 %v1672_v17, %v1671_v15  ;;  %4119 = vmatprep.subr.bf16.mxu1 %v4737_v16 }
 0x650   : > { %v5324_v38 = vpop.permute.xlu1 %4265 }
 0x651   : > { %4104 = vmatmul.mubr.msk.bf16.vlgmr.msra.gmra.mrb[24].mxu0 %vm1777_vm1, %v1680_v18 }
 0x652   : > { %4114 = vmatpush3.bf16.msra.mxu0 %v1770_v59  ;;  %4115 = vmatprep.mubr.msk.bf16.mxu0 %vm4738_vm0, %v4737_v16 }
 0x653   : > { %4125 = vmatprep.subr.bf16.mxu0 %v4737_v16 }
 0x654   : > { %v5340_v51 = vpop.permute.xlu1 %4270 }
 0x658   : > { %v5354_v8 = vpop.permute.xlu1 %4280 }
 0x694   : > { %v5300_v54 = vpop.f32.mrb[12].mxu1 }
 0x695   : > { %v4063_v56 = vpop.f32.mrb[13].mxu1  ;;  %v2155_v62 = vsel %vm2154_vm2, %v5300_v54, -inf }
 0x696   : > { %v5304_v19 = vpop.f32.mrb[14].mxu1  ;;  %2156 = vmax.xlane.f32.xlu0 %v2155_v62 }
 0x697   : > { %v4064_v20 = vpop.f32.mrb[15].mxu1  ;;  %v2158_v45 = vsel %vm2154_vm2, %v5304_v19, -inf }
 0x698   : > { %2159 = vmax.xlane.f32.xlu1 %v2158_v45 }
 0x69c   : > { %v5308_v48 = vpop.f32.mrb[16].mxu1 }
 0x69d   : > { %v4069_v59 = vpop.f32.mrb[17].mxu1  ;;  %v2161_v21 = vsel %vm2154_vm2, %v5308_v48, -inf }
 0x69e   : > { %2162 = vmax.xlane.f32.xlu0 %v2161_v21  ;;  %v5312_v22 = vpop.f32.mrb[18].mxu1 }
 0x69f   : > { %v4070_v23 = vpop.f32.mrb[19].mxu1  ;;  %v2164_v25 = vsel %vm2154_vm2, %v5312_v22, -inf }
 0x6a2   : > { %2165 = vmax.xlane.f32.xlu0 %v2164_v25 }
 0x70b   : > { %v5316_v28 = vpop.f32.mrb[20].mxu1 }
 0x70c   : > { %v4075_v30 = vpop.f32.mrb[21].mxu1  ;;  %v2167_v31 = vsel %vm2154_vm2, %v5316_v28, -inf }
 0x70d   : > { %2168 = vmax.xlane.f32.xlu0 %v2167_v31  ;;  %v5320_v32 = vpop.f32.mrb[22].mxu1 }
 0x70e   : > { %v4076_v35 = vpop.f32.mrb[23].mxu1  ;;  %v2170_v37 = vsel %vm2154_vm2, %v5320_v32, -inf }
 0x70f   : > { %2171 = vmax.xlane.f32.xlu1 %v2170_v37  ;;  %v4278_v35 = vunpack.i.h.bf16 %v4276_v1  ;;  %v4277_v37 = vunpack.i.l.bf16 %v4276_v1 }
 0x713   : > { %v5326_v34 = vpop.f32.mrb[24].mxu1 }
 0x714   : > { %v5328_v36 = vpop.f32.mrb[16].mxu0  ;;  %v4087_v39 = vpop.f32.mrb[25].mxu1  ;;  %v2179_v50 = vsel %vm2154_vm2, %v5326_v34, -inf }
 0x715   : > { %v4081_v40 = vpop.f32.mrb[17].mxu0  ;;  %v5330_v41 = vpop.f32.mrb[26].mxu1  ;;  %v2173_v42 = vsel %vm2154_vm2, %v5328_v36, -inf }
 0x716   : > { %v5334_v43 = vpop.f32.mrb[18].mxu0  ;;  %2174 = vmax.xlane.f32.xlu0 %v2173_v42  ;;  %v4088_v44 = vpop.f32.mrb[27].mxu1  ;;  %v2182_v52 = vsel %vm2154_vm2, %v5330_v41, -inf }
 0x717   : > { %v4082_v46 = vpop.f32.mrb[19].mxu0  ;;  %v2176_v47 = vsel %vm2154_vm2, %v5334_v43, -inf  ;;  %v1771_v44 = vpack.c.bf16 %v4278_v35, %v4277_v37 }
 0x718   : > { %2177 = vmax.xlane.f32.xlu1 %v2176_v47 }
 0x71a   : > { %2180 = vmax.xlane.f32.xlu0 %v2179_v50 }
 0x71c   : > { %v5344_v55 = vpop.f32.mrb[20].mxu0  ;;  %2183 = vmax.xlane.f32.xlu1 %v2182_v52 }
 0x71d   : > { %v4093_v57 = vpop.f32.mrb[21].mxu0  ;;  %v2185_v2 = vsel %vm2154_vm2, %v5344_v55, -inf }
 0x71e   : > { %v5348_v61 = vpop.f32.mrb[22].mxu0  ;;  %2186 = vmax.xlane.f32.xlu0 %v2185_v2 }
 0x71f   : > { %v4094_v63 = vpop.f32.mrb[23].mxu0  ;;  %v2188_v4 = vsel %vm2154_vm2, %v5348_v61, -inf }
 0x720   : > { %2189 = vmax.xlane.f32.xlu1 %v2188_v4  ;;  %v5352_v6 = vpop.f32.mrb[28].mxu1 }
 0x721   : > { %v4099_v9 = vpop.f32.mrb[29].mxu1  ;;  %v2191_v5 = vsel %vm2154_vm2, %v5352_v6, -inf }
 0x722   : > { %2192 = vmax.xlane.f32.xlu0 %v2191_v5  ;;  %v5358_v10 = vpop.f32.mrb[30].mxu1 }
 0x723   : > { %v5360_v7 = vpop.xlane.xlu0 %2156  ;;  %v4100_v11 = vpop.f32.mrb[31].mxu1  ;;  %v2194_v12 = vsel %vm2154_vm2, %v5358_v10, -inf }
 0x724   : > { %v2251_v14 = vsub.f32 %v5300_v54, %v5360_v7  ;;  %v5366_v13 = vpop.f32.mrb[24].mxu0  ;;  %2195 = vmax.xlane.f32.xlu1 %v2194_v12 }
 0x725   : > { %v5368_v15 = vpop.xlane.xlu1 %2159  ;;  %v4105_v17 = vpop.f32.mrb[25].mxu0  ;;  %v2197_v18 = vsel %vm2154_vm2, %v5366_v13, -inf }
 0x726   : > { %v2267_v56 = vmul.f32 1.442695, %v2251_v14  ;;  %v2252_v62 = vsub.f32 %v5304_v19, %v5368_v15  ;;  %v5374_v20 = vpop.f32.mrb[26].mxu0  ;;  %2198 = vmax.xlane.f32.xlu0 %v2197_v18  ;;  %v4283_v18 = vunpack.i.h.bf16 %v5354_v8 }
 0x727   : > { %v4106_v45 = vpop.f32.mrb[27].mxu0  ;;  %v2200_v54 = vsel %vm2154_vm2, %v5374_v20, -inf }
 0x728   : > { %v2269_v59 = vmul.f32 1.442695, %v2252_v62  ;;  %2201 = vmax.xlane.f32.xlu1 %v2200_v54  ;;  %4476 = vpow2.f32 %v2267_v56 }
 0x72a   : > { %4478 = vpow2.f32 %v2269_v59 }
 0x72b   : > { %v5378_v21 = vpop.xlane.xlu0 %2162 }
 0x72c   : > { %v2253_v23 = vsub.f32 %v5308_v48, %v5378_v21  ;;  %v4268_v48 = vunpack.i.h.bf16 %v5324_v38 }
 0x72e   : > { %v2271_v30 = vmul.f32 1.442695, %v2253_v23 }
 0x72f   : > { %v5382_v25 = vpop.xlane.xlu0 %2165 }
 0x730   : > { %v2254_v19 = vsub.f32 %v5312_v22, %v5382_v25  ;;  %4480 = vpow2.f32 %v2271_v30  ;;  %v4267_v22 = vunpack.i.l.bf16 %v5324_v38 }
 0x732   : > { %v2273_v31 = vmul.f32 1.442695, %v2254_v19  ;;  %v5386_v39 = vpop.eup %4476 }
 0x734   : > { %v5388_v40 = vpop.eup %4478  ;;  %4482 = vpow2.f32 %v2273_v31 }
 0x735   : > { %v2379_v42 = vpack.c.bf16 %v5388_v40, %v5386_v39 }
 0x737   : > { %4110 = vmatmul.mubr.msk.bf16.vlgmr.msra.gmra.mrb[32].mxu1 %vm2154_vm2, %v2379_v42 }
 0x738   : > { %4120 = vmatpush3.bf16.msra.mxu1 %v1771_v44  ;;  %4121 = vmatprep.mubr.msk.bf16.mxu1 %vm4738_vm0, %v4737_v16 }
 0x739   : > { %4290 = vrot.lane.b32.xlu1 %v5221_v58, %s4741_s28  ;;  %4131 = vmatprep.subr.bf16.mxu1 %v4737_v16  ;;  %v1772_v58 = vpack.c.bf16 %v4268_v48, %v4267_v22 }
 0x73a   : > { %v5402_v46 = vpop.eup %4480 }
 0x73c   : > { %4285 = vrot.lane.b32.xlu0 %v5227_v3, %s4741_s28 }
 0x73e   : > { %v5404_v47 = vpop.eup %4482 }
 0x73f   : > { %v2380_v50 = vpack.c.bf16 %v5404_v47, %v5402_v46 }
 0x741   : > { %4116 = vmatmul.mubr.msk.bf16.vlgmr.msra.gmra.mrb[28].mxu0 %vm2154_vm2, %v2380_v50  ;;  %v4273_v50 = vunpack.i.h.bf16 %v5340_v51 }
 0x742   : > { %4126 = vmatpush3.bf16.msra.mxu0 %v1772_v58  ;;  %4127 = vmatprep.mubr.msk.bf16.mxu0 %vm4738_vm0, %v4737_v16  ;;  %v4272_v58 = vunpack.i.l.bf16 %v5340_v51 }
 0x743   : > { %4137 = vmatprep.subr.bf16.mxu0 %v4737_v16 }
 0x744   : > { %v1774_v51 = vpack.c.bf16 %v4273_v50, %v4272_v58 }
 0x79a   : > { %v5412_v3 = vpop.xlane.xlu0 %2168 }
 0x79b   : > { %v2255_v38 = vsub.f32 %v5316_v28, %v5412_v3 }
 0x79c   : > { %v5416_v52 = vpop.xlane.xlu1 %2171 }
 0x79d   : > { %v2275_v57 = vmul.f32 1.442695, %v2255_v38  ;;  %v2256_v2 = vsub.f32 %v5320_v32, %v5416_v52 }
 0x79f   : > { %v2277_v1 = vmul.f32 1.442695, %v2256_v2  ;;  %4484 = vpow2.f32 %v2275_v57 }
 0x7a1   : > { %4486 = vpow2.f32 %v2277_v1 }
 0x7a3   : > { %v5420_v63 = vpop.xlane.xlu0 %2174 }
 0x7a4   : > { %v2257_v4 = vsub.f32 %v5328_v36, %v5420_v63  ;;  %v4282_v36 = vunpack.i.l.bf16 %v5354_v8 }
 0x7a5   : > { %v5424_v9 = vpop.xlane.xlu1 %2177 }
 0x7a6   : > { %v2279_v5 = vmul.f32 1.442695, %v2257_v4  ;;  %v2258_v28 = vsub.f32 %v5334_v43, %v5424_v9  ;;  %v1773_v19 = vpack.c.bf16 %v4283_v18, %v4282_v36 }
 0x7a7   : > { %v5428_v11 = vpop.xlane.xlu0 %2180 }
 0x7a8   : > { %v2281_v12 = vmul.f32 1.442695, %v2258_v28  ;;  %4488 = vpow2.f32 %v2279_v5  ;;  %v2259_v32 = vsub.f32 %v5326_v34, %v5428_v11 }
 0x7a9   : > { %v5432_v14 = vpop.xlane.xlu1 %2183  ;;  %v4485_v17 = vpop.eup %4484 }
 0x7aa   : > { %v2260_v56 = vsub.f32 %v5330_v41, %v5432_v14  ;;  %4490 = vpow2.f32 %v2281_v12  ;;  %v2283_v62 = vmul.f32 1.442695, %v2259_v32  ;;  %v2327_v45 = vsel %vm2154_vm2, %v4485_v17, 0.0 }
 0x7ab   : > { %v5438_v43 = vpop.xlane.xlu0 %2186  ;;  %v4487_v54 = vpop.eup %4486  ;;  %2328 = vadd.xlane.f32.xlu0 %v2327_v45 }
 0x7ac   : > { %v2285_v59 = vmul.f32 1.442695, %v2260_v56  ;;  %4492 = vpow2.f32 %v2283_v62  ;;  %v2261_v34 = vsub.f32 %v5344_v55, %v5438_v43  ;;  %v2330_v8 = vsel %vm2154_vm2, %v4487_v54, 0.0 }
 0x7ad   : > { %v5443_v23 = vpop.xlane.xlu1 %2189  ;;  %v2381_v30 = vpack.c.bf16 %v4487_v54, %v4485_v17  ;;  %2331 = vadd.xlane.f32.xlu1 %v2330_v8 }
 0x7ae   : > { %v2262_v41 = vsub.f32 %v5348_v61, %v5443_v23  ;;  %4494 = vpow2.f32 %v2285_v59  ;;  %v2287_v31 = vmul.f32 1.442695, %v2261_v34 }
 0x7af   : > { %4122 = vmatmul.mubr.msk.bf16.vlgmr.msra.gmra.mrb[36].mxu1 %vm2154_vm2, %v2381_v30  ;;  %v5449_v35 = vpop.xlane.xlu0 %2192 }
 0x7b0   : > { %v2289_v37 = vmul.f32 1.442695, %v2262_v41  ;;  %4132 = vmatpush3.bf16.msra.mxu1 %v1773_v19  ;;  %4133 = vmatprep.mubr.msk.bf16.mxu1 %vm4738_vm0, %v4737_v16  ;;  %v2263_v55 = vsub.f32 %v5352_v6, %v5449_v35  ;;  %4496 = vpow2.f32 %v2287_v31 }
 0x7b1   : > { %v5455_v42 = vpop.xlane.xlu1 %2195  ;;  %4143 = vmatprep.subr.bf16.mxu1 %v4737_v16 }
 0x7b2   : > { %v2264_v61 = vsub.f32 %v5358_v10, %v5455_v42  ;;  %v4489_v44 = vpop.eup %4488  ;;  %4498 = vpow2.f32 %v2289_v37  ;;  %v2291_v48 = vmul.f32 1.442695, %v2263_v55 }
 0x7b3   : > { %v5460_v22 = vpop.xlane.xlu0 %2198  ;;  %v2333_v2 = vsel %vm2154_vm2, %v4489_v44, 0.0 }
 0x7b4   : > { %v2293_v38 = vmul.f32 1.442695, %v2264_v61  ;;  %v4491_v57 = vpop.eup %4490  ;;  %v2265_v6 = vsub.f32 %v5366_v13, %v5460_v22  ;;  %4500 = vpow2.f32 %v2291_v48  ;;  %2334 = vadd.xlane.f32.xlu0 %v2333_v2 }
 0x7b5   : > { %v5467_v1 = vpop.xlane.xlu1 %2201  ;;  %v2382_v28 = vpack.c.bf16 %v4491_v57, %v4489_v44  ;;  %v2336_v30 = vsel %vm2154_vm2, %v4491_v57, 0.0 }
 0x7b6   : > { %v2266_v10 = vsub.f32 %v5374_v20, %v5467_v1  ;;  %v4493_v4 = vpop.eup %4492  ;;  %4502 = vpow2.f32 %v2293_v38  ;;  %v2295_v5 = vmul.f32 1.442695, %v2265_v6 }
 0x7b7   : > { %v4286_v12 = vpop.permute.xlu0 %4285  ;;  %4128 = vmatmul.mubr.msk.bf16.vlgmr.msra.gmra.mrb[32].mxu0 %vm2154_vm2, %v2382_v28  ;;  %v2339_v36 = vsel %vm2154_vm2, %v4493_v4, 0.0  ;;  %v2203_v28 = vsub.f32 -inf, %v5360_v7 }
 0x7b8   : > { %v2297_v32 = vmul.f32 1.442695, %v2266_v10  ;;  %v4288_v17 = vunpack.i.h.bf16 %v4286_v12  ;;  %v4495_v18 = vpop.eup %4494  ;;  %v4287_v13 = vunpack.i.l.bf16 %v4286_v12  ;;  %4504 = vpow2.f32 %v2295_v5  ;;  %4138 = vmatpush3.bf16.msra.mxu0 %v1774_v51  ;;  %2340 = vadd.xlane.f32.xlu0 %v2339_v36 }
 0x7b9   : > { %v4291_v56 = vpop.permute.xlu1 %4290  ;;  %v2342_v45 = vsel %vm2154_vm2, %v4495_v18, 0.0  ;;  %v2383_v59 = vpack.c.bf16 %v4495_v18, %v4493_v4  ;;  %4139 = vmatprep.mubr.msk.bf16.mxu0 %vm4738_vm0, %v4737_v16  ;;  %4149 = vmatprep.subr.bf16.mxu0 %v4737_v16  ;;  %v2318_v10 = vsel %vm2154_vm2, %v5388_v40, 0.0  ;;  %v2324_v4 = vsel %vm2154_vm2, %v5404_v47, 0.0 }
 0x7ba   : > { %v4293_v62 = vunpack.i.h.bf16 %v4291_v56  ;;  %v4292_v20 = vunpack.i.l.bf16 %v4291_v56  ;;  %4506 = vpow2.f32 %v2297_v32  ;;  %v1775_v54 = vpack.c.bf16 %v4288_v17, %v4287_v13  ;;  %2343 = vadd.xlane.f32.xlu1 %v2342_v45  ;;  %v4497_v34 = vpop.eup %4496 }
 0x7bb   : > { %4134 = vmatmul.mubr.msk.bf16.vlgmr.msra.gmra.mrb[40].mxu1 %vm2154_vm2, %v2383_v59  ;;  %v2345_v61 = vsel %vm2154_vm2, %v4497_v34, 0.0  ;;  %v2321_v5 = vsel %vm2154_vm2, %v5402_v46, 0.0  ;;  %v2219_v12 = vmul.f32 1.442695, %v2203_v28  ;;  %v2205_v40 = vsub.f32 -inf, %v5378_v21  ;;  %v4396_v59 = vld [vmem:[#allocation6] sm:$0xff]  }
 0x7bc   : > { %v4499_v8 = vpop.eup %4498  ;;  %v1776_v19 = vpack.c.bf16 %v4293_v62, %v4292_v20  ;;  %2337 = vadd.xlane.f32.xlu0 %v2336_v30  ;;  %4144 = vmatpush3.bf16.msra.mxu1 %v1775_v54 }
 0x7bd   : > { %v2348_v41 = vsel %vm2154_vm2, %v4499_v8, 0.0  ;;  %v2384_v31 = vpack.c.bf16 %v4499_v8, %v4497_v34  ;;  %4145 = vmatprep.mubr.msk.bf16.mxu1 %vm4738_vm0, %v4737_v16  ;;  %4508 = vpow2.f32 %v2219_v12  ;;  %v2223_v51 = vmul.f32 1.442695, %v2205_v40  ;;  %4155 = vmatprep.subr.bf16.mxu1 %v4396_v59 }
 0x7be   : > { %2349 = vadd.xlane.f32.xlu1 %v2348_v41  ;;  %v4501_v37 = vpop.eup %4500 }
 0x7bf   : > { %4140 = vmatmul.mubr.msk.bf16.vlgmr.msra.gmra.mrb[36].mxu0 %vm2154_vm2, %v2384_v31  ;;  %v2351_v38 = vsel %vm2154_vm2, %v4501_v37, 0.0  ;;  %4510 = vpow2.f32 %v2223_v51  ;;  %v2213_v51 = vsub.f32 -inf, %v5438_v43 }
 0x7c0   : > { %v4503_v55 = vpop.eup %4502  ;;  %4150 = vmatpush3.bf16.msra.mxu0 %v1776_v19  ;;  %2346 = vadd.xlane.f32.xlu0 %v2345_v61  ;;  %v2207_v61 = vsub.f32 -inf, %v5412_v3  ;;  %v2211_v3 = vsub.f32 -inf, %v5428_v11  ;;  %v2215_v11 = vsub.f32 -inf, %v5449_v35 }
 0x7c1   : > { %v2354_v44 = vsel %vm2154_vm2, %v4503_v55, 0.0  ;;  %v2385_v48 = vpack.c.bf16 %v4503_v55, %v4501_v37  ;;  %4151 = vmatprep.mubr.msk.bf16.mxu0 %vm4738_vm0, %v4737_v16  ;;  %v2315_v16 = vsel %vm2154_vm2, %v5386_v39, 0.0 }
 0x7c2   : > { %2355 = vadd.xlane.f32.xlu1 %v2354_v44  ;;  %v4505_v50 = vpop.eup %4504  ;;  %v2235_v40 = vmul.f32 1.442695, %v2211_v3  ;;  %v2243_v43 = vmul.f32 1.442695, %v2215_v11 }
 0x7c3   : > { %4146 = vmatmul.mubr.msk.bf16.vlgmr.msra.gmra.mrb[44].mxu1 %vm2154_vm2, %v2385_v48  ;;  %v2357_v2 = vsel %vm2154_vm2, %v4505_v50, 0.0 }
 0x7c4   : > { %v4507_v58 = vpop.eup %4506  ;;  %2352 = vadd.xlane.f32.xlu0 %v2351_v38  ;;  %4156 = vmatpush3.bf16.msra.mxu1 %v4396_v59 }
 0x7c5   : > { %v2360_v57 = vsel %vm2154_vm2, %v4507_v58, 0.0  ;;  %v2386_v6 = vpack.c.bf16 %v4507_v58, %v4505_v50  ;;  %v2208_v50 = vsub.f32 -inf, %v5416_v52  ;;  %v2227_v58 = vmul.f32 1.442695, %v2207_v61 }
 0x7c6   : > { %2361 = vadd.xlane.f32.xlu1 %v2360_v57  ;;  %v2212_v52 = vsub.f32 -inf, %v5432_v14 }
 0x7c7   : > { %4152 = vmatmul.mubr.msk.bf16.vlgmr.msra.gmra.mrb[40].mxu0 %vm2154_vm2, %v2386_v6  ;;  %v4509_v32 = vpop.eup %4508  ;;  %v2229_v38 = vmul.f32 1.442695, %v2208_v50  ;;  %v2209_v6 = vsub.f32 -inf, %v5420_v63 }
 0x7c8   : > { %2358 = vadd.xlane.f32.xlu0 %v2357_v2  ;;  %3187 = vmatprep.mubr.bf16.mxu0 %v4736_v33  ;;  %v2299_v17 = vmul.f32 0.0, %v4509_v32  ;;  %v2237_v63 = vmul.f32 1.442695, %v2212_v52 }
 0x7c9   : > { %v4511_v56 = vpop.eup %4510 }
 0x7ca   : > { %2319 = vadd.xlane.f32.xlu1 %v2318_v10  ;;  %v2301_v62 = vmul.f32 0.0, %v4511_v56  ;;  %v2210_v10 = vsub.f32 -inf, %v5424_v9  ;;  %v2216_v56 = vsub.f32 -inf, %v5455_v42 }
 0x7cc   : > { %2316 = vadd.xlane.f32.xlu0 %v2315_v16  ;;  %v2233_v28 = vmul.f32 1.442695, %v2210_v10 }
 0x7ce   : > { %2325 = vadd.xlane.f32.xlu1 %v2324_v4  ;;  %v2231_v4 = vmul.f32 1.442695, %v2209_v6 }
 0x7d0   : > { %2322 = vadd.xlane.f32.xlu0 %v2321_v5 }
 0x80a   : > { %v2424_v39 = vpop.f32.mrb[32].mxu1 }
 0x80b   : > { %v2739_v18 = vadd.f32 %v2424_v39, %v2299_v17  ;;  %v4111_v13 = vpop.f32.mrb[33].mxu1  ;;  %v2239_v39 = vmul.f32 1.442695, %v2213_v51 }
 0x80c   : > { %v5503_v36 = vpop.f32.mrb[34].mxu1 }
 0x80d   : > { %v4112_v47 = vpop.f32.mrb[35].mxu1 }
 0x814   : > { %v2468_v46 = vpop.f32.mrb[28].mxu0 }
 0x815   : > { %v2741_v20 = vadd.f32 %v2468_v46, %v2301_v62  ;;  %v4117_v45 = vpop.f32.mrb[29].mxu0  ;;  %v2217_v46 = vsub.f32 -inf, %v5460_v22  ;;  %v4398_v22 = vld [vmem:[#allocation6 + $0x10] sm:$0xff]  }
 0x816   : > { %v5505_v7 = vpop.f32.mrb[30].mxu0  ;;  %v2218_v45 = vsub.f32 -inf, %v5467_v1 }
 0x817   : > { %v4118_v54 = vpop.f32.mrb[31].mxu0 }
 0x818   : > { %v2247_v54 = vmul.f32 1.442695, %v2217_v46  ;;  %v2249_v42 = vmul.f32 1.442695, %v2218_v45  ;;  %v4400_v46 = vld [vmem:[#allocation6 + $0x20] sm:$0xff]  }
 0x838   : > { %v2329_v21 = vpop.xlane.xlu0 %2328 }
 0x841   : > { %v5507_v34 = vpop.xlane.xlu0 %2334 }
 0x845   : > { %v5509_v8 = vpop.xlane.xlu0 %2340 }
 0x849   : > { %v5511_v30 = vpop.xlane.xlu0 %2337 }
 0x84d   : > { %v5513_v19 = vpop.xlane.xlu0 %2346 }
 0x851   : > { %v5515_v41 = vpop.xlane.xlu0 %2352 }
 0x855   : > { %v5517_v31 = vpop.xlane.xlu0 %2358 }
 0x859   : > { %v2317_v37 = vpop.xlane.xlu0 %2316 }
 0x85a   : > { %v2363_v55 = vadd.f32 %v2317_v37, %v2299_v17  ;;  %v2214_v17 = vsub.f32 -inf, %v5443_v23  ;;  %v2245_v23 = vmul.f32 1.442695, %v2216_v56 }
 0x85c   : > { %4512 = vrcp.f32 %v2363_v55  ;;  %v2241_v14 = vmul.f32 1.442695, %v2214_v17 }
 0x85d   : > { %v2323_v44 = vpop.xlane.xlu0 %2322 }
 0x85e   : > { %v2365_v48 = vadd.f32 %v2323_v44, %v2301_v62  ;;  %v4397_v44 = vld [vmem:[#allocation6 + $0x8] sm:$0xff]  }
 0x85f   : > { %4157 = vmatprep.subr.bf16.mxu1 %v4397_v44 }
 0x860   : > { %4514 = vrcp.f32 %v2365_v48  ;;  %4158 = vmatpush3.bf16.msra.mxu1 %v4397_v44 }
 0x861   : > { %4516 = vpow2.f32 %v2227_v58  ;;  %4159 = vmatprep.subr.bf16.mxu1 %v4398_v22 }
 0x862   : > { %4518 = vpow2.f32 %v2229_v38 }
 0x863   : > { %4520 = vpow2.f32 %v2231_v4 }
 0x864   : > { %4522 = vpow2.f32 %v2233_v28  ;;  %4160 = vmatpush3.bf16.msra.mxu1 %v4398_v22 }
 0x865   : > { %4524 = vpow2.f32 %v2235_v40 }
 0x866   : > { %v4513_v57 = vpop.eup %4512  ;;  %4526 = vpow2.f32 %v2237_v63 }
 0x867   : > { %v5522_v2 = vmul.f32 %v4513_v57, %v2739_v18  ;;  %v2332_v18 = vpop.xlane.xlu1 %2331  ;;  %4528 = vpow2.f32 %v2239_v39 }
 0x86a   : > { %v4515_v16 = vpop.eup %4514 }
 0x86b   : > { %v5526_v5 = vmul.f32 %v4515_v16, %v2741_v20  ;;  %v4517_v12 = vpop.eup %4516  ;;  %v2344_v59 = vpop.xlane.xlu1 %2343 }
 0x86c   : > { %v4519_v32 = vpop.eup %4518  ;;  %v2303_v9 = vmul.f32 0.0, %v4517_v12 }
 0x86d   : > { %v2304_v47 = vmul.f32 0.0, %v4519_v32  ;;  %v4521_v20 = vpop.eup %4520 }
 0x86e   : > { %v2367_v13 = vadd.f32 %v2329_v21, %v2303_v9  ;;  %v4523_v35 = vpop.eup %4522  ;;  %v2305_v21 = vmul.f32 0.0, %v4521_v20 }
 0x86f   : > { %v2368_v62 = vadd.f32 %v2332_v18, %v2304_v47  ;;  %v4525_v37 = vpop.eup %4524  ;;  %v2306_v61 = vmul.f32 0.0, %v4523_v35  ;;  %v2350_v57 = vpop.xlane.xlu1 %2349 }
 0x870   : > { %4530 = vrcp.f32 %v2367_v13  ;;  %v2369_v55 = vadd.f32 %v5507_v34, %v2305_v21  ;;  %v4527_v48 = vpop.eup %4526  ;;  %v5536_v50 = vmul.f32 0.0, %v4525_v37 }
 0x871   : > { %4532 = vpow2.f32 %v2241_v14  ;;  %v2370_v1 = vadd.f32 %v5511_v30, %v2306_v61  ;;  %v4529_v38 = vpop.eup %4528  ;;  %v2308_v4 = vmul.f32 0.0, %v4527_v48 }
 0x872   : > { %4534 = vrcp.f32 %v2368_v62  ;;  %v2371_v34 = vadd.f32 %v5509_v8, %v5536_v50  ;;  %v2309_v32 = vmul.f32 0.0, %v4529_v38  ;;  %v4399_v8 = vld [vmem:[#allocation6 + $0x18] sm:$0xff]  }
 0x873   : > { %4536 = vpow2.f32 %v2243_v43  ;;  %v2372_v51 = vadd.f32 %v2344_v59, %v2308_v4  ;;  %v2356_v18 = vpop.xlane.xlu1 %2355  ;;  %4161 = vmatprep.subr.bf16.mxu1 %v4399_v8 }
 0x874   : > { %4538 = vpow2.f32 %v2245_v23  ;;  %v2373_v39 = vadd.f32 %v5513_v19, %v2309_v32  ;;  %4162 = vmatpush3.bf16.msra.mxu1 %v4399_v8 }
 0x875   : > { %4540 = vpow2.f32 %v2247_v54  ;;  %4163 = vmatprep.subr.bf16.mxu1 %v4400_v46 }
 0x876   : > { %4542 = vpow2.f32 %v2249_v42 }
 0x877   : > { %4544 = vrcp.f32 %v2369_v55  ;;  %v2362_v42 = vpop.xlane.xlu1 %2361 }
 0x878   : > { %4546 = vrcp.f32 %v2370_v1  ;;  %4164 = vmatpush3.bf16.msra.mxu1 %v4400_v46 }
 0x879   : > { %4548 = vrcp.f32 %v2371_v34 }
 0x87a   : > { %v4531_v16 = vpop.eup %4530  ;;  %4550 = vrcp.f32 %v2372_v51 }
 0x87b   : > { %v4533_v28 = vpop.eup %4532  ;;  %4552 = vrcp.f32 %v2373_v39 }
 0x87c   : > { %v4535_v40 = vpop.eup %4534 }
 0x87d   : > { %v4537_v63 = vpop.eup %4536 }
 0x87e   : > { %v4539_v11 = vpop.eup %4538  ;;  %v5545_v14 = vmul.f32 0.0, %v4537_v63 }
 0x87f   : > { %v4541_v56 = vpop.eup %4540  ;;  %v5548_v62 = vmul.f32 0.0, %v4539_v11 }
 0x880   : > { %v2375_v19 = vadd.f32 %v5515_v41, %v5545_v14  ;;  %v4543_v20 = vpop.eup %4542  ;;  %v2313_v59 = vmul.f32 0.0, %v4541_v56 }
 0x881   : > { %v4545_v35 = vpop.eup %4544  ;;  %v2376_v54 = vadd.f32 %v2356_v18, %v5548_v62  ;;  %v2314_v41 = vmul.f32 0.0, %v4543_v20 }
 0x882   : > { %v2512_v58 = vpop.f32.mrb[36].mxu1  ;;  %v4547_v48 = vpop.eup %4546  ;;  %v2377_v1 = vadd.f32 %v5517_v31, %v2313_v59  ;;  %v4402_v31 = vld [vmem:[#allocation6 + $0x30] sm:$0xff]  }
 0x883   : > { %v2743_v6 = vadd.f32 %v2512_v58, %v2303_v9  ;;  %v4123_v10 = vpop.f32.mrb[37].mxu1  ;;  %v5541_v9 = vmul.f32 0.0, %v4533_v28 }
 0x884   : > { %v2515_v3 = vpop.f32.mrb[38].mxu1  ;;  %v4549_v10 = vpop.eup %4548 }
 0x885   : > { %v2775_v52 = vmul.f32 %v4531_v16, %v2743_v6  ;;  %v2744_v12 = vadd.f32 %v2515_v3, %v2304_v47  ;;  %v4124_v30 = vpop.f32.mrb[39].mxu1  ;;  %v2374_v47 = vadd.f32 %v2350_v57, %v5541_v9  ;;  %v2378_v16 = vadd.f32 %v2362_v42, %v2314_v41 }
 0x887   : > { %v2776_v17 = vmul.f32 %v4535_v40, %v2744_v12  ;;  %4554 = vrcp.f32 %v2374_v47  ;;  %v4551_v12 = vpop.eup %4550  ;;  %v4403_v47 = vld [vmem:[#allocation6 + $0x38] sm:$0xff]  }
 0x888   : > { %4556 = vrcp.f32 %v2375_v19 }
 0x889   : > { %v4294_v13 = vpack.i.bf16 %v2776_v17, %v2775_v52  ;;  %4558 = vrcp.f32 %v2376_v54 }
 0x88a   : > { %v2556_v43 = vpop.f32.mrb[32].mxu0  ;;  %4560 = vrcp.f32 %v2377_v1 }
 0x88b   : > { %4295 = vrot.lane.b32.xlu0 %v4294_v13, %s4741_s28  ;;  %v2745_v23 = vadd.f32 %v2556_v43, %v2305_v21  ;;  %v4129_v45 = vpop.f32.mrb[33].mxu0  ;;  %v4401_v21 = vld [vmem:[#allocation6 + $0x28] sm:$0xff]   ;;  %4562 = vrcp.f32 %v2378_v16 }
 0x88c   : > { %v2559_v37 = vpop.f32.mrb[34].mxu0  ;;  %4165 = vmatprep.subr.bf16.mxu1 %v4401_v21 }
 0x88d   : > { %v2777_v55 = vmul.f32 %v4545_v35, %v2745_v23  ;;  %v2746_v44 = vadd.f32 %v2559_v37, %v2306_v61  ;;  %v4130_v22 = vpop.f32.mrb[35].mxu0  ;;  %4166 = vmatpush3.bf16.msra.mxu1 %v4401_v21 }
 0x88e   : > { %v2600_v58 = vpop.f32.mrb[40].mxu1  ;;  %4167 = vmatprep.subr.bf16.mxu1 %v4402_v31 }
 0x88f   : > { %v2778_v38 = vmul.f32 %v4547_v48, %v2746_v44  ;;  %v2747_v57 = vadd.f32 %v2600_v58, %v5536_v50  ;;  %v4135_v6 = vpop.f32.mrb[41].mxu1  ;;  %v4553_v50 = vpop.eup %4552 }
 0x890   : > { %v2603_v34 = vpop.f32.mrb[42].mxu1 }
 0x891   : > { %v2779_v3 = vmul.f32 %v4549_v10, %v2747_v57  ;;  %v2748_v61 = vadd.f32 %v2603_v34, %v2308_v4  ;;  %v4136_v28 = vpop.f32.mrb[43].mxu1  ;;  %v4299_v52 = vpack.i.bf16 %v2778_v38, %v2777_v55  ;;  %4168 = vmatpush3.bf16.msra.mxu1 %v4402_v31  ;;  %v4555_v18 = vpop.eup %4554  ;;  %v2204_v57 = vsub.f32 -inf, %v5368_v15 }
 0x892   : > { %v2644_v30 = vpop.f32.mrb[36].mxu0  ;;  %v4557_v43 = vpop.eup %4556  ;;  %4169 = vmatprep.subr.bf16.mxu1 %v4403_v47 }
 0x893   : > { %v2780_v40 = vmul.f32 %v4551_v12, %v2748_v61  ;;  %v2749_v51 = vadd.f32 %v2644_v30, %v2309_v32  ;;  %v4141_v63 = vpop.f32.mrb[37].mxu0  ;;  %4300 = vrot.lane.b32.xlu1 %v4299_v52, %s4741_s28  ;;  %v4559_v35 = vpop.eup %4558  ;;  %v2221_v6 = vmul.f32 1.442695, %v2204_v57  ;;  %s5913_s28 = sld [smem:[#allocation21_spill]] }
 0x894   : > { %v2647_v17 = vpop.f32.mrb[38].mxu0  ;;  %v2320_v34 = vpop.xlane.xlu1 %2319 }
 0x895   : > { %v2781_v39 = vmul.f32 %v4553_v50, %v2749_v51  ;;  %v2750_v8 = vadd.f32 %v2647_v17, %v5541_v9  ;;  %v4142_v4 = vpop.f32.mrb[39].mxu0  ;;  %v4304_v11 = vpack.i.bf16 %v2780_v40, %v2779_v3  ;;  %4170 = vmatpush3.bf16.msra.mxu1 %v4403_v47  ;;  %4564 = vpow2.f32 %v2221_v6 }
 0x896   : > { %v2688_v13 = vpop.f32.mrb[44].mxu1 }
 0x897   : > { %v2782_v56 = vmul.f32 %v4555_v18, %v2750_v8  ;;  %v2751_v19 = vadd.f32 %v2688_v13, %v5545_v14  ;;  %4305 = vrot.lane.b32.xlu1 %v4304_v11, %s4739_s21  ;;  %v4147_v32 = vpop.f32.mrb[45].mxu1  ;;  %v4561_v14 = vpop.eup %4560 }
 0x898   : > { %v2691_v46 = vpop.f32.mrb[46].mxu1  ;;  %v4563_v21 = vpop.eup %4562 }
 0x899   : > { %v2783_v20 = vmul.f32 %v4557_v43, %v2751_v19  ;;  %v2752_v23 = vadd.f32 %v2691_v46, %v5548_v62  ;;  %v4148_v45 = vpop.f32.mrb[47].mxu1  ;;  %v4309_v9 = vpack.i.bf16 %v2782_v56, %v2781_v39  ;;  %v2326_v28 = vpop.xlane.xlu1 %2325 }
 0x89a   : > { %v2732_v54 = vpop.f32.mrb[40].mxu0 }
 0x89b   : > { %v2784_v37 = vmul.f32 %v4559_v35, %v2752_v23  ;;  %v2753_v42 = vadd.f32 %v2732_v54, %v2313_v59  ;;  %v4153_v55 = vpop.f32.mrb[41].mxu0  ;;  %4310 = vrot.lane.b32.xlu1 %v4309_v9, %s4739_s21  ;;  %v2206_v59 = vsub.f32 -inf, %v5382_v25 }
 0x89c   : > { %v2735_v44 = vpop.f32.mrb[42].mxu0 }
 0x89d   : > { %v2785_v22 = vmul.f32 %v4561_v14, %v2753_v42  ;;  %v2754_v48 = vadd.f32 %v2735_v44, %v2314_v41  ;;  %v4154_v1 = vpop.f32.mrb[43].mxu0  ;;  %v4314_v58 = vpack.i.bf16 %v2784_v37, %v2783_v20  ;;  %v2225_v10 = vmul.f32 1.442695, %v2206_v59 }
 0x89f   : > { %v2786_v38 = vmul.f32 %v4563_v21, %v2754_v48  ;;  %4315 = vrot.lane.b32.xlu0 %v4314_v58, %s4740_s2  ;;  %4566 = vpow2.f32 %v2225_v10  ;;  %v4565_v16 = vpop.eup %4564  ;;  %v3903_v58 = vld [vmem:[%s5861_s12] ss:$0 sm:$0xff] }
 0x8a0   : > { %v2300_v41 = vmul.f32 0.0, %v4565_v16 }
 0x8a1   : > { %v4319_v62 = vpack.i.bf16 %v2786_v38, %v2785_v22 }
 0x8a2   : > { %v2364_v61 = vadd.f32 %v2320_v34, %v2300_v41  ;;  %v2740_v51 = vadd.f32 %v5503_v36, %v2300_v41 }
 0x8a3   : > { %4320 = vrot.lane.b32.xlu1 %v4319_v62, %s4740_s2 }
 0x8a4   : > { %4568 = vrcp.f32 %v2364_v61  ;;  %v4404_v61 = vld [vmem:[#allocation7] ss:$8 sps:$4 sm:$0xff]  }
 0x8a9   : > { %v4567_v3 = vpop.eup %4566 }
 0x8aa   : > { %v2302_v52 = vmul.f32 0.0, %v4567_v3 }
 0x8ac   : > { %v2366_v12 = vadd.f32 %v2326_v28, %v2302_v52  ;;  %v2742_v11 = vadd.f32 %v5505_v7, %v2302_v52  ;;  %v4406_v28 = vld [vmem:[#allocation7 + $0x4] ss:$8 sps:$4 sm:$0xff]   ;;  %v4409_v52 = vld [vmem:[#allocation7 + $0x14] ss:$8 sps:$4 sm:$0xff]  }
 0x8ad   : > { %3155 = vmatprep.subr.bf16.mxu0 %v4406_v28 }
 0x8ae   : > { %4570 = vrcp.f32 %v2366_v12  ;;  %v4569_v15 = vpop.eup %4568  ;;  %3156 = vmatpush1.bf16.msra.mxu0 %v4404_v61 }
 0x8af   : > { %v2772_v50 = vmul.f32 %v4569_v15, %v2740_v51  ;;  %3157 = vmatprep.subr.bf16.mxu0 %v4409_v52 }
 0x8b8   : > { %v4571_v4 = vpop.eup %4570 }
 0x8b9   : > { %v2774_v45 = vmul.f32 %v4571_v4, %v2742_v11  ;;  %v4412_v11 = vld [vmem:[#allocation7 + $0x24] ss:$8 sps:$4 sm:$0xff]  }
 0x8fd   : > { %v4296_v31 = vpop.permute.xlu0 %4295 }
 0x8fe   : > { %v4298_v25 = vunpack.i.h.bf16 %v4296_v31  ;;  %v4297_v63 = vunpack.i.l.bf16 %v4296_v31 }
 0x900   : > { %v2836_v18 = vsel %vm1777_vm1, %v2772_v50, %v4298_v25  ;;  %v2835_v13 = vsel %vm1777_vm1, %v5522_v2, %v4297_v63 }
 0x905   : > { %v4301_v30 = vpop.permute.xlu1 %4300 }
 0x906   : > { %v4303_v56 = vunpack.i.h.bf16 %v4301_v30  ;;  %v4302_v19 = vunpack.i.l.bf16 %v4301_v30 }
 0x908   : > { %v2838_v2 = vsel %vm1777_vm1, %v2774_v45, %v4303_v56  ;;  %v2837_v37 = vsel %vm1777_vm1, %v5526_v5, %v4302_v19  ;;  %v4418_v56 = vld [vmem:[#allocation7 + $0x44] ss:$8 sps:$4 sm:$0xff]   ;;  %v4416_v19 = vld [vmem:[#allocation7 + $0x40] ss:$8 sps:$4 sm:$0xff]  }
 0x909   : > { %v4306_v40 = vpop.permute.xlu1 %4305 }
 0x90a   : > { %v4308_v17 = vunpack.i.h.bf16 %v4306_v40  ;;  %v4307_v39 = vunpack.i.l.bf16 %v4306_v40 }
 0x90c   : > { %v2841_v43 = vsel %vm2839_vm3, %v2836_v18, %v4308_v17  ;;  %v2840_v46 = vsel %vm2839_vm3, %v2835_v13, %v4307_v39  ;;  %v4410_v18 = vld [vmem:[#allocation7 + $0x20] ss:$8 sps:$4 sm:$0xff]   ;;  %v4415_v13 = vld [vmem:[#allocation7 + $0x34] ss:$8 sps:$4 sm:$0xff]  }
 0x90d   : > { %v4311_v8 = vpop.permute.xlu1 %4310 }
 0x90e   : > { %v4313_v20 = vunpack.i.h.bf16 %v4311_v8  ;;  %v4312_v23 = vunpack.i.l.bf16 %v4311_v8 }
 0x910   : > { %v2843_v14 = vsel %vm2839_vm3, %v2838_v2, %v4313_v20  ;;  %v2842_v44 = vsel %vm2839_vm3, %v2837_v37, %v4312_v23  ;;  %v4427_v20 = vld [vmem:[#allocation7 + $0x74] ss:$8 sps:$4 sm:$0xff]   ;;  %v4425_v23 = vld [vmem:[#allocation7 + $0x70] ss:$8 sps:$4 sm:$0xff]  }
 0x911   : > { %v4316_v47 = vpop.permute.xlu0 %4315 }
 0x912   : > { %v4318_v36 = vunpack.i.h.bf16 %v4316_v47  ;;  %v4317_v32 = vunpack.i.l.bf16 %v4316_v47  ;;  %v4413_v47 = vld [vmem:[#allocation7 + $0x30] ss:$8 sps:$4 sm:$0xff]  }
 0x914   : > { %v2845_v7 = vsel %vm2844_vm4, %v2840_v46, %v4317_v32  ;;  %v2846_v9 = vsel %vm2844_vm4, %v2841_v43, %v4318_v36  ;;  %v4421_v36 = vld [vmem:[#allocation7 + $0x54] ss:$8 sps:$4 sm:$0xff]   ;;  %v4419_v32 = vld [vmem:[#allocation7 + $0x50] ss:$8 sps:$4 sm:$0xff]   ;;  %v4424_v43 = vld [vmem:[#allocation7 + $0x64] ss:$8 sps:$4 sm:$0xff]  }
 0x915   : > { %v4321_v35 = vpop.permute.xlu1 %4320  ;;  %v2866_v54 = vpack.c.bf16 %v2846_v9, %v2845_v7  ;;  %v4422_v46 = vld [vmem:[#allocation7 + $0x60] ss:$8 sps:$4 sm:$0xff]  }
 0x916   : > { %v4323_v42 = vunpack.i.h.bf16 %v4321_v35  ;;  %v4322_v55 = vunpack.i.l.bf16 %v4321_v35 }
 0x917   : > { %4171 = vmatprep.mubr.bf16.mxu1 %v2866_v54 }
 0x918   : > { %v2847_v22 = vsel %vm2844_vm4, %v2842_v44, %v4322_v55  ;;  %v2848_v48 = vsel %vm2844_vm4, %v2843_v14, %v4323_v42 }
 0x919   : > { %v2867_v1 = vpack.c.bf16 %v2848_v48, %v2847_v22 }
 0x91b   : > { %4172 = vmatmul.mubr.bf16.vlgmr.msra.gmra.mrb[48].mxu1 %v2867_v1  ;;  %v3912_v1 = vld [vmem:[%s5862_s13] ss:$0 sm:$0xff] }
 0x9ee   : > { %v4173_v21 = vpop.f32.mrb[48].mxu1 }
 0x9ef   : > { %v2965_v5 = vadd.f32 %v4173_v21, %v3903_v58  ;;  %v2956_v38 = vpop.f32.mrb[49].mxu1 }
 0x9f0   : > { %v2957_v62 = vadd.f32 %v3903_v58, %v2956_v38  ;;  %v4174_v57 = vpop.f32.mrb[50].mxu1 }
 0x9f1   : > { %v2968_v6 = vadd.f32 %v4174_v57, %v3903_v58  ;;  %v2959_v59 = vpop.f32.mrb[51].mxu1  ;;  %v2973_v34 = vadd.f32 %v2965_v5, %v5070_v60  ;;  %v3913_v57 = vld [vmem:[%s5863_s14] ss:$0 sm:$0xff] }
 0x9f2   : > { %v2971_v10 = vadd.f32 %v2957_v62, %v5062_v49  ;;  %v2960_v16 = vadd.f32 %v3903_v58, %v2959_v59  ;;  %v4407_v49 = vld [vmem:[#allocation7 + $0x10] ss:$8 sps:$4 sm:$0xff]  }
 0x9f3   : > { %2977 = vst [vmem:[%s768_s26 + $0x10] sm:$0xff] %v2973_v34  ;;  %v2974_v3 = vadd.f32 %v2968_v6, %v5074_v0  ;;  %3158 = vmatpush1.bf16.msra.mxu0 %v4407_v49 }
 0x9f4   : > { %2975 = vst [vmem:[%s768_s26] sm:$0xff] %v2971_v10  ;;  %v2972_v41 = vadd.f32 %v2960_v16, %v5066_v53  ;;  %2981 = vadd.xlane.f32.xlu0 %v2971_v10  ;;  %3159 = vmatprep.subr.bf16.mxu0 %v4412_v11 }
 0x9f5   : > { %2978 = vst [vmem:[%s768_s26 + $0x18] sm:$0xff] %v2974_v3 }
 0x9f6   : > { %2976 = vst [vmem:[%s768_s26 + $0x8] sm:$0xff] %v2972_v41  ;;  %2983 = vadd.xlane.f32.xlu1 %v2972_v41  ;;  %s775_s26 = scalar_lea.vmem %s5914_s23, %s3943_s5 }
 0x9f7   : > { %3160 = vmatpush1.bf16.msra.mxu0 %v4410_v18 }
 0x9f8   : > { %2985 = vadd.xlane.f32.xlu0 %v2973_v34  ;;  %3161 = vmatprep.subr.bf16.mxu0 %v4415_v13 }
 0x9fb   : > { %3162 = vmatpush1.bf16.msra.mxu0 %v4413_v47 }
 0x9fc   : > { %2987 = vadd.xlane.f32.xlu0 %v2974_v3  ;;  %3163 = vmatprep.subr.bf16.mxu0 %v4418_v56 }
 0x9ff   : > { %3164 = vmatpush1.bf16.msra.mxu0 %v4416_v19 }
 0xa00   : > { %3165 = vmatprep.subr.bf16.mxu0 %v4421_v36 }
 0xa03   : > { %3166 = vmatpush1.bf16.msra.mxu0 %v4419_v32 }
 0xa04   : > { %3167 = vmatprep.subr.bf16.mxu0 %v4424_v43  ;;  %v3452_v43 = vsub.s32 4, %v5045_v26 }
 0xa07   : > { %3168 = vmatpush1.bf16.msra.mxu0 %v4422_v46  ;;  %v3493_v46 = vsub.s32 5, %v5045_v26 }
 0xa08   : > { %3169 = vmatprep.subr.bf16.mxu0 %v4427_v20  ;;  %v3534_v20 = vsub.s32 6, %v5045_v26 }
 0xa0b   : > { %3170 = vmatpush1.bf16.msra.mxu0 %v4425_v23 }
 0xa81   : > { %v2982_v60 = vpop.xlane.xlu0 %2981 }
 0xa82   : > { %v2989_v12 = vmul.f32 0.0078125, %v2982_v60 }
 0xa83   : > { %v2984_v53 = vpop.xlane.xlu1 %2983 }
 0xa84   : > { %v2993_v30 = vsub.f32 %v2971_v10, %v2989_v12  ;;  %v2990_v31 = vmul.f32 0.0078125, %v2984_v53  ;;  %v3061_v12 = vld [vmem:[%s5865_s16] sm:$0x3] }
 0xa85   : > { %v2986_v40 = vpop.xlane.xlu0 %2985  ;;  %v3072_v53 = vrot.slane %v3061_v12, %v5054_v29  ;;  %v3068_v32 = vrot.slane %v3061_v12, %v5048_v27 }
 0xa86   : > { %v2994_v0 = vsub.f32 %v2972_v41, %v2990_v31  ;;  %v2991_v15 = vmul.f32 0.0078125, %v2986_v40  ;;  %v2997_v51 = vmul.f32 %v2993_v30, %v2993_v30 }
 0xa88   : > { %v2995_v25 = vsub.f32 %v2973_v34, %v2991_v15  ;;  %3001 = vadd.xlane.f32.xlu0 %v2997_v51  ;;  %v2998_v63 = vmul.f32 %v2994_v0, %v2994_v0 }
 0xa89   : > { %v2988_v50 = vpop.xlane.xlu0 %2987 }
 0xa8a   : > { %v2992_v17 = vmul.f32 0.0078125, %v2988_v50  ;;  %3003 = vadd.xlane.f32.xlu1 %v2998_v63  ;;  %v2999_v39 = vmul.f32 %v2995_v25, %v2995_v25 }
 0xa8c   : > { %v2996_v8 = vsub.f32 %v2974_v3, %v2992_v17  ;;  %3005 = vadd.xlane.f32.xlu0 %v2999_v39 }
 0xa8e   : > { %v3000_v4 = vmul.f32 %v2996_v8, %v2996_v8 }
 0xa90   : > { %3007 = vadd.xlane.f32.xlu1 %v3000_v4 }
 0xb15   : > { %v3002_v45 = vpop.xlane.xlu0 %3001 }
 0xb16   : > { %v3009_v7 = vmul.f32 0.0078125, %v3002_v45 }
 0xb17   : > { %v3004_v9 = vpop.xlane.xlu1 %3003 }
 0xb18   : > { %v3013_v35 = vadd.f32 1e-05, %v3009_v7  ;;  %v3010_v54 = vmul.f32 0.0078125, %v3004_v9  ;;  %v3419_v7 = vsub.s32 3, %v5045_v26  ;;  %v3289_v9 = vld [vmem:[%s5912_s3] sm:$0x7f] }
 0xb19   : > { %v3006_v2 = vpop.xlane.xlu0 %3005 }
 0xb1a   : > { %4572 = vrsqrt.f32 %v3013_v35  ;;  %v3014_v37 = vadd.f32 1e-05, %v3010_v54  ;;  %v3011_v42 = vmul.f32 0.0078125, %v3006_v2  ;;  %v3239_v35 = vadd.s32 16, %v5045_v26 }
 0xb1b   : > { %v5614_v2 = vrot.slane %v3289_v9, %v5048_v27 }
 0xb1c   : > { %4574 = vrsqrt.f32 %v3014_v37  ;;  %v3015_v55 = vadd.f32 1e-05, %v3011_v42  ;;  %v5617_v37 = vrot.slane %v3289_v9, %v5054_v29 }
 0xb1d   : > { %v3008_v14 = vpop.xlane.xlu1 %3007 }
 0xb1e   : > { %4576 = vrsqrt.f32 %v3015_v55  ;;  %v3012_v44 = vmul.f32 0.0078125, %v3008_v14  ;;  %v3238_v55 = vadd.s32 8, %v5045_v26 }
 0xb20   : > { %v3016_v22 = vadd.f32 1e-05, %v3012_v44  ;;  %v5620_v44 = vrot.slane %v3289_v9, %v3452_v43 }
 0xb22   : > { %4578 = vrsqrt.f32 %v3016_v22  ;;  %v5622_v22 = vrot.slane %v3289_v9, %v3493_v46 }
 0xb24   : > { %v4573_v48 = vpop.eup %4572 }
 0xb25   : > { %v3021_v58 = vmul.f32 %v4573_v48, %v2993_v30  ;;  %v5624_v48 = vrot.slane %v3289_v9, %v3534_v20 }
 0xb26   : > { %v4575_v21 = vpop.eup %4574 }
 0xb27   : > { %v3022_v5 = vmul.f32 %v4575_v21, %v2994_v0  ;;  %v3031_v38 = vmul.f32 %v3912_v1, %v3021_v58  ;;  %v5632_v58 = vrot.slane %v3289_v9, %v3419_v7 }
 0xb28   : > { %v4577_v62 = vpop.eup %4576 }
 0xb29   : > { %v3032_v6 = vmul.f32 %v3912_v1, %v3022_v5  ;;  %v3041_v59 = vadd.f32 %v3913_v57, %v3031_v38  ;;  %v3023_v16 = vmul.f32 %v4577_v62, %v2995_v25  ;;  %v5637_v5 = vand.u32 15, %v3239_v35 }
 0xb2b   : > { %v3042_v10 = vadd.f32 %v3913_v57, %v3032_v6  ;;  %v3033_v61 = vmul.f32 %v3912_v1, %v3023_v16  ;;  %v5646_v6 = vand.u32 15, %v5045_v26  ;;  %vm3301_vm11 = vcmp.ge.s32.totalorder %v5637_v5, 3 }
 0xb2c   : > { %v4579_v34 = vpop.eup %4578  ;;  %vm3346_vm12 = vcmp.ge.s32.totalorder %v5637_v5, 2  ;;  %vm3387_vm13 = vcmp.ge.s32.totalorder %v5637_v5, 1 }
 0xb2d   : > { %v3062_v41 = vpack.c.bf16 %v3042_v10, %v3041_v59  ;;  %v3024_v3 = vmul.f32 %v4579_v34, %v2996_v8  ;;  %v3043_v49 = vadd.f32 %v3913_v57, %v3033_v61  ;;  %vm3299_vm0 = vcmp.ge.s32.totalorder %v5646_v6, 3 }
 0xb2e   : > { %vm3344_vm2 = vcmp.ge.s32.totalorder %v5646_v6, 2  ;;  %vm3385_vm3 = vcmp.ge.s32.totalorder %v5646_v6, 1 }
 0xb2f   : > { %3188 = vmatmul.mubr.bf16.vlgmr.msra.gmra.mrb[44].mxu0 %v3062_v41  ;;  %v3034_v28 = vmul.f32 %v3912_v1, %v3024_v3  ;;  %v5628_v1 = vrot.slane %v3289_v9, %v1382_v24  ;;  %v5642_v24 = vand.u32 15, %v3238_v55 }
 0xb30   : > { %3197 = vmatprep.mubr.bf16.mxu0 %v4736_v33 }
 0xb31   : > { %v3044_v52 = vadd.f32 %v3913_v57, %v3034_v28  ;;  %v3240_v57 = vadd.s32 24, %v5045_v26  ;;  %vm3443_vm14 = vcmp.lt.s32.totalorder %v5642_v24, 15  ;;  %vm3484_vm15 = vcmp.lt.s32.totalorder %v5642_v24, 14 }
 0xb32   : > { %vm3525_vm1 = vcmp.lt.s32.totalorder %v5642_v24, 13 }
 0xb33   : > { %v3063_v60 = vpack.c.bf16 %v3044_v52, %v3043_v49 }
 0xb37   : > { %3198 = vmatmul.mubr.bf16.gmra.mrb[48].mxu0 %v3063_v60 }
 0xc02   : > { %v3189_v30 = vpop.f32.mrb[44].mxu0 }
 0xc03   : > { %v3191_v31 = vpop.f32.mrb[45].mxu0  ;;  %v3190_v42 = vadd.f32 %v3189_v30, %v3068_v32 }
 0xc04   : > { %v3192_v40 = vadd.f32 %v3191_v31, %v3072_v53  ;;  %v3193_v0 = vpop.f32.mrb[46].mxu0 }
 0xc05   : > { %v3195_v15 = vpop.f32.mrb[47].mxu0  ;;  %v3194_v21 = vadd.f32 %v3193_v0, %v3068_v32 }
 0xc06   : > { %v3930_v51 = vmul.f32 -1.442695, %v3192_v40  ;;  %v3196_v25 = vadd.f32 %v3195_v15, %v3072_v53 }
 0xc08   : > { %4580 = vpow2.f32 %v3930_v51  ;;  %v3931_v63 = vmul.f32 -1.442695, %v3196_v25 }
 0xc0a   : > { %4582 = vpow2.f32 %v3931_v63  ;;  %v3199_v33 = vpop.f32.mrb[48].mxu0 }
 0xc0b   : > { %v3201_v50 = vpop.f32.mrb[49].mxu0  ;;  %v3200_v62 = vadd.f32 %v3199_v33, %v3068_v32 }
 0xc0c   : > { %v3202_v17 = vadd.f32 %v3201_v50, %v3072_v53  ;;  %v3203_v39 = vpop.f32.mrb[50].mxu0 }
 0xc0d   : > { %v3205_v8 = vpop.f32.mrb[51].mxu0  ;;  %v3204_v34 = vadd.f32 %v3203_v39, %v3068_v32 }
 0xc0e   : > { %v3932_v4 = vmul.f32 -1.442695, %v3202_v17  ;;  %v3206_v11 = vadd.f32 %v3205_v8, %v3072_v53  ;;  %v5694_v8 = vand.u32 15, %v3240_v57 }
 0xc10   : > { %4584 = vpow2.f32 %v3932_v4  ;;  %v3933_v18 = vmul.f32 -1.442695, %v3206_v11  ;;  %vm3445_vm4 = vcmp.lt.s32.totalorder %v5694_v8, 15 }
 0xc12   : > { %v4581_v13 = vpop.eup %4580  ;;  %4586 = vpow2.f32 %v3933_v18 }
 0xc13   : > { %v3220_v47 = vadd.f32 1.0, %v4581_v13 }
 0xc14   : > { %v4583_v56 = vpop.eup %4582 }
 0xc15   : > { %4588 = vrcp.f32 %v3220_v47  ;;  %v3221_v19 = vadd.f32 1.0, %v4583_v56 }
 0xc17   : > { %4590 = vrcp.f32 %v3221_v19 }
 0xc1a   : > { %v4585_v36 = vpop.eup %4584 }
 0xc1b   : > { %v3222_v23 = vadd.f32 1.0, %v4585_v36 }
 0xc1c   : > { %v4587_v45 = vpop.eup %4586 }
 0xc1d   : > { %4592 = vrcp.f32 %v3222_v23  ;;  %v3223_v54 = vadd.f32 1.0, %v4587_v45 }
 0xc1f   : > { %v4589_v14 = vpop.eup %4588  ;;  %4594 = vrcp.f32 %v3223_v54 }
 0xc20   : > { %v5630_v27 = vmul.f32 %v4589_v14, %v3190_v42 }
 0xc21   : > { %v4591_v29 = vpop.eup %4590 }
 0xc22   : > { %v3233_v38 = vmul.f32 %v4591_v29, %v3194_v21  ;;  %v3290_v59 = vrot.slane %v5630_v27, 5  ;;  %v3335_v10 = vrot.slane %v5630_v27, 6  ;;  %v3376_v16 = vrot.slane %v5630_v27, 7 }
 0xc23   : > { %v3429_v41 = vrot.slane %v5630_v27, 1  ;;  %v3474_v52 = vrot.slane %v5630_v27, 2  ;;  %v3515_v30 = vrot.slane %v5630_v27, 3  ;;  %v5698_v4 = vmul.f32 %v5632_v58, %v5630_v27 }
 0xc24   : > { %v3291_v3 = vrot.slane %v3233_v38, 5  ;;  %v3336_v61 = vrot.slane %v3233_v38, 6  ;;  %v3377_v28 = vrot.slane %v3233_v38, 7  ;;  %v3430_v49 = vrot.slane %v3233_v38, 1 }
 0xc25   : > { %v3475_v60 = vrot.slane %v3233_v38, 2  ;;  %v3516_v12 = vrot.slane %v3233_v38, 3  ;;  %v3422_v13 = vmul.f32 %v5632_v58, %v3233_v38 }
 0xc26   : > { %v3297_v31 = vsel %vm3294_vm5, %v3290_v59, %v3291_v3  ;;  %v3342_v40 = vsel %vm3339_vm6, %v3335_v10, %v3336_v61  ;;  %v3383_v0 = vsel %vm3380_vm7, %v3376_v16, %v3377_v28  ;;  %v5677_v63 = vsel %vm3433_vm8, %v3429_v41, %v3430_v49 }
 0xc27   : > { %v4593_v53 = vpop.eup %4592  ;;  %v3316_v15 = vmul.f32 %v5614_v2, %v3297_v31  ;;  %v3357_v51 = vmul.f32 %v5617_v37, %v3342_v40  ;;  %v3398_v25 = vmul.f32 %v5628_v1, %v3383_v0  ;;  %v5684_v50 = vsel %vm3478_vm9, %v3474_v52, %v3475_v60 }
 0xc28   : > { %v5690_v17 = vsel %vm3519_vm10, %v3515_v30, %v3516_v12  ;;  %v5692_v39 = vmul.f32 %v4593_v53, %v3200_v62 }
 0xc29   : > { %v4595_v33 = vpop.eup %4594  ;;  %v3373_v11 = vadd.f32 %v3357_v51, %v3316_v15  ;;  %v3536_v26 = vmul.f32 %v5624_v48, %v5690_v17 }
 0xc2a   : > { %v5700_v18 = vmul.f32 %v4595_v33, %v3204_v34  ;;  %v3292_v47 = vrot.slane %v5692_v39, 5  ;;  %v3337_v56 = vrot.slane %v5692_v39, 6  ;;  %v3378_v19 = vrot.slane %v5692_v39, 7 }
 0xc2b   : > { %v3414_v36 = vadd.f32 %v3398_v25, %v3373_v11  ;;  %v3431_v32 = vrot.slane %v5692_v39, 1  ;;  %v3476_v43 = vrot.slane %v5692_v39, 2  ;;  %v3517_v46 = vrot.slane %v5692_v39, 3 }
 0xc2c   : > { %v3296_v20 = vsel %vm3294_vm5, %v3291_v3, %v3292_v47  ;;  %v3341_v23 = vsel %vm3339_vm6, %v3336_v61, %v3337_v56  ;;  %v3382_v45 = vsel %vm3380_vm7, %v3377_v28, %v3378_v19  ;;  %v3293_v7 = vrot.slane %v5700_v18, 5 }
 0xc2d   : > { %v3426_v9 = vadd.f32 %v3422_v13, %v3414_v36  ;;  %v3317_v35 = vmul.f32 %v5614_v2, %v3296_v20  ;;  %v3358_v54 = vmul.f32 %v5617_v37, %v3341_v23  ;;  %v3399_v42 = vmul.f32 %v5628_v1, %v3382_v45 }
 0xc2e   : > { %v3435_v55 = vsel %vm3433_vm8, %v3430_v49, %v3431_v32  ;;  %v3480_v14 = vsel %vm3478_vm9, %v3475_v60, %v3476_v43  ;;  %v3521_v29 = vsel %vm3519_vm10, %v3516_v12, %v3517_v46  ;;  %v3295_v21 = vsel %vm3294_vm5, %v3292_v47, %v3293_v7 }
 0xc2f   : > { %v3329_v38 = vsel %vm3301_vm11, %v3317_v35, 0.0  ;;  %v3370_v62 = vsel %vm3346_vm12, %v3358_v54, 0.0  ;;  %v3423_v57 = vmul.f32 %v5632_v58, %v5692_v39  ;;  %v3455_v34 = vmul.f32 %v5620_v44, %v3435_v55 }
 0xc30   : > { %v3374_v3 = vadd.f32 %v3370_v62, %v3329_v38  ;;  %v3411_v61 = vsel %vm3387_vm13, %v3399_v42, 0.0  ;;  %v3496_v28 = vmul.f32 %v5622_v22, %v3480_v14  ;;  %v3298_v49 = vsel %vm3294_vm5, %v3293_v7, %v3290_v59 }
 0xc31   : > { %v3467_v60 = vsel %vm3443_vm14, %v3455_v34, 0.0  ;;  %v3537_v12 = vmul.f32 %v5624_v48, %v3521_v29  ;;  %v3315_v53 = vmul.f32 %v5614_v2, %v3298_v49  ;;  %v3338_v31 = vrot.slane %v5700_v18, 6 }
 0xc32   : > { %v3415_v40 = vadd.f32 %v3411_v61, %v3374_v3  ;;  %v3471_v0 = vadd.f32 %v3467_v60, %v3426_v9  ;;  %v3508_v5 = vsel %vm3484_vm15, %v3496_v28, 0.0  ;;  %v3318_v15 = vmul.f32 %v5614_v2, %v3295_v21 }
 0xc33   : > { %v3327_v51 = vsel %vm3299_vm0, %v3315_v53, 0.0  ;;  %v3340_v59 = vsel %vm3339_vm6, %v3337_v56, %v3338_v31  ;;  %v3343_v25 = vsel %vm3339_vm6, %v3338_v31, %v3335_v10  ;;  %v3379_v33 = vrot.slane %v5700_v18, 7 }
 0xc34   : > { %vm3486_vm5 = vcmp.lt.s32.totalorder %v5694_v8, 14  ;;  %v3427_v11 = vadd.f32 %v3423_v57, %v3415_v40  ;;  %v3512_v13 = vadd.f32 %v3508_v5, %v3471_v0  ;;  %v3356_v47 = vmul.f32 %v5617_v37, %v3343_v25 }
 0xc35   : > { %v3359_v2 = vmul.f32 %v5617_v37, %v3340_v59  ;;  %v3549_v36 = vsel %vm3525_vm1, %v3537_v12, 0.0  ;;  %v3381_v56 = vsel %vm3380_vm7, %v3378_v19, %v3379_v33  ;;  %v3384_v10 = vsel %vm3380_vm7, %v3379_v33, %v3376_v16 }
 0xc36   : > { %v3432_v20 = vrot.slane %v5700_v18, 1  ;;  %v3553_v23 = vadd.f32 %v3549_v36, %v3512_v13  ;;  %v3368_v45 = vsel %vm3344_vm2, %v3356_v47, 0.0  ;;  %v3397_v37 = vmul.f32 %v5628_v1, %v3384_v10 }
 0xc37   : > { %v3375_v7 = vadd.f32 %v3359_v2, %v3318_v15  ;;  %v3372_v9 = vadd.f32 %v3368_v45, %v3327_v51  ;;  %v3400_v24 = vmul.f32 %v5628_v1, %v3381_v56  ;;  %v3424_v54 = vmul.f32 %v5632_v58, %v5700_v18 }
 0xc38   : > { %v3434_v19 = vsel %vm3433_vm8, %v3431_v32, %v3432_v20  ;;  %v3437_v16 = vsel %vm3433_vm8, %v3432_v20, %v3429_v41  ;;  %v3409_v35 = vsel %vm3385_vm3, %v3397_v37, 0.0  ;;  %v3477_v29 = vrot.slane %v5700_v18, 2 }
 0xc39   : > { %v3456_v42 = vmul.f32 %v5620_v44, %v3434_v19  ;;  %v3457_v55 = vmul.f32 %v5620_v44, %v3437_v16  ;;  %v3413_v14 = vadd.f32 %v3409_v35, %v3372_v9  ;;  %v3416_v1 = vadd.f32 %v3400_v24, %v3375_v7 }
 0xc3a   : > { %v3518_v32 = vrot.slane %v5700_v18, 3  ;;  %v3454_v21 = vmul.f32 %v5620_v44, %v5677_v63  ;;  %vm3527_vm6 = vcmp.lt.s32.totalorder %v5694_v8, 13  ;;  %v3479_v62 = vsel %vm3478_vm9, %v3476_v43, %v3477_v29 }
 0xc3b   : > { %v3469_v6 = vsel %vm3445_vm4, %v3457_v55, 0.0  ;;  %v3472_v41 = vadd.f32 %v3456_v42, %v3427_v11  ;;  %v3425_v58 = vadd.f32 %v5698_v4, %v3413_v14  ;;  %v3428_v38 = vadd.f32 %v3424_v54, %v3416_v1 }
 0xc3c   : > { %v3482_v18 = vsel %vm3478_vm9, %v3477_v29, %v3474_v52  ;;  %v3497_v44 = vmul.f32 %v5622_v22, %v3479_v62  ;;  %v3520_v4 = vsel %vm3519_vm10, %v3517_v46, %v3518_v32  ;;  %v3523_v43 = vsel %vm3519_vm10, %v3518_v32, %v3515_v30  ;;  %v3934_v52 = vld [vmem:[%s5913_s28] ss:$0 sm:$0xff] }
 0xc3d   : > { %v3498_v63 = vmul.f32 %v5622_v22, %v3482_v18  ;;  %v3495_v57 = vmul.f32 %v5622_v22, %v5684_v50  ;;  %v3470_v34 = vadd.f32 %v3454_v21, %v3425_v58  ;;  %v3473_v3 = vadd.f32 %v3469_v6, %v3428_v38 }
 0xc3e   : > { %v3539_v39 = vmul.f32 %v5624_v48, %v3523_v43  ;;  %v3513_v61 = vadd.f32 %v3497_v44, %v3472_v41  ;;  %v3538_v27 = vmul.f32 %v5624_v48, %v3520_v4  ;;  %v3564_v22 = vadd.f32 %v3934_v52, %v3553_v23 }
 0xc3f   : > { %v3510_v46 = vsel %vm3486_vm5, %v3498_v63, 0.0  ;;  %v3511_v30 = vadd.f32 %v3495_v57, %v3470_v34 }
 0xc40   : > { %v3514_v28 = vadd.f32 %v3510_v46, %v3473_v3  ;;  %v3551_v50 = vsel %vm3527_vm6, %v3539_v39, 0.0  ;;  %v3554_v49 = vadd.f32 %v3538_v27, %v3513_v61  ;;  %v3598_v0 = vmul.f32 %v3564_v22, %v3564_v22 }
 0xc41   : > { %v3552_v60 = vadd.f32 %v3536_v26, %v3511_v30 }
 0xc42   : > { %v3555_v12 = vadd.f32 %v3551_v50, %v3514_v28  ;;  %v3565_v53 = vadd.f32 %v3934_v52, %v3554_v49 }
 0xc43   : > { %v3563_v31 = vadd.f32 %v3934_v52, %v3552_v60 }
 0xc44   : > { %v3566_v40 = vadd.f32 %v3934_v52, %v3555_v12  ;;  %v3599_v51 = vmul.f32 %v3565_v53, %v3565_v53 }
 0xc45   : > { %v3951_v48 = vpack.c.bf16 %v3564_v22, %v3563_v31  ;;  %v3587_v5 = vadd.f32 %v3564_v22, %v3563_v31  ;;  %v3597_v15 = vmul.f32 %v3563_v31, %v3563_v31 }
 0xc46   : > { %v3956_v17 = vpack.c.bf16 %v3566_v40, %v3565_v53  ;;  %v3600_v33 = vmul.f32 %v3566_v40, %v3566_v40 }
 0xc47   : > { %3952 = vst [vmem:[%s775_s26] sm:$0xff] %v3951_v48   ;;  %v3588_v8 = vadd.f32 %v3587_v5, %v3565_v53  ;;  %v3601_v59 = vadd.f32 %v3598_v0, %v3597_v15 }
 0xc48   : > { %3958 = vst [vmem:[%s775_s26 + $0x8] sm:$0xff] %v3956_v17  }
 0xc49   : > { %v3589_v25 = vadd.f32 %v3588_v8, %v3566_v40  ;;  %v3602_v11 = vadd.f32 %v3601_v59, %v3599_v51 }
 0xc4b   : > { %v3590_v13 = vrot.slane %v3589_v25, 4  ;;  %v3603_v47 = vadd.f32 %v3602_v11, %v3600_v33 }
 0xc4d   : > { %v3591_v2 = vadd.f32 %v3590_v13, %v3589_v25  ;;  %v3604_v36 = vrot.slane %v3603_v47, 4 }
 0xc4f   : > { %v3592_v56 = vrot.slane %v3591_v2, 2  ;;  %v3605_v10 = vadd.f32 %v3604_v36, %v3603_v47 }
 0xc51   : > { %v3593_v20 = vadd.f32 %v3592_v56, %v3591_v2  ;;  %v3606_v23 = vrot.slane %v3605_v10, 2 }
 0xc53   : > { %v3594_v45 = vrot.slane %v3593_v20, 1  ;;  %v3607_v7 = vadd.f32 %v3606_v23, %v3605_v10 }
 0xc55   : > { %v3595_v37 = vadd.f32 %v3594_v45, %v3593_v20  ;;  %v3608_v9 = vrot.slane %v3607_v7, 1 }
 0xc57   : > { %3596 = vst [vmem:[%s779_s25] sm:$0x1] %v3595_v37  ;;  %v3609_v24 = vadd.f32 %v3608_v9, %v3607_v7 }
 0xc59   : > { %3610 = vst [vmem:[%s782_s27] sm:$0x1] %v3609_v24 }
 0xc5a PF: > { %s5917_s18 = sld [smem:[#allocation12_spill]] }
 0xc60   : > { %s36_s3 = sadd.s32 1, %s5917_s18  }
 0xc61   : > { %p33_p4 = scmp.ge.s32.totalorder %s36_s3, 4  }
 0xc63   :  { %35 = sbr.rel (!%p33_p4) target bundleno = 16 (0x10), region = 179 }
 0xc6a   :  { %3678 = vsyncpa [#allocation3], 1 }
 0xc6b   :  { %3680 = vsyncpa [#allocation3 + $0x1], 1 }
 0xc6c   :  { %3681 = vsyncpa [#allocation5], 1 }
 0xc6d   :  { %3682 = vsyncpa [#allocation8], 1 }

</bundles_post_ra>
